<compile_context>
chip_gen: v7x
topology: tpu7x:2x2x1
jax: 0.10.0
libtpu: 0.0.40
codegen_flags: <defaults>
</compile_context>

<pallas_src>
import functools

import jax
import jax.numpy as jnp
from jax.experimental import pallas as pl
from jax.experimental.pallas import tpu as pltpu

EPS = 1e-5          # torch.nn.InstanceNorm2d default (affine=False, biased var)
SLOT = 16           # bf16 sublane pack: rows per tap slot in the column buffer
_TAPS = tuple((dh, dw) for dh in (-1, 0, 1) for dw in (-1, 0, 1))  # row-major 3x3


# ------------------------------------------------------------------- kernel --

def _decoder_block_kernel(masks_ref, u_ref, skip_ref, x_ref,
                          wx_ref, wa1_ref, wa2_ref, wo_ref, w1_ref, w2_ref,
                          o_ref, cols_ref, *, W):
    HW = skip_ref.shape[-1]
    inv_hw = 1.0 / HW

    # Zero the persistent im2col scratch once (pad rows must be finite so that
    # the zero weight columns multiplying them contribute exactly 0).
    @pl.when(pl.program_id(0) == 0)
    def _zero_cols():
        cols_ref[...] = jnp.zeros_like(cols_ref)

    # Resident bf16 multiplicative border masks (hoisted; center tap needs none).
    tap_masks = []
    for k, (dh, dw) in enumerate(_TAPS):
        tap_masks.append(None if (dh == 0 and dw == 0)
                         else masks_ref[pl.ds(k, 1), :])

    def conv_in(x, w_ref_, relu):
        """3x3 conv (pad=1, bias=False) as ONE MXU matmul + InstanceNorm (+ReLU).

        x: (Cin, HW) f32 lane-dense.  w_ref_: (Cout, 9*SLOT) bf16, VMEM-resident
        with zero columns for rows >= Cin of every tap slot.
        """
        cin = x.shape[0]
        for k, (dh, dw) in enumerate(_TAPS):
            off = dh * W + dw
            # t[:, p] = x[:, p + off]; wrapped positions are exactly the
            # zero-padded border positions and are masked to 0.
            t = x if off == 0 else pltpu.roll(x, shift=(-off) % HW, axis=1)
            tb = t.astype(jnp.bfloat16)
            m = tap_masks[k]
            if m is not None:
                tb = tb * m                               # bf16 multiplicative mask
            cols_ref[pl.ds(k * SLOT, cin), :] = tb        # 16-row-aligned slot
        acc = jnp.dot(w_ref_[...], cols_ref[...],
                      preferred_element_type=jnp.float32)  # (Cout, HW) f32
        # InstanceNorm2d(affine=False): single-pass per-channel stats.
        mu = jnp.sum(acc, axis=1, keepdims=True) * inv_hw
        ex2 = jnp.sum(acc * acc, axis=1, keepdims=True) * inv_hw
        var = jnp.maximum(ex2 - mu * mu, 0.0)
        y = (acc - mu) * jax.lax.rsqrt(var + EPS)
        return jnp.maximum(y, 0.0) if relu else y

    skip = skip_ref[0].astype(jnp.float32)                          # (Cs,  HW)
    # prepare_y: fused bilinear upsample as one MXU matmul (bf16 in, f32 acc).
    yu = jnp.dot(x_ref[0], u_ref[...],
                 preferred_element_type=jnp.float32)                # (Cin, HW)

    # ---- UAFM_SpAtten(skip, upsampled x) ----
    xc = conv_in(skip, wx_ref, True)                                # prepare_x
    stats = jnp.concatenate(                                        # avg/max over C
        [jnp.mean(xc, axis=0, keepdims=True),
         jnp.max(xc, axis=0, keepdims=True),
         jnp.mean(yu, axis=0, keepdims=True),
         jnp.max(yu, axis=0, keepdims=True)], axis=0)               # (4, HW)
    at = conv_in(stats, wa1_ref, True)                              # (2, HW)
    at = conv_in(at, wa2_ref, False)                                # (1, HW)
    s = pl.reciprocal(1.0 + jnp.exp(-at), approx=True)              # sigmoid (EUP)
    fused = xc * s + yu * (1.0 - s)                                 # (Cin, HW)
    out = conv_in(fused, wo_ref, True)                              # conv_out

    # ---- DecoderBlock.conv1 / conv2 ----
    out = conv_in(out, w1_ref, True)
    out = conv_in(out, w2_ref, True)
    o_ref[0] = out.astype(o_ref.dtype)                              # bf16 writeback


# ------------------------------------------------------- one-time host prep --

def init_params(key, in_channels, skip_channels, out_channels):
    ks = jax.random.split(key, 6)

    def w(k, cin, cout):  # HWIO weight, Conv2d-style fan-in scaling
        return (jax.random.normal(k, (3, 3, cin, cout), jnp.float32)
                * (1.0 / jnp.sqrt(9.0 * cin)))

    return {
        "conv_x":   w(ks[0], skip_channels, in_channels),   # UAFM conv for skip
        "atten1":   w(ks[1], 4, 2),                         # conv_xy_atten[0] (ReLU)
        "atten2":   w(ks[2], 2, 1),                         # conv_xy_atten[1] (no ReLU)
        "conv_out": w(ks[3], in_channels, out_channels),    # UAFM conv_out
        "conv1":    w(ks[4], out_channels, out_channels),   # DecoderBlock.conv1
        "conv2":    w(ks[5], out_channels, out_channels),   # DecoderBlock.conv2
    }


def _prep_weight(w_hwio):
    """HWIO -> (Cout, 9*SLOT) bf16 with zero-padded columns for rows >= Cin."""
    kh, kw, cin, cout = w_hwio.shape
    assert cin <= SLOT, "TODO(synk): multiple slots per tap for Cin > 16"
    w = jnp.transpose(w_hwio, (3, 0, 1, 2)).reshape(cout, kh * kw, cin)
    wpad = jnp.zeros((cout, kh * kw, SLOT), jnp.float32).at[:, :, :cin].set(w)
    return wpad.reshape(cout, kh * kw * SLOT).astype(jnp.bfloat16)


def _make_tap_masks(H, W):
    """(9, H*W) bf16 {0,1} validity masks, one row per tap (row-major 3x3)."""
    pos = jnp.arange(H * W, dtype=jnp.int32)
    row, col = pos // W, pos % W
    rows = []
    for dh, dw in _TAPS:
        ok = ((row + dh >= 0) & (row + dh <= H - 1) &
              (col + dw >= 0) & (col + dw <= W - 1))
        rows.append(ok)
    return jnp.stack(rows, axis=0).astype(jnp.bfloat16)


def _linear_resize_1d(src, dst):
    """1-D bilinear (align_corners=False, edge-clamped) resize matrix (src, dst)."""
    i = jnp.arange(dst, dtype=jnp.float32)
    srcpos = (i + 0.5) * (src / dst) - 0.5
    lo = jnp.floor(srcpos)
    whi = srcpos - lo
    lo_i = jnp.clip(lo.astype(jnp.int32), 0, src - 1)
    hi_i = jnp.clip(lo.astype(jnp.int32) + 1, 0, src - 1)
    idx = jnp.arange(dst)
    m = jnp.zeros((src, dst), jnp.float32)
    m = m.at[lo_i, idx].add(1.0 - whi)
    m = m.at[hi_i, idx].add(whi)
    return m


def _make_bilinear_matrix(hlo, wlo, hs, ws):
    """(Hlo*Wlo, Hs*Ws) bf16 matrix: yu_flat = x_flat @ U (separable bilinear)."""
    mh = _linear_resize_1d(hlo, hs)
    mw = _linear_resize_1d(wlo, ws)
    u = jnp.einsum("ab,cd->acbd", mh, mw).reshape(hlo * wlo, hs * ws)
    return u.astype(jnp.bfloat16)   # 2x-upsample weights are exact in bf16


def prep_params(params, x_spatial, skip_spatial):
    """One-time prep: weight repack + mask table + upsample matrix (all bf16)."""
    hx, wx = x_spatial
    hs, ws = skip_spatial
    prep = {k: _prep_weight(v) for k, v in params.items()}
    prep["masks"] = _make_tap_masks(hs, ws)
    prep["upsample"] = _make_bilinear_matrix(hx, wx, hs, ws)
    return prep


# ------------------------------------------------------------------ wrapper --

def decoder_block_forward(x_nchw, skip_nchw, prep):
    """DecoderBlock.forward(x, skip): x = sa(skip, x); x = conv1(x); x = conv2(x)."""
    n, cin, hx, wxx = x_nchw.shape
    _, cs, hs, ws = skip_nchw.shape
    hw = hs * ws
    hwlo = hx * wxx
    cout = prep["conv2"].shape[0]

    # NCHW is already channel-major: reshape gives lane-dense (C, HW); bf16 I/O.
    skip_flat = skip_nchw.reshape(n, cs, hw).astype(jnp.bfloat16)
    x_flat = x_nchw.reshape(n, cin, hwlo).astype(jnp.bfloat16)

    kernel = functools.partial(_decoder_block_kernel, W=ws)

    def resident(a):  # constant index_map -> DMA'd once, stays in VMEM
        return pl.BlockSpec(a.shape, lambda i: (0, 0))

    out = pl.pallas_call(
        kernel,
        out_shape=jax.ShapeDtypeStruct((n, cout, hw), jnp.bfloat16),
        grid=(n,),
        in_specs=[
            resident(prep["masks"]),
            resident(prep["upsample"]),
            pl.BlockSpec((1, cs, hw), lambda i: (i, 0, 0)),
            pl.BlockSpec((1, cin, hwlo), lambda i: (i, 0, 0)),
            resident(prep["conv_x"]), resident(prep["atten1"]),
            resident(prep["atten2"]), resident(prep["conv_out"]),
            resident(prep["conv1"]), resident(prep["conv2"]),
        ],
        out_specs=pl.BlockSpec((1, cout, hw), lambda i: (i, 0, 0)),
        scratch_shapes=[pltpu.VMEM((9 * SLOT, hw), jnp.bfloat16)],
        compiler_params=pltpu.CompilerParams(
            dimension_semantics=("parallel",)),
    )(prep["masks"], prep["upsample"], skip_flat, x_flat,
      prep["conv_x"], prep["atten1"], prep["atten2"],
      prep["conv_out"], prep["conv1"], prep["conv2"])
    return out.reshape(n, cout, hs, ws)


# ----------------------------------------------------- pure-JAX reference ----

def _conv_in_act_ref(x, w_hwio, relu=True):
    """Reference conv+IN(+ReLU); mimics the kernel's bf16 matmul-input rounding."""
    xq = x.astype(jnp.bfloat16).astype(jnp.float32)
    wq = w_hwio.astype(jnp.bfloat16).astype(jnp.float32)
    y = jax.lax.conv_general_dilated(
        xq, wq, window_strides=(1, 1), padding=((1, 1), (1, 1)),
        dimension_numbers=("NCHW", "HWIO", "NCHW"))
    mu = jnp.mean(y, axis=(2, 3), keepdims=True)
    var = jnp.mean(jnp.square(y - mu), axis=(2, 3), keepdims=True)
    y = (y - mu) * jax.lax.rsqrt(var + EPS)
    return jnp.maximum(y, 0.0) if relu else y


def decoder_block_reference(x_nchw, skip_nchw, params):
    n, cin, _, _ = x_nchw.shape
    _, _, hs, ws = skip_nchw.shape
    xc = _conv_in_act_ref(skip_nchw, params["conv_x"])
    xq = x_nchw.astype(jnp.bfloat16).astype(jnp.float32)   # kernel rounds x to bf16
    yu = jax.image.resize(xq, (n, cin, hs, ws), method="bilinear")
    stats = jnp.concatenate(
        [jnp.mean(xc, axis=1, keepdims=True), jnp.max(xc, axis=1, keepdims=True),
         jnp.mean(yu, axis=1, keepdims=True), jnp.max(yu, axis=1, keepdims=True)],
        axis=1)
    at = _conv_in_act_ref(stats, params["atten1"])
    at = _conv_in_act_ref(at, params["atten2"], relu=False)
    s = jax.nn.sigmoid(at)
    fused = xc * s + yu * (1.0 - s)
    out = _conv_in_act_ref(fused, params["conv_out"])
    out = _conv_in_act_ref(out, params["conv1"])
    out = _conv_in_act_ref(out, params["conv2"])
    return out.astype(jnp.bfloat16).astype(jnp.float32)    # kernel emits bf16


# -------------------------------------------------------------------- main ---

if __name__ == "__main__":
    in_channels, skip_channels, out_channels = 8, 4, 8
    n, hx, wx = 2, 8, 8          # high-level feature (x) spatial size
    hs, ws = 16, 16              # skip spatial size (2x upsample inside UAFM)

    key = jax.random.PRNGKey(0)
    kx, kskip, kp = jax.random.split(key, 3)
    x = jax.random.normal(kx, (n, in_channels, hx, wx), jnp.float32)        # NCHW
    skip = jax.random.normal(kskip, (n, skip_channels, hs, ws), jnp.float32)
    params = init_params(kp, in_channels, skip_channels, out_channels)
    prep = prep_params(params, (hx, wx), (hs, ws))   # one-time hoisted prep

    out = jax.jit(decoder_block_forward)(x, skip, prep)
    out = jax.block_until_ready(out)
    assert out.shape == (n, out_channels, hs, ws), out.shape
    out_f = out.astype(jnp.float32)
    assert bool(jnp.all(jnp.isfinite(out_f)))

    # Sanity-check against the pure-JAX reference (same bf16 rounding of matmul
    # inputs and of the final output; tolerance covers the EUP-approx sigmoid
    # reciprocal, single-pass IN stats, and accumulation-order differences).
    ref = decoder_block_reference(x, skip, params)
    err = float(jnp.max(jnp.abs(out_f - ref)))
    assert err < 7.5e-2, f"kernel/reference mismatch: max abs err = {err}"

    print("KERNEL_OK")
</pallas_src>

<mosaic_0001>
module attributes {stable_mosaic.version = 11 : i64} {
  func.func @_decoder_block_kernel(%arg0: i32, %arg1: memref<9x256xbf16, #tpu.memory_space<vmem>>, %arg2: memref<64x256xbf16, #tpu.memory_space<vmem>>, %arg3: memref<1x4x256xbf16, #tpu.memory_space<vmem>>, %arg4: memref<1x8x64xbf16, #tpu.memory_space<vmem>>, %arg5: memref<8x144xbf16, #tpu.memory_space<vmem>>, %arg6: memref<2x144xbf16, #tpu.memory_space<vmem>>, %arg7: memref<1x144xbf16, #tpu.memory_space<vmem>>, %arg8: memref<8x144xbf16, #tpu.memory_space<vmem>>, %arg9: memref<8x144xbf16, #tpu.memory_space<vmem>>, %arg10: memref<8x144xbf16, #tpu.memory_space<vmem>>, %arg11: memref<1x8x256xbf16, #tpu.memory_space<vmem>>, %arg12: memref<144x256xbf16, #tpu.memory_space<vmem>>) attributes {dimension_semantics = [#tpu.dimension_semantics<parallel>], iteration_bounds = array<i64: 2>, scalar_prefetch = 0 : i64, scratch_operands = 1 : i64, tpu.core_type = #tpu.core_type<tc>, window_params = [{pipeline_mode = #tpu.pipeline_mode<synchronous>, transform_indices = @transform_0, window_bounds = array<i64: 9, 256>}, {pipeline_mode = #tpu.pipeline_mode<synchronous>, transform_indices = @transform_1, window_bounds = array<i64: 64, 256>}, {transform_indices = @transform_2, window_bounds = array<i64: 1, 4, 256>}, {transform_indices = @transform_3, window_bounds = array<i64: 1, 8, 64>}, {pipeline_mode = #tpu.pipeline_mode<synchronous>, transform_indices = @transform_4, window_bounds = array<i64: 8, 144>}, {pipeline_mode = #tpu.pipeline_mode<synchronous>, transform_indices = @transform_5, window_bounds = array<i64: 2, 144>}, {pipeline_mode = #tpu.pipeline_mode<synchronous>, transform_indices = @transform_6, window_bounds = array<i64: 1, 144>}, {pipeline_mode = #tpu.pipeline_mode<synchronous>, transform_indices = @transform_7, window_bounds = array<i64: 8, 144>}, {pipeline_mode = #tpu.pipeline_mode<synchronous>, transform_indices = @transform_8, window_bounds = array<i64: 8, 144>}, {pipeline_mode = #tpu.pipeline_mode<synchronous>, transform_indices = @transform_9, window_bounds = array<i64: 8, 144>}, {transform_indices = @transform_10, window_bounds = array<i64: 1, 8, 256>}]} {
    %c0_i32 = arith.constant 0 : i32
    %0 = arith.cmpi eq, %arg0, %c0_i32 : i32
    %1 = arith.extui %0 : i1 to i32
    %c0_i32_0 = arith.constant 0 : i32
    %2 = arith.cmpi ne, %1, %c0_i32_0 : i32
    scf.if %2 {
      %cst_240 = arith.constant 0.000000e+00 : bf16
      %448 = vector.broadcast %cst_240 : bf16 to vector<144x256xbf16>
      %c0_241 = arith.constant 0 : index
      %c0_242 = arith.constant 0 : index
      %449 = vector.load %arg12[%c0_241, %c0_242] : memref<144x256xbf16, #tpu.memory_space<vmem>>, vector<144x256xbf16>
      tpu.vector_store %arg12[%c0_241, %c0_242], %448 {strides = array<i32>} : memref<144x256xbf16, #tpu.memory_space<vmem>>, vector<144x256xbf16>,
    } else {
    }
    %c0 = arith.constant 0 : index
    %c0_1 = arith.constant 0 : index
    %3 = vector.load %arg1[%c0, %c0_1] : memref<9x256xbf16, #tpu.memory_space<vmem>>, vector<1x256xbf16>
    %c1 = arith.constant 1 : index
    %c0_2 = arith.constant 0 : index
    %4 = vector.load %arg1[%c1, %c0_2] : memref<9x256xbf16, #tpu.memory_space<vmem>>, vector<1x256xbf16>
    %c2 = arith.constant 2 : index
    %c0_3 = arith.constant 0 : index
    %5 = vector.load %arg1[%c2, %c0_3] : memref<9x256xbf16, #tpu.memory_space<vmem>>, vector<1x256xbf16>
    %c3 = arith.constant 3 : index
    %c0_4 = arith.constant 0 : index
    %6 = vector.load %arg1[%c3, %c0_4] : memref<9x256xbf16, #tpu.memory_space<vmem>>, vector<1x256xbf16>
    %c5 = arith.constant 5 : index
    %c0_5 = arith.constant 0 : index
    %7 = vector.load %arg1[%c5, %c0_5] : memref<9x256xbf16, #tpu.memory_space<vmem>>, vector<1x256xbf16>
    %c6 = arith.constant 6 : index
    %c0_6 = arith.constant 0 : index
    %8 = vector.load %arg1[%c6, %c0_6] : memref<9x256xbf16, #tpu.memory_space<vmem>>, vector<1x256xbf16>
    %c7 = arith.constant 7 : index
    %c0_7 = arith.constant 0 : index
    %9 = vector.load %arg1[%c7, %c0_7] : memref<9x256xbf16, #tpu.memory_space<vmem>>, vector<1x256xbf16>
    %c8 = arith.constant 8 : index
    %c0_8 = arith.constant 0 : index
    %10 = vector.load %arg1[%c8, %c0_8] : memref<9x256xbf16, #tpu.memory_space<vmem>>, vector<1x256xbf16>
    %c0_9 = arith.constant 0 : index
    %c0_10 = arith.constant 0 : index
    %c0_11 = arith.constant 0 : index
    %11 = vector.load %arg3[%c0_9, %c0_10, %c0_11] : memref<1x4x256xbf16, #tpu.memory_space<vmem>>, vector<1x4x256xbf16>
    %12 = vector.shape_cast %11 : vector<1x4x256xbf16> to vector<4x256xbf16>
    %13 = arith.extf %12 : vector<4x256xbf16> to vector<4x256xf32>
    %c0_12 = arith.constant 0 : index
    %c0_13 = arith.constant 0 : index
    %c0_14 = arith.constant 0 : index
    %14 = vector.load %arg4[%c0_12, %c0_13, %c0_14] : memref<1x8x64xbf16, #tpu.memory_space<vmem>>, vector<1x8x64xbf16>
    %15 = vector.shape_cast %14 : vector<1x8x64xbf16> to vector<8x64xbf16>
    %c0_15 = arith.constant 0 : index
    %c0_16 = arith.constant 0 : index
    %16 = vector.load %arg2[%c0_15, %c0_16] : memref<64x256xbf16, #tpu.memory_space<vmem>>, vector<64x256xbf16>
    %cst = arith.constant dense<0.000000e+00> : vector<8x256xf32>
    %17 = tpu.matmul %15, %16, %cst {dimension_numbers = #tpu.dot_dimension_numbers<[1], [0], [0], [1], [0, 0, 1, 1], [], []>} : vector<8x64xbf16>, vector<64x256xbf16>, vector<8x256xf32> -> vector<8x256xf32>
    %c17_i32 = arith.constant 17 : i32
    %18 = tpu.dynamic_rotate %13 by %c17_i32 dim 1 : vector<4x256xf32>, i32 -> vector<4x256xf32>
    %19 = arith.truncf %18 : vector<4x256xf32> to vector<4x256xbf16>
    %20 = vector.broadcast %3 : vector<1x256xbf16> to vector<4x256xbf16>
    %21 = arith.mulf %19, %20 : vector<4x256xbf16>
    %c0_17 = arith.constant 0 : index
    %c0_18 = arith.constant 0 : index
    %22 = vector.load %arg12[%c0_17, %c0_18] : memref<144x256xbf16, #tpu.memory_space<vmem>>, vector<4x256xbf16>
    tpu.vector_store %arg12[%c0_17, %c0_18], %21 {strides = array<i32>} : memref<144x256xbf16, #tpu.memory_space<vmem>>, vector<4x256xbf16>,
    %c16_i32 = arith.constant 16 : i32
    %23 = tpu.dynamic_rotate %13 by %c16_i32 dim 1 : vector<4x256xf32>, i32 -> vector<4x256xf32>
    %24 = arith.truncf %23 : vector<4x256xf32> to vector<4x256xbf16>
    %25 = vector.broadcast %4 : vector<1x256xbf16> to vector<4x256xbf16>
    %26 = arith.mulf %24, %25 : vector<4x256xbf16>
    %c16 = arith.constant 16 : index
    %c0_19 = arith.constant 0 : index
    %27 = vector.load %arg12[%c16, %c0_19] : memref<144x256xbf16, #tpu.memory_space<vmem>>, vector<4x256xbf16>
    tpu.vector_store %arg12[%c16, %c0_19], %26 {strides = array<i32>} : memref<144x256xbf16, #tpu.memory_space<vmem>>, vector<4x256xbf16>,
    %c15_i32 = arith.constant 15 : i32
    %28 = tpu.dynamic_rotate %13 by %c15_i32 dim 1 : vector<4x256xf32>, i32 -> vector<4x256xf32>
    %29 = arith.truncf %28 : vector<4x256xf32> to vector<4x256xbf16>
    %30 = vector.broadcast %5 : vector<1x256xbf16> to vector<4x256xbf16>
    %31 = arith.mulf %29, %30 : vector<4x256xbf16>
    %c32 = arith.constant 32 : index
    %c0_20 = arith.constant 0 : index
    %32 = vector.load %arg12[%c32, %c0_20] : memref<144x256xbf16, #tpu.memory_space<vmem>>, vector<4x256xbf16>
    tpu.vector_store %arg12[%c32, %c0_20], %31 {strides = array<i32>} : memref<144x256xbf16, #tpu.memory_space<vmem>>, vector<4x256xbf16>,
    %c1_i32 = arith.constant 1 : i32
    %33 = tpu.dynamic_rotate %13 by %c1_i32 dim 1 : vector<4x256xf32>, i32 -> vector<4x256xf32>
    %34 = arith.truncf %33 : vector<4x256xf32> to vector<4x256xbf16>
    %35 = vector.broadcast %6 : vector<1x256xbf16> to vector<4x256xbf16>
    %36 = arith.mulf %34, %35 : vector<4x256xbf16>
    %c48 = arith.constant 48 : index
    %c0_21 = arith.constant 0 : index
    %37 = vector.load %arg12[%c48, %c0_21] : memref<144x256xbf16, #tpu.memory_space<vmem>>, vector<4x256xbf16>
    tpu.vector_store %arg12[%c48, %c0_21], %36 {strides = array<i32>} : memref<144x256xbf16, #tpu.memory_space<vmem>>, vector<4x256xbf16>,
    %38 = arith.truncf %13 : vector<4x256xf32> to vector<4x256xbf16>
    %c64 = arith.constant 64 : index
    %c0_22 = arith.constant 0 : index
    %39 = vector.load %arg12[%c64, %c0_22] : memref<144x256xbf16, #tpu.memory_space<vmem>>, vector<4x256xbf16>
    tpu.vector_store %arg12[%c64, %c0_22], %38 {strides = array<i32>} : memref<144x256xbf16, #tpu.memory_space<vmem>>, vector<4x256xbf16>,
    %c255_i32 = arith.constant 255 : i32
    %40 = tpu.dynamic_rotate %13 by %c255_i32 dim 1 : vector<4x256xf32>, i32 -> vector<4x256xf32>
    %41 = arith.truncf %40 : vector<4x256xf32> to vector<4x256xbf16>
    %42 = vector.broadcast %7 : vector<1x256xbf16> to vector<4x256xbf16>
    %43 = arith.mulf %41, %42 : vector<4x256xbf16>
    %c80 = arith.constant 80 : index
    %c0_23 = arith.constant 0 : index
    %44 = vector.load %arg12[%c80, %c0_23] : memref<144x256xbf16, #tpu.memory_space<vmem>>, vector<4x256xbf16>
    tpu.vector_store %arg12[%c80, %c0_23], %43 {strides = array<i32>} : memref<144x256xbf16, #tpu.memory_space<vmem>>, vector<4x256xbf16>,
    %c241_i32 = arith.constant 241 : i32
    %45 = tpu.dynamic_rotate %13 by %c241_i32 dim 1 : vector<4x256xf32>, i32 -> vector<4x256xf32>
    %46 = arith.truncf %45 : vector<4x256xf32> to vector<4x256xbf16>
    %47 = vector.broadcast %8 : vector<1x256xbf16> to vector<4x256xbf16>
    %48 = arith.mulf %46, %47 : vector<4x256xbf16>
    %c96 = arith.constant 96 : index
    %c0_24 = arith.constant 0 : index
    %49 = vector.load %arg12[%c96, %c0_24] : memref<144x256xbf16, #tpu.memory_space<vmem>>, vector<4x256xbf16>
    tpu.vector_store %arg12[%c96, %c0_24], %48 {strides = array<i32>} : memref<144x256xbf16, #tpu.memory_space<vmem>>, vector<4x256xbf16>,
    %c240_i32 = arith.constant 240 : i32
    %50 = tpu.dynamic_rotate %13 by %c240_i32 dim 1 : vector<4x256xf32>, i32 -> vector<4x256xf32>
    %51 = arith.truncf %50 : vector<4x256xf32> to vector<4x256xbf16>
    %52 = vector.broadcast %9 : vector<1x256xbf16> to vector<4x256xbf16>
    %53 = arith.mulf %51, %52 : vector<4x256xbf16>
    %c112 = arith.constant 112 : index
    %c0_25 = arith.constant 0 : index
    %54 = vector.load %arg12[%c112, %c0_25] : memref<144x256xbf16, #tpu.memory_space<vmem>>, vector<4x256xbf16>
    tpu.vector_store %arg12[%c112, %c0_25], %53 {strides = array<i32>} : memref<144x256xbf16, #tpu.memory_space<vmem>>, vector<4x256xbf16>,
    %c239_i32 = arith.constant 239 : i32
    %55 = tpu.dynamic_rotate %13 by %c239_i32 dim 1 : vector<4x256xf32>, i32 -> vector<4x256xf32>
    %56 = arith.truncf %55 : vector<4x256xf32> to vector<4x256xbf16>
    %57 = vector.broadcast %10 : vector<1x256xbf16> to vector<4x256xbf16>
    %58 = arith.mulf %56, %57 : vector<4x256xbf16>
    %c128 = arith.constant 128 : index
    %c0_26 = arith.constant 0 : index
    %59 = vector.load %arg12[%c128, %c0_26] : memref<144x256xbf16, #tpu.memory_space<vmem>>, vector<4x256xbf16>
    tpu.vector_store %arg12[%c128, %c0_26], %58 {strides = array<i32>} : memref<144x256xbf16, #tpu.memory_space<vmem>>, vector<4x256xbf16>,
    %c0_27 = arith.constant 0 : index
    %c0_28 = arith.constant 0 : index
    %60 = vector.load %arg5[%c0_27, %c0_28] : memref<8x144xbf16, #tpu.memory_space<vmem>>, vector<8x144xbf16>
    %c0_29 = arith.constant 0 : index
    %c0_30 = arith.constant 0 : index
    %61 = vector.load %arg12[%c0_29, %c0_30] : memref<144x256xbf16, #tpu.memory_space<vmem>>, vector<144x256xbf16>
    %cst_31 = arith.constant dense<0.000000e+00> : vector<8x256xf32>
    %62 = tpu.matmul %60, %61, %cst_31 {dimension_numbers = #tpu.dot_dimension_numbers<[1], [0], [0], [1], [0, 0, 1, 1], [], []>} : vector<8x144xbf16>, vector<144x256xbf16>, vector<8x256xf32> -> vector<8x256xf32>
    %cst_32 = arith.constant dense<0.000000e+00> : vector<8xf32>
    %63 = vector.multi_reduction <add>, %62, %cst_32 [1] : vector<8x256xf32> to vector<8xf32>
    %64 = vector.shape_cast %63 : vector<8xf32> to vector<8x1xf32>
    %cst_33 = arith.constant 3.906250e-03 : f32
    %65 = vector.broadcast %cst_33 : f32 to vector<8x1xf32>
    %66 = arith.mulf %64, %65 : vector<8x1xf32>
    %67 = arith.mulf %62, %62 : vector<8x256xf32>
    %cst_34 = arith.constant dense<0.000000e+00> : vector<8xf32>
    %68 = vector.multi_reduction <add>, %67, %cst_34 [1] : vector<8x256xf32> to vector<8xf32>
    %69 = vector.shape_cast %68 : vector<8xf32> to vector<8x1xf32>
    %cst_35 = arith.constant 3.906250e-03 : f32
    %70 = vector.broadcast %cst_35 : f32 to vector<8x1xf32>
    %71 = arith.mulf %69, %70 : vector<8x1xf32>
    %72 = arith.mulf %66, %66 : vector<8x1xf32>
    %73 = arith.subf %71, %72 : vector<8x1xf32>
    %cst_36 = arith.constant 0.000000e+00 : f32
    %74 = vector.broadcast %cst_36 : f32 to vector<8x1xf32>
    %75 = arith.maximumf %73, %74 : vector<8x1xf32>
    %76 = vector.broadcast %66 : vector<8x1xf32> to vector<8x256xf32>
    %77 = arith.subf %62, %76 : vector<8x256xf32>
    %cst_37 = arith.constant 9.99999974E-6 : f32
    %78 = vector.broadcast %cst_37 : f32 to vector<8x1xf32>
    %79 = arith.addf %75, %78 : vector<8x1xf32>
    %80 = math.rsqrt %79 : vector<8x1xf32>
    %81 = vector.broadcast %80 : vector<8x1xf32> to vector<8x256xf32>
    %82 = arith.mulf %77, %81 : vector<8x256xf32>
    %cst_38 = arith.constant 0.000000e+00 : f32
    %83 = vector.broadcast %cst_38 : f32 to vector<8x256xf32>
    %84 = arith.maximumf %82, %83 : vector<8x256xf32>
    %cst_39 = arith.constant dense<0.000000e+00> : vector<256xf32>
    %85 = vector.multi_reduction <add>, %84, %cst_39 [0] : vector<8x256xf32> to vector<256xf32>
    %86 = vector.shape_cast %85 : vector<256xf32> to vector<1x256xf32>
    %cst_40 = arith.constant 8.000000e+00 : f32
    %87 = vector.broadcast %cst_40 : f32 to vector<1x256xf32>
    %88 = arith.divf %86, %87 : vector<1x256xf32>
    %cst_41 = arith.constant dense<0xFF800000> : vector<256xf32>
    %89 = vector.multi_reduction <maximumf>, %84, %cst_41 [0] : vector<8x256xf32> to vector<256xf32>
    %90 = vector.shape_cast %89 : vector<256xf32> to vector<1x256xf32>
    %cst_42 = arith.constant dense<0.000000e+00> : vector<256xf32>
    %91 = vector.multi_reduction <add>, %17, %cst_42 [0] : vector<8x256xf32> to vector<256xf32>
    %92 = vector.shape_cast %91 : vector<256xf32> to vector<1x256xf32>
    %cst_43 = arith.constant 8.000000e+00 : f32
    %93 = vector.broadcast %cst_43 : f32 to vector<1x256xf32>
    %94 = arith.divf %92, %93 : vector<1x256xf32>
    %cst_44 = arith.constant dense<0xFF800000> : vector<256xf32>
    %95 = vector.multi_reduction <maximumf>, %17, %cst_44 [0] : vector<8x256xf32> to vector<256xf32>
    %96 = vector.shape_cast %95 : vector<256xf32> to vector<1x256xf32>
    %97 = tpu.concatenate %88, %90, %94, %96 in 0 : vector<1x256xf32>, vector<1x256xf32>, vector<1x256xf32>, vector<1x256xf32> -> vector<4x256xf32>
    %c17_i32_45 = arith.constant 17 : i32
    %98 = tpu.dynamic_rotate %97 by %c17_i32_45 dim 1 : vector<4x256xf32>, i32 -> vector<4x256xf32>
    %99 = arith.truncf %98 : vector<4x256xf32> to vector<4x256xbf16>
    %100 = vector.broadcast %3 : vector<1x256xbf16> to vector<4x256xbf16>
    %101 = arith.mulf %99, %100 : vector<4x256xbf16>
    %c0_46 = arith.constant 0 : index
    %c0_47 = arith.constant 0 : index
    %102 = vector.load %arg12[%c0_46, %c0_47] : memref<144x256xbf16, #tpu.memory_space<vmem>>, vector<4x256xbf16>
    tpu.vector_store %arg12[%c0_46, %c0_47], %101 {strides = array<i32>} : memref<144x256xbf16, #tpu.memory_space<vmem>>, vector<4x256xbf16>,
    %c16_i32_48 = arith.constant 16 : i32
    %103 = tpu.dynamic_rotate %97 by %c16_i32_48 dim 1 : vector<4x256xf32>, i32 -> vector<4x256xf32>
    %104 = arith.truncf %103 : vector<4x256xf32> to vector<4x256xbf16>
    %105 = vector.broadcast %4 : vector<1x256xbf16> to vector<4x256xbf16>
    %106 = arith.mulf %104, %105 : vector<4x256xbf16>
    %c16_49 = arith.constant 16 : index
    %c0_50 = arith.constant 0 : index
    %107 = vector.load %arg12[%c16_49, %c0_50] : memref<144x256xbf16, #tpu.memory_space<vmem>>, vector<4x256xbf16>
    tpu.vector_store %arg12[%c16_49, %c0_50], %106 {strides = array<i32>} : memref<144x256xbf16, #tpu.memory_space<vmem>>, vector<4x256xbf16>,
    %c15_i32_51 = arith.constant 15 : i32
    %108 = tpu.dynamic_rotate %97 by %c15_i32_51 dim 1 : vector<4x256xf32>, i32 -> vector<4x256xf32>
    %109 = arith.truncf %108 : vector<4x256xf32> to vector<4x256xbf16>
    %110 = vector.broadcast %5 : vector<1x256xbf16> to vector<4x256xbf16>
    %111 = arith.mulf %109, %110 : vector<4x256xbf16>
    %c32_52 = arith.constant 32 : index
    %c0_53 = arith.constant 0 : index
    %112 = vector.load %arg12[%c32_52, %c0_53] : memref<144x256xbf16, #tpu.memory_space<vmem>>, vector<4x256xbf16>
    tpu.vector_store %arg12[%c32_52, %c0_53], %111 {strides = array<i32>} : memref<144x256xbf16, #tpu.memory_space<vmem>>, vector<4x256xbf16>,
    %c1_i32_54 = arith.constant 1 : i32
    %113 = tpu.dynamic_rotate %97 by %c1_i32_54 dim 1 : vector<4x256xf32>, i32 -> vector<4x256xf32>
    %114 = arith.truncf %113 : vector<4x256xf32> to vector<4x256xbf16>
    %115 = vector.broadcast %6 : vector<1x256xbf16> to vector<4x256xbf16>
    %116 = arith.mulf %114, %115 : vector<4x256xbf16>
    %c48_55 = arith.constant 48 : index
    %c0_56 = arith.constant 0 : index
    %117 = vector.load %arg12[%c48_55, %c0_56] : memref<144x256xbf16, #tpu.memory_space<vmem>>, vector<4x256xbf16>
    tpu.vector_store %arg12[%c48_55, %c0_56], %116 {strides = array<i32>} : memref<144x256xbf16, #tpu.memory_space<vmem>>, vector<4x256xbf16>,
    %118 = arith.truncf %97 : vector<4x256xf32> to vector<4x256xbf16>
    %c64_57 = arith.constant 64 : index
    %c0_58 = arith.constant 0 : index
    %119 = vector.load %arg12[%c64_57, %c0_58] : memref<144x256xbf16, #tpu.memory_space<vmem>>, vector<4x256xbf16>
    tpu.vector_store %arg12[%c64_57, %c0_58], %118 {strides = array<i32>} : memref<144x256xbf16, #tpu.memory_space<vmem>>, vector<4x256xbf16>,
    %c255_i32_59 = arith.constant 255 : i32
    %120 = tpu.dynamic_rotate %97 by %c255_i32_59 dim 1 : vector<4x256xf32>, i32 -> vector<4x256xf32>
    %121 = arith.truncf %120 : vector<4x256xf32> to vector<4x256xbf16>
    %122 = vector.broadcast %7 : vector<1x256xbf16> to vector<4x256xbf16>
    %123 = arith.mulf %121, %122 : vector<4x256xbf16>
    %c80_60 = arith.constant 80 : index
    %c0_61 = arith.constant 0 : index
    %124 = vector.load %arg12[%c80_60, %c0_61] : memref<144x256xbf16, #tpu.memory_space<vmem>>, vector<4x256xbf16>
    tpu.vector_store %arg12[%c80_60, %c0_61], %123 {strides = array<i32>} : memref<144x256xbf16, #tpu.memory_space<vmem>>, vector<4x256xbf16>,
    %c241_i32_62 = arith.constant 241 : i32
    %125 = tpu.dynamic_rotate %97 by %c241_i32_62 dim 1 : vector<4x256xf32>, i32 -> vector<4x256xf32>
    %126 = arith.truncf %125 : vector<4x256xf32> to vector<4x256xbf16>
    %127 = vector.broadcast %8 : vector<1x256xbf16> to vector<4x256xbf16>
    %128 = arith.mulf %126, %127 : vector<4x256xbf16>
    %c96_63 = arith.constant 96 : index
    %c0_64 = arith.constant 0 : index
    %129 = vector.load %arg12[%c96_63, %c0_64] : memref<144x256xbf16, #tpu.memory_space<vmem>>, vector<4x256xbf16>
    tpu.vector_store %arg12[%c96_63, %c0_64], %128 {strides = array<i32>} : memref<144x256xbf16, #tpu.memory_space<vmem>>, vector<4x256xbf16>,
    %c240_i32_65 = arith.constant 240 : i32
    %130 = tpu.dynamic_rotate %97 by %c240_i32_65 dim 1 : vector<4x256xf32>, i32 -> vector<4x256xf32>
    %131 = arith.truncf %130 : vector<4x256xf32> to vector<4x256xbf16>
    %132 = vector.broadcast %9 : vector<1x256xbf16> to vector<4x256xbf16>
    %133 = arith.mulf %131, %132 : vector<4x256xbf16>
    %c112_66 = arith.constant 112 : index
    %c0_67 = arith.constant 0 : index
    %134 = vector.load %arg12[%c112_66, %c0_67] : memref<144x256xbf16, #tpu.memory_space<vmem>>, vector<4x256xbf16>
    tpu.vector_store %arg12[%c112_66, %c0_67], %133 {strides = array<i32>} : memref<144x256xbf16, #tpu.memory_space<vmem>>, vector<4x256xbf16>,
    %c239_i32_68 = arith.constant 239 : i32
    %135 = tpu.dynamic_rotate %97 by %c239_i32_68 dim 1 : vector<4x256xf32>, i32 -> vector<4x256xf32>
    %136 = arith.truncf %135 : vector<4x256xf32> to vector<4x256xbf16>
    %137 = vector.broadcast %10 : vector<1x256xbf16> to vector<4x256xbf16>
    %138 = arith.mulf %136, %137 : vector<4x256xbf16>
    %c128_69 = arith.constant 128 : index
    %c0_70 = arith.constant 0 : index
    %139 = vector.load %arg12[%c128_69, %c0_70] : memref<144x256xbf16, #tpu.memory_space<vmem>>, vector<4x256xbf16>
    tpu.vector_store %arg12[%c128_69, %c0_70], %138 {strides = array<i32>} : memref<144x256xbf16, #tpu.memory_space<vmem>>, vector<4x256xbf16>,
    %c0_71 = arith.constant 0 : index
    %c0_72 = arith.constant 0 : index
    %140 = vector.load %arg6[%c0_71, %c0_72] : memref<2x144xbf16, #tpu.memory_space<vmem>>, vector<2x144xbf16>
    %c0_73 = arith.constant 0 : index
    %c0_74 = arith.constant 0 : index
    %141 = vector.load %arg12[%c0_73, %c0_74] : memref<144x256xbf16, #tpu.memory_space<vmem>>, vector<144x256xbf16>
    %cst_75 = arith.constant dense<0.000000e+00> : vector<2x256xf32>
    %142 = tpu.matmul %140, %141, %cst_75 {dimension_numbers = #tpu.dot_dimension_numbers<[1], [0], [0], [1], [0, 0, 1, 1], [], []>} : vector<2x144xbf16>, vector<144x256xbf16>, vector<2x256xf32> -> vector<2x256xf32>
    %cst_76 = arith.constant dense<0.000000e+00> : vector<2xf32>
    %143 = vector.multi_reduction <add>, %142, %cst_76 [1] : vector<2x256xf32> to vector<2xf32>
    %144 = vector.shape_cast %143 : vector<2xf32> to vector<2x1xf32>
    %cst_77 = arith.constant 3.906250e-03 : f32
    %145 = vector.broadcast %cst_77 : f32 to vector<2x1xf32>
    %146 = arith.mulf %144, %145 : vector<2x1xf32>
    %147 = arith.mulf %142, %142 : vector<2x256xf32>
    %cst_78 = arith.constant dense<0.000000e+00> : vector<2xf32>
    %148 = vector.multi_reduction <add>, %147, %cst_78 [1] : vector<2x256xf32> to vector<2xf32>
    %149 = vector.shape_cast %148 : vector<2xf32> to vector<2x1xf32>
    %cst_79 = arith.constant 3.906250e-03 : f32
    %150 = vector.broadcast %cst_79 : f32 to vector<2x1xf32>
    %151 = arith.mulf %149, %150 : vector<2x1xf32>
    %152 = arith.mulf %146, %146 : vector<2x1xf32>
    %153 = arith.subf %151, %152 : vector<2x1xf32>
    %cst_80 = arith.constant 0.000000e+00 : f32
    %154 = vector.broadcast %cst_80 : f32 to vector<2x1xf32>
    %155 = arith.maximumf %153, %154 : vector<2x1xf32>
    %156 = vector.broadcast %146 : vector<2x1xf32> to vector<2x256xf32>
    %157 = arith.subf %142, %156 : vector<2x256xf32>
    %cst_81 = arith.constant 9.99999974E-6 : f32
    %158 = vector.broadcast %cst_81 : f32 to vector<2x1xf32>
    %159 = arith.addf %155, %158 : vector<2x1xf32>
    %160 = math.rsqrt %159 : vector<2x1xf32>
    %161 = vector.broadcast %160 : vector<2x1xf32> to vector<2x256xf32>
    %162 = arith.mulf %157, %161 : vector<2x256xf32>
    %cst_82 = arith.constant 0.000000e+00 : f32
    %163 = vector.broadcast %cst_82 : f32 to vector<2x256xf32>
    %164 = arith.maximumf %162, %163 : vector<2x256xf32>
    %c17_i32_83 = arith.constant 17 : i32
    %165 = tpu.dynamic_rotate %164 by %c17_i32_83 dim 1 : vector<2x256xf32>, i32 -> vector<2x256xf32>
    %166 = arith.truncf %165 : vector<2x256xf32> to vector<2x256xbf16>
    %167 = vector.broadcast %3 : vector<1x256xbf16> to vector<2x256xbf16>
    %168 = arith.mulf %166, %167 : vector<2x256xbf16>
    %c0_84 = arith.constant 0 : index
    %c0_85 = arith.constant 0 : index
    %169 = vector.load %arg12[%c0_84, %c0_85] : memref<144x256xbf16, #tpu.memory_space<vmem>>, vector<2x256xbf16>
    tpu.vector_store %arg12[%c0_84, %c0_85], %168 {strides = array<i32>} : memref<144x256xbf16, #tpu.memory_space<vmem>>, vector<2x256xbf16>,
    %c16_i32_86 = arith.constant 16 : i32
    %170 = tpu.dynamic_rotate %164 by %c16_i32_86 dim 1 : vector<2x256xf32>, i32 -> vector<2x256xf32>
    %171 = arith.truncf %170 : vector<2x256xf32> to vector<2x256xbf16>
    %172 = vector.broadcast %4 : vector<1x256xbf16> to vector<2x256xbf16>
    %173 = arith.mulf %171, %172 : vector<2x256xbf16>
    %c16_87 = arith.constant 16 : index
    %c0_88 = arith.constant 0 : index
    %174 = vector.load %arg12[%c16_87, %c0_88] : memref<144x256xbf16, #tpu.memory_space<vmem>>, vector<2x256xbf16>
    tpu.vector_store %arg12[%c16_87, %c0_88], %173 {strides = array<i32>} : memref<144x256xbf16, #tpu.memory_space<vmem>>, vector<2x256xbf16>,
    %c15_i32_89 = arith.constant 15 : i32
    %175 = tpu.dynamic_rotate %164 by %c15_i32_89 dim 1 : vector<2x256xf32>, i32 -> vector<2x256xf32>
    %176 = arith.truncf %175 : vector<2x256xf32> to vector<2x256xbf16>
    %177 = vector.broadcast %5 : vector<1x256xbf16> to vector<2x256xbf16>
    %178 = arith.mulf %176, %177 : vector<2x256xbf16>
    %c32_90 = arith.constant 32 : index
    %c0_91 = arith.constant 0 : index
    %179 = vector.load %arg12[%c32_90, %c0_91] : memref<144x256xbf16, #tpu.memory_space<vmem>>, vector<2x256xbf16>
    tpu.vector_store %arg12[%c32_90, %c0_91], %178 {strides = array<i32>} : memref<144x256xbf16, #tpu.memory_space<vmem>>, vector<2x256xbf16>,
    %c1_i32_92 = arith.constant 1 : i32
    %180 = tpu.dynamic_rotate %164 by %c1_i32_92 dim 1 : vector<2x256xf32>, i32 -> vector<2x256xf32>
    %181 = arith.truncf %180 : vector<2x256xf32> to vector<2x256xbf16>
    %182 = vector.broadcast %6 : vector<1x256xbf16> to vector<2x256xbf16>
    %183 = arith.mulf %181, %182 : vector<2x256xbf16>
    %c48_93 = arith.constant 48 : index
    %c0_94 = arith.constant 0 : index
    %184 = vector.load %arg12[%c48_93, %c0_94] : memref<144x256xbf16, #tpu.memory_space<vmem>>, vector<2x256xbf16>
    tpu.vector_store %arg12[%c48_93, %c0_94], %183 {strides = array<i32>} : memref<144x256xbf16, #tpu.memory_space<vmem>>, vector<2x256xbf16>,
    %185 = arith.truncf %164 : vector<2x256xf32> to vector<2x256xbf16>
    %c64_95 = arith.constant 64 : index
    %c0_96 = arith.constant 0 : index
    %186 = vector.load %arg12[%c64_95, %c0_96] : memref<144x256xbf16, #tpu.memory_space<vmem>>, vector<2x256xbf16>
    tpu.vector_store %arg12[%c64_95, %c0_96], %185 {strides = array<i32>} : memref<144x256xbf16, #tpu.memory_space<vmem>>, vector<2x256xbf16>,
    %c255_i32_97 = arith.constant 255 : i32
    %187 = tpu.dynamic_rotate %164 by %c255_i32_97 dim 1 : vector<2x256xf32>, i32 -> vector<2x256xf32>
    %188 = arith.truncf %187 : vector<2x256xf32> to vector<2x256xbf16>
    %189 = vector.broadcast %7 : vector<1x256xbf16> to vector<2x256xbf16>
    %190 = arith.mulf %188, %189 : vector<2x256xbf16>
    %c80_98 = arith.constant 80 : index
    %c0_99 = arith.constant 0 : index
    %191 = vector.load %arg12[%c80_98, %c0_99] : memref<144x256xbf16, #tpu.memory_space<vmem>>, vector<2x256xbf16>
    tpu.vector_store %arg12[%c80_98, %c0_99], %190 {strides = array<i32>} : memref<144x256xbf16, #tpu.memory_space<vmem>>, vector<2x256xbf16>,
    %c241_i32_100 = arith.constant 241 : i32
    %192 = tpu.dynamic_rotate %164 by %c241_i32_100 dim 1 : vector<2x256xf32>, i32 -> vector<2x256xf32>
    %193 = arith.truncf %192 : vector<2x256xf32> to vector<2x256xbf16>
    %194 = vector.broadcast %8 : vector<1x256xbf16> to vector<2x256xbf16>
    %195 = arith.mulf %193, %194 : vector<2x256xbf16>
    %c96_101 = arith.constant 96 : index
    %c0_102 = arith.constant 0 : index
    %196 = vector.load %arg12[%c96_101, %c0_102] : memref<144x256xbf16, #tpu.memory_space<vmem>>, vector<2x256xbf16>
    tpu.vector_store %arg12[%c96_101, %c0_102], %195 {strides = array<i32>} : memref<144x256xbf16, #tpu.memory_space<vmem>>, vector<2x256xbf16>,
    %c240_i32_103 = arith.constant 240 : i32
    %197 = tpu.dynamic_rotate %164 by %c240_i32_103 dim 1 : vector<2x256xf32>, i32 -> vector<2x256xf32>
    %198 = arith.truncf %197 : vector<2x256xf32> to vector<2x256xbf16>
    %199 = vector.broadcast %9 : vector<1x256xbf16> to vector<2x256xbf16>
    %200 = arith.mulf %198, %199 : vector<2x256xbf16>
    %c112_104 = arith.constant 112 : index
    %c0_105 = arith.constant 0 : index
    %201 = vector.load %arg12[%c112_104, %c0_105] : memref<144x256xbf16, #tpu.memory_space<vmem>>, vector<2x256xbf16>
    tpu.vector_store %arg12[%c112_104, %c0_105], %200 {strides = array<i32>} : memref<144x256xbf16, #tpu.memory_space<vmem>>, vector<2x256xbf16>,
    %c239_i32_106 = arith.constant 239 : i32
    %202 = tpu.dynamic_rotate %164 by %c239_i32_106 dim 1 : vector<2x256xf32>, i32 -> vector<2x256xf32>
    %203 = arith.truncf %202 : vector<2x256xf32> to vector<2x256xbf16>
    %204 = vector.broadcast %10 : vector<1x256xbf16> to vector<2x256xbf16>
    %205 = arith.mulf %203, %204 : vector<2x256xbf16>
    %c128_107 = arith.constant 128 : index
    %c0_108 = arith.constant 0 : index
    %206 = vector.load %arg12[%c128_107, %c0_108] : memref<144x256xbf16, #tpu.memory_space<vmem>>, vector<2x256xbf16>
    tpu.vector_store %arg12[%c128_107, %c0_108], %205 {strides = array<i32>} : memref<144x256xbf16, #tpu.memory_space<vmem>>, vector<2x256xbf16>,
    %c0_109 = arith.constant 0 : index
    %c0_110 = arith.constant 0 : index
    %207 = vector.load %arg7[%c0_109, %c0_110] : memref<1x144xbf16, #tpu.memory_space<vmem>>, vector<1x144xbf16>
    %c0_111 = arith.constant 0 : index
    %c0_112 = arith.constant 0 : index
    %208 = vector.load %arg12[%c0_111, %c0_112] : memref<144x256xbf16, #tpu.memory_space<vmem>>, vector<144x256xbf16>
    %cst_113 = arith.constant dense<0.000000e+00> : vector<1x256xf32>
    %209 = tpu.matmul %207, %208, %cst_113 {dimension_numbers = #tpu.dot_dimension_numbers<[1], [0], [0], [1], [0, 0, 1, 1], [], []>} : vector<1x144xbf16>, vector<144x256xbf16>, vector<1x256xf32> -> vector<1x256xf32>
    %cst_114 = arith.constant dense<0.000000e+00> : vector<1xf32>
    %210 = vector.multi_reduction <add>, %209, %cst_114 [1] : vector<1x256xf32> to vector<1xf32>
    %211 = vector.shape_cast %210 : vector<1xf32> to vector<1x1xf32>
    %cst_115 = arith.constant 3.906250e-03 : f32
    %212 = vector.broadcast %cst_115 : f32 to vector<1x1xf32>
    %213 = arith.mulf %211, %212 : vector<1x1xf32>
    %214 = arith.mulf %209, %209 : vector<1x256xf32>
    %cst_116 = arith.constant dense<0.000000e+00> : vector<1xf32>
    %215 = vector.multi_reduction <add>, %214, %cst_116 [1] : vector<1x256xf32> to vector<1xf32>
    %216 = vector.shape_cast %215 : vector<1xf32> to vector<1x1xf32>
    %cst_117 = arith.constant 3.906250e-03 : f32
    %217 = vector.broadcast %cst_117 : f32 to vector<1x1xf32>
    %218 = arith.mulf %216, %217 : vector<1x1xf32>
    %219 = arith.mulf %213, %213 : vector<1x1xf32>
    %220 = arith.subf %218, %219 : vector<1x1xf32>
    %cst_118 = arith.constant 0.000000e+00 : f32
    %221 = vector.broadcast %cst_118 : f32 to vector<1x1xf32>
    %222 = arith.maximumf %220, %221 : vector<1x1xf32>
    %223 = vector.broadcast %213 : vector<1x1xf32> to vector<1x256xf32>
    %224 = arith.subf %209, %223 : vector<1x256xf32>
    %cst_119 = arith.constant 9.99999974E-6 : f32
    %225 = vector.broadcast %cst_119 : f32 to vector<1x1xf32>
    %226 = arith.addf %222, %225 : vector<1x1xf32>
    %227 = math.rsqrt %226 : vector<1x1xf32>
    %228 = vector.broadcast %227 : vector<1x1xf32> to vector<1x256xf32>
    %229 = arith.mulf %224, %228 : vector<1x256xf32>
    %cst_120 = arith.constant 0.000000e+00 : f32
    %230 = vector.broadcast %cst_120 : f32 to vector<1x256xf32>
    %231 = arith.subf %230, %229 : vector<1x256xf32>
    %232 = math.exp %231 : vector<1x256xf32>
    %cst_121 = arith.constant 1.000000e+00 : f32
    %233 = vector.broadcast %cst_121 : f32 to vector<1x256xf32>
    %234 = arith.addf %233, %232 : vector<1x256xf32>
    %235 = tpu.reciprocal %234 {approx = true} : vector<1x256xf32> -> vector<1x256xf32>
    %236 = vector.broadcast %235 : vector<1x256xf32> to vector<8x256xf32>
    %237 = arith.mulf %84, %236 : vector<8x256xf32>
    %cst_122 = arith.constant 1.000000e+00 : f32
    %238 = vector.broadcast %cst_122 : f32 to vector<1x256xf32>
    %239 = arith.subf %238, %235 : vector<1x256xf32>
    %240 = vector.broadcast %239 : vector<1x256xf32> to vector<8x256xf32>
    %241 = arith.mulf %17, %240 : vector<8x256xf32>
    %242 = arith.addf %237, %241 : vector<8x256xf32>
    %c17_i32_123 = arith.constant 17 : i32
    %243 = tpu.dynamic_rotate %242 by %c17_i32_123 dim 1 : vector<8x256xf32>, i32 -> vector<8x256xf32>
    %244 = arith.truncf %243 : vector<8x256xf32> to vector<8x256xbf16>
    %245 = vector.broadcast %3 : vector<1x256xbf16> to vector<8x256xbf16>
    %246 = arith.mulf %244, %245 : vector<8x256xbf16>
    %c0_124 = arith.constant 0 : index
    %c0_125 = arith.constant 0 : index
    %247 = vector.load %arg12[%c0_124, %c0_125] : memref<144x256xbf16, #tpu.memory_space<vmem>>, vector<8x256xbf16>
    tpu.vector_store %arg12[%c0_124, %c0_125], %246 {strides = array<i32>} : memref<144x256xbf16, #tpu.memory_space<vmem>>, vector<8x256xbf16>,
    %c16_i32_126 = arith.constant 16 : i32
    %248 = tpu.dynamic_rotate %242 by %c16_i32_126 dim 1 : vector<8x256xf32>, i32 -> vector<8x256xf32>
    %249 = arith.truncf %248 : vector<8x256xf32> to vector<8x256xbf16>
    %250 = vector.broadcast %4 : vector<1x256xbf16> to vector<8x256xbf16>
    %251 = arith.mulf %249, %250 : vector<8x256xbf16>
    %c16_127 = arith.constant 16 : index
    %c0_128 = arith.constant 0 : index
    %252 = vector.load %arg12[%c16_127, %c0_128] : memref<144x256xbf16, #tpu.memory_space<vmem>>, vector<8x256xbf16>
    tpu.vector_store %arg12[%c16_127, %c0_128], %251 {strides = array<i32>} : memref<144x256xbf16, #tpu.memory_space<vmem>>, vector<8x256xbf16>,
    %c15_i32_129 = arith.constant 15 : i32
    %253 = tpu.dynamic_rotate %242 by %c15_i32_129 dim 1 : vector<8x256xf32>, i32 -> vector<8x256xf32>
    %254 = arith.truncf %253 : vector<8x256xf32> to vector<8x256xbf16>
    %255 = vector.broadcast %5 : vector<1x256xbf16> to vector<8x256xbf16>
    %256 = arith.mulf %254, %255 : vector<8x256xbf16>
    %c32_130 = arith.constant 32 : index
    %c0_131 = arith.constant 0 : index
    %257 = vector.load %arg12[%c32_130, %c0_131] : memref<144x256xbf16, #tpu.memory_space<vmem>>, vector<8x256xbf16>
    tpu.vector_store %arg12[%c32_130, %c0_131], %256 {strides = array<i32>} : memref<144x256xbf16, #tpu.memory_space<vmem>>, vector<8x256xbf16>,
    %c1_i32_132 = arith.constant 1 : i32
    %258 = tpu.dynamic_rotate %242 by %c1_i32_132 dim 1 : vector<8x256xf32>, i32 -> vector<8x256xf32>
    %259 = arith.truncf %258 : vector<8x256xf32> to vector<8x256xbf16>
    %260 = vector.broadcast %6 : vector<1x256xbf16> to vector<8x256xbf16>
    %261 = arith.mulf %259, %260 : vector<8x256xbf16>
    %c48_133 = arith.constant 48 : index
    %c0_134 = arith.constant 0 : index
    %262 = vector.load %arg12[%c48_133, %c0_134] : memref<144x256xbf16, #tpu.memory_space<vmem>>, vector<8x256xbf16>
    tpu.vector_store %arg12[%c48_133, %c0_134], %261 {strides = array<i32>} : memref<144x256xbf16, #tpu.memory_space<vmem>>, vector<8x256xbf16>,
    %263 = arith.truncf %242 : vector<8x256xf32> to vector<8x256xbf16>
    %c64_135 = arith.constant 64 : index
    %c0_136 = arith.constant 0 : index
    %264 = vector.load %arg12[%c64_135, %c0_136] : memref<144x256xbf16, #tpu.memory_space<vmem>>, vector<8x256xbf16>
    tpu.vector_store %arg12[%c64_135, %c0_136], %263 {strides = array<i32>} : memref<144x256xbf16, #tpu.memory_space<vmem>>, vector<8x256xbf16>,
    %c255_i32_137 = arith.constant 255 : i32
    %265 = tpu.dynamic_rotate %242 by %c255_i32_137 dim 1 : vector<8x256xf32>, i32 -> vector<8x256xf32>
    %266 = arith.truncf %265 : vector<8x256xf32> to vector<8x256xbf16>
    %267 = vector.broadcast %7 : vector<1x256xbf16> to vector<8x256xbf16>
    %268 = arith.mulf %266, %267 : vector<8x256xbf16>
    %c80_138 = arith.constant 80 : index
    %c0_139 = arith.constant 0 : index
    %269 = vector.load %arg12[%c80_138, %c0_139] : memref<144x256xbf16, #tpu.memory_space<vmem>>, vector<8x256xbf16>
    tpu.vector_store %arg12[%c80_138, %c0_139], %268 {strides = array<i32>} : memref<144x256xbf16, #tpu.memory_space<vmem>>, vector<8x256xbf16>,
    %c241_i32_140 = arith.constant 241 : i32
    %270 = tpu.dynamic_rotate %242 by %c241_i32_140 dim 1 : vector<8x256xf32>, i32 -> vector<8x256xf32>
    %271 = arith.truncf %270 : vector<8x256xf32> to vector<8x256xbf16>
    %272 = vector.broadcast %8 : vector<1x256xbf16> to vector<8x256xbf16>
    %273 = arith.mulf %271, %272 : vector<8x256xbf16>
    %c96_141 = arith.constant 96 : index
    %c0_142 = arith.constant 0 : index
    %274 = vector.load %arg12[%c96_141, %c0_142] : memref<144x256xbf16, #tpu.memory_space<vmem>>, vector<8x256xbf16>
    tpu.vector_store %arg12[%c96_141, %c0_142], %273 {strides = array<i32>} : memref<144x256xbf16, #tpu.memory_space<vmem>>, vector<8x256xbf16>,
    %c240_i32_143 = arith.constant 240 : i32
    %275 = tpu.dynamic_rotate %242 by %c240_i32_143 dim 1 : vector<8x256xf32>, i32 -> vector<8x256xf32>
    %276 = arith.truncf %275 : vector<8x256xf32> to vector<8x256xbf16>
    %277 = vector.broadcast %9 : vector<1x256xbf16> to vector<8x256xbf16>
    %278 = arith.mulf %276, %277 : vector<8x256xbf16>
    %c112_144 = arith.constant 112 : index
    %c0_145 = arith.constant 0 : index
    %279 = vector.load %arg12[%c112_144, %c0_145] : memref<144x256xbf16, #tpu.memory_space<vmem>>, vector<8x256xbf16>
    tpu.vector_store %arg12[%c112_144, %c0_145], %278 {strides = array<i32>} : memref<144x256xbf16, #tpu.memory_space<vmem>>, vector<8x256xbf16>,
    %c239_i32_146 = arith.constant 239 : i32
    %280 = tpu.dynamic_rotate %242 by %c239_i32_146 dim 1 : vector<8x256xf32>, i32 -> vector<8x256xf32>
    %281 = arith.truncf %280 : vector<8x256xf32> to vector<8x256xbf16>
    %282 = vector.broadcast %10 : vector<1x256xbf16> to vector<8x256xbf16>
    %283 = arith.mulf %281, %282 : vector<8x256xbf16>
    %c128_147 = arith.constant 128 : index
    %c0_148 = arith.constant 0 : index
    %284 = vector.load %arg12[%c128_147, %c0_148] : memref<144x256xbf16, #tpu.memory_space<vmem>>, vector<8x256xbf16>
    tpu.vector_store %arg12[%c128_147, %c0_148], %283 {strides = array<i32>} : memref<144x256xbf16, #tpu.memory_space<vmem>>, vector<8x256xbf16>,
    %c0_149 = arith.constant 0 : index
    %c0_150 = arith.constant 0 : index
    %285 = vector.load %arg8[%c0_149, %c0_150] : memref<8x144xbf16, #tpu.memory_space<vmem>>, vector<8x144xbf16>
    %c0_151 = arith.constant 0 : index
    %c0_152 = arith.constant 0 : index
    %286 = vector.load %arg12[%c0_151, %c0_152] : memref<144x256xbf16, #tpu.memory_space<vmem>>, vector<144x256xbf16>
    %cst_153 = arith.constant dense<0.000000e+00> : vector<8x256xf32>
    %287 = tpu.matmul %285, %286, %cst_153 {dimension_numbers = #tpu.dot_dimension_numbers<[1], [0], [0], [1], [0, 0, 1, 1], [], []>} : vector<8x144xbf16>, vector<144x256xbf16>, vector<8x256xf32> -> vector<8x256xf32>
    %cst_154 = arith.constant dense<0.000000e+00> : vector<8xf32>
    %288 = vector.multi_reduction <add>, %287, %cst_154 [1] : vector<8x256xf32> to vector<8xf32>
    %289 = vector.shape_cast %288 : vector<8xf32> to vector<8x1xf32>
    %cst_155 = arith.constant 3.906250e-03 : f32
    %290 = vector.broadcast %cst_155 : f32 to vector<8x1xf32>
    %291 = arith.mulf %289, %290 : vector<8x1xf32>
    %292 = arith.mulf %287, %287 : vector<8x256xf32>
    %cst_156 = arith.constant dense<0.000000e+00> : vector<8xf32>
    %293 = vector.multi_reduction <add>, %292, %cst_156 [1] : vector<8x256xf32> to vector<8xf32>
    %294 = vector.shape_cast %293 : vector<8xf32> to vector<8x1xf32>
    %cst_157 = arith.constant 3.906250e-03 : f32
    %295 = vector.broadcast %cst_157 : f32 to vector<8x1xf32>
    %296 = arith.mulf %294, %295 : vector<8x1xf32>
    %297 = arith.mulf %291, %291 : vector<8x1xf32>
    %298 = arith.subf %296, %297 : vector<8x1xf32>
    %cst_158 = arith.constant 0.000000e+00 : f32
    %299 = vector.broadcast %cst_158 : f32 to vector<8x1xf32>
    %300 = arith.maximumf %298, %299 : vector<8x1xf32>
    %301 = vector.broadcast %291 : vector<8x1xf32> to vector<8x256xf32>
    %302 = arith.subf %287, %301 : vector<8x256xf32>
    %cst_159 = arith.constant 9.99999974E-6 : f32
    %303 = vector.broadcast %cst_159 : f32 to vector<8x1xf32>
    %304 = arith.addf %300, %303 : vector<8x1xf32>
    %305 = math.rsqrt %304 : vector<8x1xf32>
    %306 = vector.broadcast %305 : vector<8x1xf32> to vector<8x256xf32>
    %307 = arith.mulf %302, %306 : vector<8x256xf32>
    %cst_160 = arith.constant 0.000000e+00 : f32
    %308 = vector.broadcast %cst_160 : f32 to vector<8x256xf32>
    %309 = arith.maximumf %307, %308 : vector<8x256xf32>
    %c17_i32_161 = arith.constant 17 : i32
    %310 = tpu.dynamic_rotate %309 by %c17_i32_161 dim 1 : vector<8x256xf32>, i32 -> vector<8x256xf32>
    %311 = arith.truncf %310 : vector<8x256xf32> to vector<8x256xbf16>
    %312 = vector.broadcast %3 : vector<1x256xbf16> to vector<8x256xbf16>
    %313 = arith.mulf %311, %312 : vector<8x256xbf16>
    %c0_162 = arith.constant 0 : index
    %c0_163 = arith.constant 0 : index
    %314 = vector.load %arg12[%c0_162, %c0_163] : memref<144x256xbf16, #tpu.memory_space<vmem>>, vector<8x256xbf16>
    tpu.vector_store %arg12[%c0_162, %c0_163], %313 {strides = array<i32>} : memref<144x256xbf16, #tpu.memory_space<vmem>>, vector<8x256xbf16>,
    %c16_i32_164 = arith.constant 16 : i32
    %315 = tpu.dynamic_rotate %309 by %c16_i32_164 dim 1 : vector<8x256xf32>, i32 -> vector<8x256xf32>
    %316 = arith.truncf %315 : vector<8x256xf32> to vector<8x256xbf16>
    %317 = vector.broadcast %4 : vector<1x256xbf16> to vector<8x256xbf16>
    %318 = arith.mulf %316, %317 : vector<8x256xbf16>
    %c16_165 = arith.constant 16 : index
    %c0_166 = arith.constant 0 : index
    %319 = vector.load %arg12[%c16_165, %c0_166] : memref<144x256xbf16, #tpu.memory_space<vmem>>, vector<8x256xbf16>
    tpu.vector_store %arg12[%c16_165, %c0_166], %318 {strides = array<i32>} : memref<144x256xbf16, #tpu.memory_space<vmem>>, vector<8x256xbf16>,
    %c15_i32_167 = arith.constant 15 : i32
    %320 = tpu.dynamic_rotate %309 by %c15_i32_167 dim 1 : vector<8x256xf32>, i32 -> vector<8x256xf32>
    %321 = arith.truncf %320 : vector<8x256xf32> to vector<8x256xbf16>
    %322 = vector.broadcast %5 : vector<1x256xbf16> to vector<8x256xbf16>
    %323 = arith.mulf %321, %322 : vector<8x256xbf16>
    %c32_168 = arith.constant 32 : index
    %c0_169 = arith.constant 0 : index
    %324 = vector.load %arg12[%c32_168, %c0_169] : memref<144x256xbf16, #tpu.memory_space<vmem>>, vector<8x256xbf16>
    tpu.vector_store %arg12[%c32_168, %c0_169], %323 {strides = array<i32>} : memref<144x256xbf16, #tpu.memory_space<vmem>>, vector<8x256xbf16>,
    %c1_i32_170 = arith.constant 1 : i32
    %325 = tpu.dynamic_rotate %309 by %c1_i32_170 dim 1 : vector<8x256xf32>, i32 -> vector<8x256xf32>
    %326 = arith.truncf %325 : vector<8x256xf32> to vector<8x256xbf16>
    %327 = vector.broadcast %6 : vector<1x256xbf16> to vector<8x256xbf16>
    %328 = arith.mulf %326, %327 : vector<8x256xbf16>
    %c48_171 = arith.constant 48 : index
    %c0_172 = arith.constant 0 : index
    %329 = vector.load %arg12[%c48_171, %c0_172] : memref<144x256xbf16, #tpu.memory_space<vmem>>, vector<8x256xbf16>
    tpu.vector_store %arg12[%c48_171, %c0_172], %328 {strides = array<i32>} : memref<144x256xbf16, #tpu.memory_space<vmem>>, vector<8x256xbf16>,
    %330 = arith.truncf %309 : vector<8x256xf32> to vector<8x256xbf16>
    %c64_173 = arith.constant 64 : index
    %c0_174 = arith.constant 0 : index
    %331 = vector.load %arg12[%c64_173, %c0_174] : memref<144x256xbf16, #tpu.memory_space<vmem>>, vector<8x256xbf16>
    tpu.vector_store %arg12[%c64_173, %c0_174], %330 {strides = array<i32>} : memref<144x256xbf16, #tpu.memory_space<vmem>>, vector<8x256xbf16>,
    %c255_i32_175 = arith.constant 255 : i32
    %332 = tpu.dynamic_rotate %309 by %c255_i32_175 dim 1 : vector<8x256xf32>, i32 -> vector<8x256xf32>
    %333 = arith.truncf %332 : vector<8x256xf32> to vector<8x256xbf16>
    %334 = vector.broadcast %7 : vector<1x256xbf16> to vector<8x256xbf16>
    %335 = arith.mulf %333, %334 : vector<8x256xbf16>
    %c80_176 = arith.constant 80 : index
    %c0_177 = arith.constant 0 : index
    %336 = vector.load %arg12[%c80_176, %c0_177] : memref<144x256xbf16, #tpu.memory_space<vmem>>, vector<8x256xbf16>
    tpu.vector_store %arg12[%c80_176, %c0_177], %335 {strides = array<i32>} : memref<144x256xbf16, #tpu.memory_space<vmem>>, vector<8x256xbf16>,
    %c241_i32_178 = arith.constant 241 : i32
    %337 = tpu.dynamic_rotate %309 by %c241_i32_178 dim 1 : vector<8x256xf32>, i32 -> vector<8x256xf32>
    %338 = arith.truncf %337 : vector<8x256xf32> to vector<8x256xbf16>
    %339 = vector.broadcast %8 : vector<1x256xbf16> to vector<8x256xbf16>
    %340 = arith.mulf %338, %339 : vector<8x256xbf16>
    %c96_179 = arith.constant 96 : index
    %c0_180 = arith.constant 0 : index
    %341 = vector.load %arg12[%c96_179, %c0_180] : memref<144x256xbf16, #tpu.memory_space<vmem>>, vector<8x256xbf16>
    tpu.vector_store %arg12[%c96_179, %c0_180], %340 {strides = array<i32>} : memref<144x256xbf16, #tpu.memory_space<vmem>>, vector<8x256xbf16>,
    %c240_i32_181 = arith.constant 240 : i32
    %342 = tpu.dynamic_rotate %309 by %c240_i32_181 dim 1 : vector<8x256xf32>, i32 -> vector<8x256xf32>
    %343 = arith.truncf %342 : vector<8x256xf32> to vector<8x256xbf16>
    %344 = vector.broadcast %9 : vector<1x256xbf16> to vector<8x256xbf16>
    %345 = arith.mulf %343, %344 : vector<8x256xbf16>
    %c112_182 = arith.constant 112 : index
    %c0_183 = arith.constant 0 : index
    %346 = vector.load %arg12[%c112_182, %c0_183] : memref<144x256xbf16, #tpu.memory_space<vmem>>, vector<8x256xbf16>
    tpu.vector_store %arg12[%c112_182, %c0_183], %345 {strides = array<i32>} : memref<144x256xbf16, #tpu.memory_space<vmem>>, vector<8x256xbf16>,
    %c239_i32_184 = arith.constant 239 : i32
    %347 = tpu.dynamic_rotate %309 by %c239_i32_184 dim 1 : vector<8x256xf32>, i32 -> vector<8x256xf32>
    %348 = arith.truncf %347 : vector<8x256xf32> to vector<8x256xbf16>
    %349 = vector.broadcast %10 : vector<1x256xbf16> to vector<8x256xbf16>
    %350 = arith.mulf %348, %349 : vector<8x256xbf16>
    %c128_185 = arith.constant 128 : index
    %c0_186 = arith.constant 0 : index
    %351 = vector.load %arg12[%c128_185, %c0_186] : memref<144x256xbf16, #tpu.memory_space<vmem>>, vector<8x256xbf16>
    tpu.vector_store %arg12[%c128_185, %c0_186], %350 {strides = array<i32>} : memref<144x256xbf16, #tpu.memory_space<vmem>>, vector<8x256xbf16>,
    %c0_187 = arith.constant 0 : index
    %c0_188 = arith.constant 0 : index
    %352 = vector.load %arg9[%c0_187, %c0_188] : memref<8x144xbf16, #tpu.memory_space<vmem>>, vector<8x144xbf16>
    %c0_189 = arith.constant 0 : index
    %c0_190 = arith.constant 0 : index
    %353 = vector.load %arg12[%c0_189, %c0_190] : memref<144x256xbf16, #tpu.memory_space<vmem>>, vector<144x256xbf16>
    %cst_191 = arith.constant dense<0.000000e+00> : vector<8x256xf32>
    %354 = tpu.matmul %352, %353, %cst_191 {dimension_numbers = #tpu.dot_dimension_numbers<[1], [0], [0], [1], [0, 0, 1, 1], [], []>} : vector<8x144xbf16>, vector<144x256xbf16>, vector<8x256xf32> -> vector<8x256xf32>
    %cst_192 = arith.constant dense<0.000000e+00> : vector<8xf32>
    %355 = vector.multi_reduction <add>, %354, %cst_192 [1] : vector<8x256xf32> to vector<8xf32>
    %356 = vector.shape_cast %355 : vector<8xf32> to vector<8x1xf32>
    %cst_193 = arith.constant 3.906250e-03 : f32
    %357 = vector.broadcast %cst_193 : f32 to vector<8x1xf32>
    %358 = arith.mulf %356, %357 : vector<8x1xf32>
    %359 = arith.mulf %354, %354 : vector<8x256xf32>
    %cst_194 = arith.constant dense<0.000000e+00> : vector<8xf32>
    %360 = vector.multi_reduction <add>, %359, %cst_194 [1] : vector<8x256xf32> to vector<8xf32>
    %361 = vector.shape_cast %360 : vector<8xf32> to vector<8x1xf32>
    %cst_195 = arith.constant 3.906250e-03 : f32
    %362 = vector.broadcast %cst_195 : f32 to vector<8x1xf32>
    %363 = arith.mulf %361, %362 : vector<8x1xf32>
    %364 = arith.mulf %358, %358 : vector<8x1xf32>
    %365 = arith.subf %363, %364 : vector<8x1xf32>
    %cst_196 = arith.constant 0.000000e+00 : f32
    %366 = vector.broadcast %cst_196 : f32 to vector<8x1xf32>
    %367 = arith.maximumf %365, %366 : vector<8x1xf32>
    %368 = vector.broadcast %358 : vector<8x1xf32> to vector<8x256xf32>
    %369 = arith.subf %354, %368 : vector<8x256xf32>
    %cst_197 = arith.constant 9.99999974E-6 : f32
    %370 = vector.broadcast %cst_197 : f32 to vector<8x1xf32>
    %371 = arith.addf %367, %370 : vector<8x1xf32>
    %372 = math.rsqrt %371 : vector<8x1xf32>
    %373 = vector.broadcast %372 : vector<8x1xf32> to vector<8x256xf32>
    %374 = arith.mulf %369, %373 : vector<8x256xf32>
    %cst_198 = arith.constant 0.000000e+00 : f32
    %375 = vector.broadcast %cst_198 : f32 to vector<8x256xf32>
    %376 = arith.maximumf %374, %375 : vector<8x256xf32>
    %c17_i32_199 = arith.constant 17 : i32
    %377 = tpu.dynamic_rotate %376 by %c17_i32_199 dim 1 : vector<8x256xf32>, i32 -> vector<8x256xf32>
    %378 = arith.truncf %377 : vector<8x256xf32> to vector<8x256xbf16>
    %379 = vector.broadcast %3 : vector<1x256xbf16> to vector<8x256xbf16>
    %380 = arith.mulf %378, %379 : vector<8x256xbf16>
    %c0_200 = arith.constant 0 : index
    %c0_201 = arith.constant 0 : index
    %381 = vector.load %arg12[%c0_200, %c0_201] : memref<144x256xbf16, #tpu.memory_space<vmem>>, vector<8x256xbf16>
    tpu.vector_store %arg12[%c0_200, %c0_201], %380 {strides = array<i32>} : memref<144x256xbf16, #tpu.memory_space<vmem>>, vector<8x256xbf16>,
    %c16_i32_202 = arith.constant 16 : i32
    %382 = tpu.dynamic_rotate %376 by %c16_i32_202 dim 1 : vector<8x256xf32>, i32 -> vector<8x256xf32>
    %383 = arith.truncf %382 : vector<8x256xf32> to vector<8x256xbf16>
    %384 = vector.broadcast %4 : vector<1x256xbf16> to vector<8x256xbf16>
    %385 = arith.mulf %383, %384 : vector<8x256xbf16>
    %c16_203 = arith.constant 16 : index
    %c0_204 = arith.constant 0 : index
    %386 = vector.load %arg12[%c16_203, %c0_204] : memref<144x256xbf16, #tpu.memory_space<vmem>>, vector<8x256xbf16>
    tpu.vector_store %arg12[%c16_203, %c0_204], %385 {strides = array<i32>} : memref<144x256xbf16, #tpu.memory_space<vmem>>, vector<8x256xbf16>,
    %c15_i32_205 = arith.constant 15 : i32
    %387 = tpu.dynamic_rotate %376 by %c15_i32_205 dim 1 : vector<8x256xf32>, i32 -> vector<8x256xf32>
    %388 = arith.truncf %387 : vector<8x256xf32> to vector<8x256xbf16>
    %389 = vector.broadcast %5 : vector<1x256xbf16> to vector<8x256xbf16>
    %390 = arith.mulf %388, %389 : vector<8x256xbf16>
    %c32_206 = arith.constant 32 : index
    %c0_207 = arith.constant 0 : index
    %391 = vector.load %arg12[%c32_206, %c0_207] : memref<144x256xbf16, #tpu.memory_space<vmem>>, vector<8x256xbf16>
    tpu.vector_store %arg12[%c32_206, %c0_207], %390 {strides = array<i32>} : memref<144x256xbf16, #tpu.memory_space<vmem>>, vector<8x256xbf16>,
    %c1_i32_208 = arith.constant 1 : i32
    %392 = tpu.dynamic_rotate %376 by %c1_i32_208 dim 1 : vector<8x256xf32>, i32 -> vector<8x256xf32>
    %393 = arith.truncf %392 : vector<8x256xf32> to vector<8x256xbf16>
    %394 = vector.broadcast %6 : vector<1x256xbf16> to vector<8x256xbf16>
    %395 = arith.mulf %393, %394 : vector<8x256xbf16>
    %c48_209 = arith.constant 48 : index
    %c0_210 = arith.constant 0 : index
    %396 = vector.load %arg12[%c48_209, %c0_210] : memref<144x256xbf16, #tpu.memory_space<vmem>>, vector<8x256xbf16>
    tpu.vector_store %arg12[%c48_209, %c0_210], %395 {strides = array<i32>} : memref<144x256xbf16, #tpu.memory_space<vmem>>, vector<8x256xbf16>,
    %397 = arith.truncf %376 : vector<8x256xf32> to vector<8x256xbf16>
    %c64_211 = arith.constant 64 : index
    %c0_212 = arith.constant 0 : index
    %398 = vector.load %arg12[%c64_211, %c0_212] : memref<144x256xbf16, #tpu.memory_space<vmem>>, vector<8x256xbf16>
    tpu.vector_store %arg12[%c64_211, %c0_212], %397 {strides = array<i32>} : memref<144x256xbf16, #tpu.memory_space<vmem>>, vector<8x256xbf16>,
    %c255_i32_213 = arith.constant 255 : i32
    %399 = tpu.dynamic_rotate %376 by %c255_i32_213 dim 1 : vector<8x256xf32>, i32 -> vector<8x256xf32>
    %400 = arith.truncf %399 : vector<8x256xf32> to vector<8x256xbf16>
    %401 = vector.broadcast %7 : vector<1x256xbf16> to vector<8x256xbf16>
    %402 = arith.mulf %400, %401 : vector<8x256xbf16>
    %c80_214 = arith.constant 80 : index
    %c0_215 = arith.constant 0 : index
    %403 = vector.load %arg12[%c80_214, %c0_215] : memref<144x256xbf16, #tpu.memory_space<vmem>>, vector<8x256xbf16>
    tpu.vector_store %arg12[%c80_214, %c0_215], %402 {strides = array<i32>} : memref<144x256xbf16, #tpu.memory_space<vmem>>, vector<8x256xbf16>,
    %c241_i32_216 = arith.constant 241 : i32
    %404 = tpu.dynamic_rotate %376 by %c241_i32_216 dim 1 : vector<8x256xf32>, i32 -> vector<8x256xf32>
    %405 = arith.truncf %404 : vector<8x256xf32> to vector<8x256xbf16>
    %406 = vector.broadcast %8 : vector<1x256xbf16> to vector<8x256xbf16>
    %407 = arith.mulf %405, %406 : vector<8x256xbf16>
    %c96_217 = arith.constant 96 : index
    %c0_218 = arith.constant 0 : index
    %408 = vector.load %arg12[%c96_217, %c0_218] : memref<144x256xbf16, #tpu.memory_space<vmem>>, vector<8x256xbf16>
    tpu.vector_store %arg12[%c96_217, %c0_218], %407 {strides = array<i32>} : memref<144x256xbf16, #tpu.memory_space<vmem>>, vector<8x256xbf16>,
    %c240_i32_219 = arith.constant 240 : i32
    %409 = tpu.dynamic_rotate %376 by %c240_i32_219 dim 1 : vector<8x256xf32>, i32 -> vector<8x256xf32>
    %410 = arith.truncf %409 : vector<8x256xf32> to vector<8x256xbf16>
    %411 = vector.broadcast %9 : vector<1x256xbf16> to vector<8x256xbf16>
    %412 = arith.mulf %410, %411 : vector<8x256xbf16>
    %c112_220 = arith.constant 112 : index
    %c0_221 = arith.constant 0 : index
    %413 = vector.load %arg12[%c112_220, %c0_221] : memref<144x256xbf16, #tpu.memory_space<vmem>>, vector<8x256xbf16>
    tpu.vector_store %arg12[%c112_220, %c0_221], %412 {strides = array<i32>} : memref<144x256xbf16, #tpu.memory_space<vmem>>, vector<8x256xbf16>,
    %c239_i32_222 = arith.constant 239 : i32
    %414 = tpu.dynamic_rotate %376 by %c239_i32_222 dim 1 : vector<8x256xf32>, i32 -> vector<8x256xf32>
    %415 = arith.truncf %414 : vector<8x256xf32> to vector<8x256xbf16>
    %416 = vector.broadcast %10 : vector<1x256xbf16> to vector<8x256xbf16>
    %417 = arith.mulf %415, %416 : vector<8x256xbf16>
    %c128_223 = arith.constant 128 : index
    %c0_224 = arith.constant 0 : index
    %418 = vector.load %arg12[%c128_223, %c0_224] : memref<144x256xbf16, #tpu.memory_space<vmem>>, vector<8x256xbf16>
    tpu.vector_store %arg12[%c128_223, %c0_224], %417 {strides = array<i32>} : memref<144x256xbf16, #tpu.memory_space<vmem>>, vector<8x256xbf16>,
    %c0_225 = arith.constant 0 : index
    %c0_226 = arith.constant 0 : index
    %419 = vector.load %arg10[%c0_225, %c0_226] : memref<8x144xbf16, #tpu.memory_space<vmem>>, vector<8x144xbf16>
    %c0_227 = arith.constant 0 : index
    %c0_228 = arith.constant 0 : index
    %420 = vector.load %arg12[%c0_227, %c0_228] : memref<144x256xbf16, #tpu.memory_space<vmem>>, vector<144x256xbf16>
    %cst_229 = arith.constant dense<0.000000e+00> : vector<8x256xf32>
    %421 = tpu.matmul %419, %420, %cst_229 {dimension_numbers = #tpu.dot_dimension_numbers<[1], [0], [0], [1], [0, 0, 1, 1], [], []>} : vector<8x144xbf16>, vector<144x256xbf16>, vector<8x256xf32> -> vector<8x256xf32>
    %cst_230 = arith.constant dense<0.000000e+00> : vector<8xf32>
    %422 = vector.multi_reduction <add>, %421, %cst_230 [1] : vector<8x256xf32> to vector<8xf32>
    %423 = vector.shape_cast %422 : vector<8xf32> to vector<8x1xf32>
    %cst_231 = arith.constant 3.906250e-03 : f32
    %424 = vector.broadcast %cst_231 : f32 to vector<8x1xf32>
    %425 = arith.mulf %423, %424 : vector<8x1xf32>
    %426 = arith.mulf %421, %421 : vector<8x256xf32>
    %cst_232 = arith.constant dense<0.000000e+00> : vector<8xf32>
    %427 = vector.multi_reduction <add>, %426, %cst_232 [1] : vector<8x256xf32> to vector<8xf32>
    %428 = vector.shape_cast %427 : vector<8xf32> to vector<8x1xf32>
    %cst_233 = arith.constant 3.906250e-03 : f32
    %429 = vector.broadcast %cst_233 : f32 to vector<8x1xf32>
    %430 = arith.mulf %428, %429 : vector<8x1xf32>
    %431 = arith.mulf %425, %425 : vector<8x1xf32>
    %432 = arith.subf %430, %431 : vector<8x1xf32>
    %cst_234 = arith.constant 0.000000e+00 : f32
    %433 = vector.broadcast %cst_234 : f32 to vector<8x1xf32>
    %434 = arith.maximumf %432, %433 : vector<8x1xf32>
    %435 = vector.broadcast %425 : vector<8x1xf32> to vector<8x256xf32>
    %436 = arith.subf %421, %435 : vector<8x256xf32>
    %cst_235 = arith.constant 9.99999974E-6 : f32
    %437 = vector.broadcast %cst_235 : f32 to vector<8x1xf32>
    %438 = arith.addf %434, %437 : vector<8x1xf32>
    %439 = math.rsqrt %438 : vector<8x1xf32>
    %440 = vector.broadcast %439 : vector<8x1xf32> to vector<8x256xf32>
    %441 = arith.mulf %436, %440 : vector<8x256xf32>
    %cst_236 = arith.constant 0.000000e+00 : f32
    %442 = vector.broadcast %cst_236 : f32 to vector<8x256xf32>
    %443 = arith.maximumf %441, %442 : vector<8x256xf32>
    %444 = arith.truncf %443 : vector<8x256xf32> to vector<8x256xbf16>
    %c0_237 = arith.constant 0 : index
    %c0_238 = arith.constant 0 : index
    %c0_239 = arith.constant 0 : index
    %445 = vector.load %arg11[%c0_237, %c0_238, %c0_239] : memref<1x8x256xbf16, #tpu.memory_space<vmem>>, vector<1x8x256xbf16>
    %446 = vector.shape_cast %445 : vector<1x8x256xbf16> to vector<8x256xbf16>
    %447 = vector.shape_cast %444 : vector<8x256xbf16> to vector<1x8x256xbf16>
    tpu.vector_store %arg11[%c0_237, %c0_238, %c0_239], %447 {strides = array<i32>} : memref<1x8x256xbf16, #tpu.memory_space<vmem>>, vector<1x8x256xbf16>,
    return
  }
  func.func @transform_0(%arg0: i32) -> (i32, i32) {
    %c0_i32 = arith.constant 0 : i32
    %c0_i32_0 = arith.constant 0 : i32
    %c0_i32_1 = arith.constant 0 : i32
    return %c0_i32, %c0_i32_0 : i32, i32
  }
  func.func @transform_1(%arg0: i32) -> (i32, i32) {
    %c0_i32 = arith.constant 0 : i32
    %c0_i32_0 = arith.constant 0 : i32
    %c0_i32_1 = arith.constant 0 : i32
    return %c0_i32, %c0_i32_0 : i32, i32
  }
  func.func @transform_2(%arg0: i32) -> (i32, i32, i32) {
    %c0_i32 = arith.constant 0 : i32
    %c0_i32_0 = arith.constant 0 : i32
    %c0_i32_1 = arith.constant 0 : i32
    return %arg0, %c0_i32, %c0_i32_0 : i32, i32, i32
  }
  func.func @transform_3(%arg0: i32) -> (i32, i32, i32) {
    %c0_i32 = arith.constant 0 : i32
    %c0_i32_0 = arith.constant 0 : i32
    %c0_i32_1 = arith.constant 0 : i32
    return %arg0, %c0_i32, %c0_i32_0 : i32, i32, i32
  }
  func.func @transform_4(%arg0: i32) -> (i32, i32) {
    %c0_i32 = arith.constant 0 : i32
    %c0_i32_0 = arith.constant 0 : i32
    %c0_i32_1 = arith.constant 0 : i32
    return %c0_i32, %c0_i32_0 : i32, i32
  }
  func.func @transform_5(%arg0: i32) -> (i32, i32) {
    %c0_i32 = arith.constant 0 : i32
    %c0_i32_0 = arith.constant 0 : i32
    %c0_i32_1 = arith.constant 0 : i32
    return %c0_i32, %c0_i32_0 : i32, i32
  }
  func.func @transform_6(%arg0: i32) -> (i32, i32) {
    %c0_i32 = arith.constant 0 : i32
    %c0_i32_0 = arith.constant 0 : i32
    %c0_i32_1 = arith.constant 0 : i32
    return %c0_i32, %c0_i32_0 : i32, i32
  }
  func.func @transform_7(%arg0: i32) -> (i32, i32) {
    %c0_i32 = arith.constant 0 : i32
    %c0_i32_0 = arith.constant 0 : i32
    %c0_i32_1 = arith.constant 0 : i32
    return %c0_i32, %c0_i32_0 : i32, i32
  }
  func.func @transform_8(%arg0: i32) -> (i32, i32) {
    %c0_i32 = arith.constant 0 : i32
    %c0_i32_0 = arith.constant 0 : i32
    %c0_i32_1 = arith.constant 0 : i32
    return %c0_i32, %c0_i32_0 : i32, i32
  }
  func.func @transform_9(%arg0: i32) -> (i32, i32) {
    %c0_i32 = arith.constant 0 : i32
    %c0_i32_0 = arith.constant 0 : i32
    %c0_i32_1 = arith.constant 0 : i32
    return %c0_i32, %c0_i32_0 : i32, i32
  }
  func.func @transform_10(%arg0: i32) -> (i32, i32, i32) {
    %c0_i32 = arith.constant 0 : i32
    %c0_i32_0 = arith.constant 0 : i32
    %c0_i32_1 = arith.constant 0 : i32
    return %arg0, %c0_i32, %c0_i32_0 : i32, i32, i32
  }
}

</mosaic_0001>

<bundles_post_ra>
// kernel: decoder_block_forward.1
= control target key start
LH: loop header
LB: loop body
LE: loop exit
PB: predicated region body
PF: predicated region fallthrough
CT: control target
= control target key end

     0   :  { %s2455_s13 = smov 0   ;;  %s3018_s0 = inlined_call_operand.vmem [shape: bf16[9,256], index: 0, kind: input, shape index: {}]   ;;  %s3019_s1 = inlined_call_operand.vmem [shape: bf16[64,256], index: 1, kind: input, shape index: {}]   ;;  %s3020_s2 = inlined_call_operand.vmem [shape: bf16[2,4,256], index: 2, kind: input, shape index: {}]   ;;  %s3021_s3 = inlined_call_operand.vmem [shape: bf16[2,8,64], index: 3, kind: input, shape index: {}]   ;;  %s3022_s4 = inlined_call_operand.vmem [shape: bf16[8,144], index: 4, kind: input, shape index: {}]   ;;  %s3023_s5 = inlined_call_operand.vmem [shape: bf16[2,144], index: 5, kind: input, shape index: {}]   ;;  %s3024_s6 = inlined_call_operand.vmem [shape: bf16[1,144], index: 6, kind: input, shape index: {}]   ;;  %s3025_s7 = inlined_call_operand.vmem [shape: bf16[8,144], index: 7, kind: input, shape index: {}]   ;;  %s3026_s8 = inlined_call_operand.vmem [shape: bf16[8,144], index: 8, kind: input, shape index: {}]   ;;  %s3027_s9 = inlined_call_operand.vmem [shape: bf16[8,144], index: 9, kind: input, shape index: {}]   ;;  %s3028_s10 = inlined_call_operand.vmem [shape: bf16[2,8,256], index: 10, kind: output, shape index: {}]  }
   0x1 LB: > { %s2017_s14 = sadd.s32 4294967295, %s2386_s13   ;;  %p2021_p0 = scmp.ge.s32.totalorder %s2386_s13, 1  ;;  %s2386_s13 = sphi %s2455_s13, %s20_s13  }
   0x2   : > { %p321_p1 = scmp.lt.s32.totalorder %s2386_s13, 3 }
   0x4   : > { %p322_p2 = pnand %p2021_p0, %p321_p1 }
   0x5   : > { %p363_p3 = scmp.lt.s32.totalorder (!%p322_p2), %s2017_s14, 1  ;;  %p2027_p4 = scmp.ne.s32.totalorder (!%p322_p2), %s2017_s14, 0 }
   0x6   : > { %325 = sbr.rel (%p322_p2) target bundleno = 3391 (0xd3f), region = 60 }
   0xd   : > { %s364_s15 = scalar_select %p363_p3, %s2017_s14, 1 }
   0xe   : > { %381 = sbr.rel (%p2027_p4) target bundleno = 24 (0x18), region = 64  ;;  %v2388_v0 = vmov (!%p2027_p4), 0  }
   0xf   : > { %s2067_s16 = sshll.u32 %s364_s15, 2  ;;  %s2068_s17 = sshll.u32 %s364_s15, 3  ;;  %382 = vst [vmem:[#allocation2] sm:$0xff] (!%p2027_p4), %v2388_v0  ;;  %383 = vst [vmem:[#allocation2 + $0x8] sm:$0xff] (!%p2027_p4), %v2388_v0 }
  0x10   : > { %s367_s20 = scalar_lea.vmem %s3020_s2, %s2067_s16  ;;  %s2469_s23 = scalar_lea.vmem %s3021_s3, %s2067_s16  ;;  %384 = vst [vmem:[#allocation2 + $0x10] sm:$0xff] (!%p2027_p4), %v2388_v0  ;;  %385 = vst [vmem:[#allocation2 + $0x18] sm:$0xff] (!%p2027_p4), %v2388_v0 }
  0x11   : > { %s2474_s26 = scalar_lea.vmem %s3028_s10, %s2068_s17  ;;  %386 = vst [vmem:[#allocation2 + $0x20] sm:$0xff] (!%p2027_p4), %v2388_v0  ;;  %387 = vst [vmem:[#allocation2 + $0x28] sm:$0xff] (!%p2027_p4), %v2388_v0 }
  0x12   : > { %388 = vst [vmem:[#allocation2 + $0x30] sm:$0xff] (!%p2027_p4), %v2388_v0  ;;  %389 = vst [vmem:[#allocation2 + $0x38] sm:$0xff] (!%p2027_p4), %v2388_v0 }
  0x13   : > { %390 = vst [vmem:[#allocation2 + $0x40] sm:$0xff] (!%p2027_p4), %v2388_v0  ;;  %391 = vst [vmem:[#allocation2 + $0x48] sm:$0xff] (!%p2027_p4), %v2388_v0 }
  0x14   : > { %392 = vst [vmem:[#allocation2 + $0x50] sm:$0xff] (!%p2027_p4), %v2388_v0  ;;  %393 = vst [vmem:[#allocation2 + $0x58] sm:$0xff] (!%p2027_p4), %v2388_v0 }
  0x15   : > { %394 = vst [vmem:[#allocation2 + $0x60] sm:$0xff] %v2388_v0  ;;  %395 = vst [vmem:[#allocation2 + $0x68] sm:$0xff] %v2388_v0 }
  0x16   : > { %396 = vst [vmem:[#allocation2 + $0x70] sm:$0xff] %v2388_v0  ;;  %397 = vst [vmem:[#allocation2 + $0x78] sm:$0xff] %v2388_v0 }
  0x17   : > { %398 = vst [vmem:[#allocation2 + $0x80] sm:$0xff] %v2388_v0  ;;  %399 = vst [vmem:[#allocation2 + $0x88] sm:$0xff] %v2388_v0 }
  0x18 PF: > { %v405_v1 = vld [vmem:[%s367_s20] sm:$0xf]  ;;  %s2389_s27 = smov 17   ;;  %s2390_s28 = smov 15   ;;  %v508_v5 = vlaneseq  ;;  %v2393_v6 = vmov 1983009808  }
  0x19   : > { %v406_v2 = vunpack.c.l.bf16 %v405_v1  ;;  %2041 = vst.sshfl [vmem:[#allocation2 + $0x40] sm:$0x3 pattern:$0x76325410] %v405_v1  ;;  %s2391_s29 = smov 16   ;;  %s2392_s30 = smov 1   ;;  %v626_v7 = vunpack.c.l.s4 %v2393_v6 }
  0x1a   : > { %s2394_s11 = smov 127   ;;  %s2395_s12 = smov 113   ;;  %v2482_v8 = vshrl.u32 %v508_v5, 7  ;;  %v2490_v13 = vld [vmem:[%s3022_s4] sm:$0xff]  ;;  %vm787_vm0 = vcmask 130048   ;;  %v2398_v19 = vmov 0  }
  0x1b   : > { %v502_v3 = vcombine.high %v406_v2, %v406_v2  ;;  %v627_v9 = vunpack.c.0.s8 %v626_v7  ;;  %s2396_s14 = smov 112   ;;  %s2397_s15 = smov 111   ;;  %v2049_v14 = vcombine.high %v2490_v13, %v2490_v13  ;;  %v2342_v15 = vld [vmem:[%s3019_s1 + $0x4] ss:$8 sps:$4 sm:$0xff]   ;;  %v2344_v16 = vld [vmem:[%s3019_s1] ss:$8 sps:$4 sm:$0xff]   ;;  %492 = vmatprep.mubr.bf16.mxu0 %v2398_v19 }
  0x1c   : > { %v2345_v17 = vld [vmem:[%s3019_s1 + $0x14] ss:$8 sps:$4 sm:$0xff]   ;;  %460 = vmatprep.subr.bf16.mxu0 %v2342_v15  ;;  %v2347_v18 = vld [vmem:[%s3019_s1 + $0x10] ss:$8 sps:$4 sm:$0xff]   ;;  %v2348_v20 = vld [vmem:[%s3019_s1 + $0x24] ss:$8 sps:$4 sm:$0xff]  }
  0x1d   : > { %v2090_v4 = vpack.i.bf16 %v502_v3, %v406_v2  ;;  %v630_v10 = vsub.s32 %v627_v9, %v2482_v8  ;;  %2050 = vmatprep.mubr.msk.bf16.mxu1 %vm787_vm0, %v2049_v14  ;;  %461 = vmatpush1.bf16.msra.mxu0 %v2344_v16  ;;  %v2350_v21 = vld [vmem:[%s3019_s1 + $0x20] ss:$8 sps:$4 sm:$0xff]   ;;  %v2351_v22 = vld [vmem:[%s3019_s1 + $0x34] ss:$8 sps:$4 sm:$0xff]   ;;  %v2353_v23 = vld [vmem:[%s3019_s1 + $0x30] ss:$8 sps:$4 sm:$0xff]  }
  0x1e   : > { %462 = vmatprep.subr.bf16.mxu0 %v2345_v17  ;;  %v407_v24 = vld [vmem:[%s2469_s23] sm:$0xf]  ;;  %vm456_vm1 = vcmask 523264   ;;  %v2527_v29 = vsub.s32 0, %v2482_v8  ;;  %v2532_v34 = vand.u32 127, %v508_v5  ;;  %v584_v52 = vsub.s32 1, %v2482_v8 }
  0x1f   : > { %2091 = vrot.lane.b32.xlu0 %v2090_v4, %s2389_s27  ;;  %2101 = vrot.lane.b32.xlu1 %v2090_v4, %s2390_s28  ;;  %v631_v11 = vrot.slane %v405_v1, %v630_v10  ;;  %v400_v25 = vld [vmem:[%s3018_s0] sm:$0x11]  ;;  %v402_v28 = vld [vmem:[%s3018_s0] sm:$0x44]  ;;  %v657_v61 = vsub.s32 2, %v2482_v8  ;;  %v690_v62 = vsub.s32 3, %v2482_v8 }
  0x20   : > { %v2037_v26 = vcombine.low %v400_v25, %v400_v25  ;;  %v2038_v27 = vcombine.high %v400_v25, %v400_v25  ;;  %v401_v31 = vld [vmem:[%s3018_s0] sm:$0x22]  ;;  %v2042_v35 = vcombine.low %v402_v28, %v402_v28  ;;  %v2043_v36 = vcombine.high %v402_v28, %v402_v28  ;;  %v403_v40 = vld [vmem:[%s3018_s0] sm:$0x88]  ;;  %v404_v46 = vld [vmem:[%s3018_s0 + $0x8] sm:$0x11] }
  0x21   : > { %v632_v12 = vcombine.high %v631_v11, %v631_v11  ;;  %463 = vmatpush1.bf16.msra.mxu0 %v2347_v18  ;;  %v2039_v38 = vcombine.low %v401_v31, %v401_v31  ;;  %v2040_v39 = vcombine.high %v401_v31, %v401_v31  ;;  %vm510_vm2 = vcmp.lt.s32.totalorder %v2532_v34, 17 }
  0x22   : > { %464 = vmatprep.subr.bf16.mxu0 %v2348_v20  ;;  %v521_v30 = vpack.i.b16 %v2037_v26, %v2037_v26  ;;  %v528_v32 = vpack.i.b16 %v2038_v27, %v2038_v27  ;;  %v547_v33 = vshrl.u32 %v2037_v26, 16  ;;  %v554_v37 = vshrl.u32 %v2038_v27, 16 }
  0x23   : > { %2096 = vrot.lane.b32.xlu0 %v2090_v4, %s2391_s29  ;;  %2106 = vrot.lane.b32.xlu1 %v2090_v4, %s2392_s30  ;;  %636 = vst [vmem:[#allocation2 + $0x48] sm:$0x3] %v632_v12  ;;  %v606_v44 = vshrl.u32 %v2039_v38, 16  ;;  %v613_v45 = vshrl.u32 %v2040_v39, 16  ;;  %v652_v47 = vshrl.u32 %v2042_v35, 16  ;;  %v660_v48 = vshrl.u32 %v2043_v36, 16 }
  0x24   : > { %v2538_v41 = vrot.slane %v521_v30, %v2527_v29  ;;  %v2541_v42 = vrot.slane %v528_v32, %v2527_v29  ;;  %v548_v43 = vpack.i.b16 %v547_v33, %v547_v33  ;;  %v2044_v49 = vcombine.low %v403_v40, %v403_v40 }
  0x25   : > { %465 = vmatpush1.bf16.msra.mxu0 %v2350_v21  ;;  %v2045_v50 = vcombine.high %v403_v40, %v403_v40  ;;  %v555_v51 = vpack.i.b16 %v554_v37, %v554_v37  ;;  %v580_v53 = vpack.i.b16 %v2039_v38, %v2039_v38  ;;  %v587_v54 = vpack.i.b16 %v2040_v39, %v2040_v39 }
  0x26   : > { %466 = vmatprep.subr.bf16.mxu0 %v2351_v22  ;;  %v712_v55 = vshrl.u32 %v2044_v49, 16  ;;  %v2046_v57 = vcombine.low %v404_v46, %v404_v46  ;;  %v2047_v58 = vcombine.high %v404_v46, %v404_v46  ;;  %v607_v59 = vpack.i.b16 %v606_v44, %v606_v44 }
  0x27   : > { %2111 = vrot.lane.b32.xlu0 %v2090_v4, %s2394_s11  ;;  %2116 = vrot.lane.b32.xlu1 %v2090_v4, %s2395_s12  ;;  %v719_v56 = vshrl.u32 %v2045_v50, 16  ;;  %v614_v60 = vpack.i.b16 %v613_v45, %v613_v45  ;;  %vm542_vm3 = vcmp.lt.s32.totalorder %v2532_v34, 16  ;;  %v653_v63 = vpack.i.b16 %v652_v47, %v652_v47 }
  0x28   : > { %v661_v0 = vpack.i.b16 %v660_v48, %v660_v48  ;;  %v686_v1 = vpack.i.b16 %v2044_v49, %v2044_v49  ;;  %v693_v2 = vpack.i.b16 %v2045_v50, %v2045_v50  ;;  %v2552_v3 = vrot.slane %v548_v43, %v2527_v29 }
  0x29   : > { %467 = vmatpush1.bf16.msra.mxu0 %v2353_v23  ;;  %vm569_vm4 = vcmp.lt.s32.totalorder %v2532_v34, 15  ;;  %vm601_vm5 = vcmp.lt.s32.totalorder %v2532_v34, 1  ;;  %v713_v5 = vpack.i.b16 %v712_v55, %v712_v55  ;;  %v720_v6 = vpack.i.b16 %v719_v56, %v719_v56 }
  0x2a   : > { %v745_v7 = vpack.i.b16 %v2046_v57, %v2046_v57  ;;  %v752_v9 = vpack.i.b16 %v2047_v58, %v2047_v58  ;;  %v2559_v10 = vrot.slane %v580_v53, %v584_v52  ;;  %v2561_v11 = vrot.slane %v587_v54, %v584_v52 }
  0x2b   : > { %2121 = vrot.lane.b32.xlu0 %v2090_v4, %s2396_s14  ;;  %2126 = vrot.lane.b32.xlu1 %v2090_v4, %s2397_s15  ;;  %v2555_v4 = vrot.slane %v555_v51, %v2527_v29  ;;  %v2563_v12 = vrot.slane %v607_v59, %v584_v52  ;;  %v2565_v14 = vrot.slane %v614_v60, %v584_v52  ;;  %vm641_vm6 = vcmp.lt.s32.totalorder %v2532_v34, 127 }
  0x2c   : > { %2036 = vmatmul.mubr.msk.bf16.vlgmr.msra.gmra.mrb[0].mxu0 %vm456_vm1, %v407_v24  ;;  %v2568_v17 = vrot.slane %v653_v63, %v657_v61  ;;  %v2570_v18 = vrot.slane %v661_v0, %v657_v61  ;;  %vm675_vm7 = vcmp.lt.s32.totalorder %v2532_v34, 113  ;;  %v2573_v19 = vrot.slane %v686_v1, %v690_v62 }
  0x2d   : > { %v2575_v20 = vrot.slane %v693_v2, %v690_v62  ;;  %v2577_v25 = vrot.slane %v713_v5, %v690_v62  ;;  %v2579_v26 = vrot.slane %v720_v6, %v690_v62  ;;  %v2582_v27 = vrot.slane %v745_v7, %v2527_v29 }
  0x2e   : > { %v2585_v28 = vrot.slane %v752_v9, %v2527_v29  ;;  %vm707_vm8 = vcmp.lt.s32.totalorder %v2532_v34, 112  ;;  %vm734_vm9 = vcmp.lt.s32.totalorder %v2532_v34, 111  ;;  %vm906_vm10 = vcmask 1040384  }
  0x2f   : > { %vm909_vm11 = vcmask 1041408   ;;  %vm912_vm12 = vcmask 1042432  }
  0x91   : > { %v2092_v15 = vpop.permute.xlu0 %2091  ;;  %v2102_v16 = vpop.permute.xlu1 %2101 }
  0x92   : > { %v2094_v21 = vunpack.i.h.bf16 %v2092_v15  ;;  %v2093_v22 = vunpack.i.l.bf16 %v2092_v15  ;;  %v2104_v23 = vunpack.i.h.bf16 %v2102_v16  ;;  %v2103_v24 = vunpack.i.l.bf16 %v2102_v16 }
  0x94   : > { %v511_v30 = vsel %vm510_vm2, %v2093_v22, %v2094_v21  ;;  %v512_v31 = vsel %vm510_vm2, %v2094_v21, %v2093_v22  ;;  %v570_v32 = vsel %vm569_vm4, %v2103_v24, %v2104_v23  ;;  %v571_v33 = vsel %vm569_vm4, %v2104_v23, %v2103_v24 }
  0x95   : > { %v513_v35 = vpack.c.bf16 %v512_v31, %v512_v31  ;;  %v514_v36 = vpack.c.bf16 %v511_v30, %v511_v30  ;;  %v2097_v37 = vpop.permute.xlu0 %2096  ;;  %v572_v38 = vpack.c.bf16 %v571_v33, %v571_v33  ;;  %v573_v39 = vpack.c.bf16 %v570_v32, %v570_v32  ;;  %v2107_v40 = vpop.permute.xlu1 %2106 }
  0x96   : > { %v2099_v43 = vunpack.i.h.bf16 %v2097_v37  ;;  %v2098_v44 = vunpack.i.l.bf16 %v2097_v37  ;;  %v2109_v45 = vunpack.i.h.bf16 %v2107_v40  ;;  %v2108_v46 = vunpack.i.l.bf16 %v2107_v40 }
  0x97   : > { %v534_v47 = vmul.bf16 %v2538_v41, %v513_v35  ;;  %v535_v48 = vmul.bf16 %v2541_v42, %v514_v36  ;;  %v593_v49 = vmul.bf16 %v2559_v10, %v572_v38  ;;  %v594_v50 = vmul.bf16 %v2561_v11, %v573_v39 }
  0x98   : > { %v543_v51 = vsel %vm542_vm3, %v2098_v44, %v2099_v43  ;;  %v544_v52 = vsel %vm542_vm3, %v2099_v43, %v2098_v44  ;;  %v602_v53 = vsel %vm601_vm5, %v2108_v46, %v2109_v45  ;;  %v603_v54 = vsel %vm601_vm5, %v2109_v45, %v2108_v46 }
  0x99   : > { %536 = vst [vmem:[#allocation2] sm:$0x3] %v534_v47  ;;  %537 = vst [vmem:[#allocation2 + $0x8] sm:$0x3] %v535_v48  ;;  %v545_v55 = vpack.c.bf16 %v544_v52, %v544_v52  ;;  %v546_v56 = vpack.c.bf16 %v543_v51, %v543_v51  ;;  %v604_v57 = vpack.c.bf16 %v603_v54, %v603_v54  ;;  %v2112_v59 = vpop.permute.xlu0 %2111  ;;  %v2117_v60 = vpop.permute.xlu1 %2116 }
  0x9a   : > { %595 = vst [vmem:[#allocation2 + $0x20] sm:$0x3] %v593_v49  ;;  %596 = vst [vmem:[#allocation2 + $0x28] sm:$0x3] %v594_v50  ;;  %v605_v58 = vpack.c.bf16 %v602_v53, %v602_v53  ;;  %v2114_v61 = vunpack.i.h.bf16 %v2112_v59  ;;  %v2113_v62 = vunpack.i.l.bf16 %v2112_v59  ;;  %v2119_v63 = vunpack.i.h.bf16 %v2117_v60 }
  0x9b   : > { %v2118_v0 = vunpack.i.l.bf16 %v2117_v60  ;;  %v561_v1 = vmul.bf16 %v2552_v3, %v545_v55  ;;  %v562_v2 = vmul.bf16 %v2555_v4, %v546_v56  ;;  %v620_v5 = vmul.bf16 %v2563_v12, %v604_v57 }
  0x9c   : > { %v621_v6 = vmul.bf16 %v2565_v14, %v605_v58  ;;  %v642_v7 = vsel %vm641_vm6, %v2113_v62, %v2114_v61  ;;  %v643_v9 = vsel %vm641_vm6, %v2114_v61, %v2113_v62 }
  0x9d   : > { %v676_v15 = vsel %vm675_vm7, %v2118_v0, %v2119_v63  ;;  %v677_v16 = vsel %vm675_vm7, %v2119_v63, %v2118_v0  ;;  %563 = vst [vmem:[#allocation2 + $0x10] sm:$0x3] %v561_v1  ;;  %564 = vst [vmem:[#allocation2 + $0x18] sm:$0x3] %v562_v2  ;;  %v644_v21 = vpack.c.bf16 %v642_v7, %v642_v7  ;;  %v2122_v30 = vpop.permute.xlu0 %2121  ;;  %v2127_v31 = vpop.permute.xlu1 %2126  ;;  %v772_v63 = vld [vmem:[#allocation2 + $0x48] sm:$0xff]  ;;  %v771_v0 = vld [vmem:[#allocation2 + $0x40] sm:$0xff] }
  0x9e   : > { %622 = vst [vmem:[#allocation2 + $0x30] sm:$0x3] %v620_v5  ;;  %623 = vst [vmem:[#allocation2 + $0x38] sm:$0x3] %v621_v6  ;;  %v645_v22 = vpack.c.bf16 %v643_v9, %v643_v9  ;;  %v678_v23 = vpack.c.bf16 %v676_v15, %v676_v15  ;;  %v679_v24 = vpack.c.bf16 %v677_v16, %v677_v16  ;;  %v2124_v32 = vunpack.i.h.bf16 %v2122_v30 }
  0x9f   : > { %v2123_v33 = vunpack.i.l.bf16 %v2122_v30  ;;  %v2129_v35 = vunpack.i.h.bf16 %v2127_v31  ;;  %v2128_v36 = vunpack.i.l.bf16 %v2127_v31  ;;  %v667_v37 = vmul.bf16 %v2568_v17, %v644_v21 }
  0xa0   : > { %v668_v38 = vmul.bf16 %v2570_v18, %v645_v22  ;;  %v699_v39 = vmul.bf16 %v2573_v19, %v678_v23  ;;  %v700_v40 = vmul.bf16 %v2575_v20, %v679_v24  ;;  %v764_v43 = vld [vmem:[#allocation2 + $0x8] sm:$0xff]  ;;  %v763_v44 = vld [vmem:[#allocation2] sm:$0xff]  ;;  %v2048_v21 = vcombine.low %v2490_v13, %v2490_v13 }
  0xa1   : > { %v708_v45 = vsel %vm707_vm8, %v2123_v33, %v2124_v32  ;;  %v709_v46 = vsel %vm707_vm8, %v2124_v32, %v2123_v33  ;;  %v735_v47 = vsel %vm734_vm9, %v2128_v36, %v2129_v35  ;;  %v736_v48 = vsel %vm734_vm9, %v2129_v35, %v2128_v36  ;;  %791 = vmatprep.subr.bf16.mxu1 %v764_v43  ;;  %v768_v59 = vld [vmem:[#allocation2 + $0x28] sm:$0xff]  ;;  %v767_v60 = vld [vmem:[#allocation2 + $0x20] sm:$0xff] }
  0xa2   : > { %669 = vst [vmem:[#allocation2 + $0x50] sm:$0x3] %v667_v37  ;;  %670 = vst [vmem:[#allocation2 + $0x58] sm:$0x3] %v668_v38  ;;  %v710_v49 = vpack.c.bf16 %v708_v45, %v708_v45  ;;  %v711_v50 = vpack.c.bf16 %v709_v46, %v709_v46  ;;  %v737_v51 = vpack.c.bf16 %v735_v47, %v735_v47  ;;  %792 = vmatpush1.bf16.msra.mxu1 %v763_v44 }
  0xa3   : > { %701 = vst [vmem:[#allocation2 + $0x60] sm:$0x3] %v699_v39  ;;  %702 = vst [vmem:[#allocation2 + $0x68] sm:$0x3] %v700_v40  ;;  %v738_v52 = vpack.c.bf16 %v736_v48, %v736_v48 }
  0xa4   : > { %v726_v53 = vmul.bf16 %v2577_v25, %v710_v49  ;;  %v727_v54 = vmul.bf16 %v2579_v26, %v711_v50  ;;  %v758_v55 = vmul.bf16 %v2582_v27, %v737_v51  ;;  %v766_v57 = vld [vmem:[#allocation2 + $0x18] sm:$0xff]  ;;  %v765_v58 = vld [vmem:[#allocation2 + $0x10] sm:$0xff] }
  0xa5   : > { %v759_v56 = vmul.bf16 %v2585_v28, %v738_v52  ;;  %793 = vmatprep.subr.bf16.mxu1 %v766_v57  ;;  %v770_v61 = vld [vmem:[#allocation2 + $0x38] sm:$0xff]  ;;  %v769_v62 = vld [vmem:[#allocation2 + $0x30] sm:$0xff] }
  0xa6   : > { %728 = vst [vmem:[#allocation2 + $0x70] sm:$0x3] %v726_v53  ;;  %729 = vst [vmem:[#allocation2 + $0x78] sm:$0x3] %v727_v54  ;;  %794 = vmatpush1.bf16.msra.mxu1 %v765_v58 }
  0xa7   : > { %760 = vst [vmem:[#allocation2 + $0x80] sm:$0x3] %v758_v55  ;;  %761 = vst [vmem:[#allocation2 + $0x88] sm:$0x3] %v759_v56  ;;  %795 = vmatprep.subr.bf16.mxu1 %v768_v59 }
  0xa9   : > { %v774_v1 = vld [vmem:[#allocation2 + $0x58] sm:$0xff]  ;;  %v773_v2 = vld [vmem:[#allocation2 + $0x50] sm:$0xff] }
  0xaa   : > { %796 = vmatpush1.bf16.msra.mxu1 %v767_v60  ;;  %v776_v5 = vld [vmem:[#allocation2 + $0x68] sm:$0xff]  ;;  %v775_v6 = vld [vmem:[#allocation2 + $0x60] sm:$0xff] }
  0xab   : > { %797 = vmatprep.subr.bf16.mxu1 %v770_v61 }
  0xad   : > { %v778_v7 = vld [vmem:[#allocation2 + $0x78] sm:$0xff]  ;;  %v777_v9 = vld [vmem:[#allocation2 + $0x70] sm:$0xff] }
  0xae   : > { %798 = vmatpush1.bf16.msra.mxu1 %v769_v62  ;;  %v780_v15 = vld [vmem:[#allocation2 + $0x88] sm:$0xff]  ;;  %v779_v16 = vld [vmem:[#allocation2 + $0x80] sm:$0xff] }
  0xaf   : > { %799 = vmatprep.subr.bf16.mxu1 %v772_v63 }
  0xb2   : > { %800 = vmatpush1.bf16.msra.mxu1 %v771_v0 }
  0xb3   : > { %801 = vmatprep.subr.bf16.mxu1 %v774_v1 }
  0xb6   : > { %802 = vmatpush1.bf16.msra.mxu1 %v773_v2 }
  0xb7   : > { %803 = vmatprep.subr.bf16.mxu1 %v776_v5 }
  0xba   : > { %804 = vmatpush1.bf16.msra.mxu1 %v775_v6 }
  0xbb   : > { %805 = vmatprep.subr.bf16.mxu1 %v778_v7 }
  0xbe   : > { %806 = vmatpush1.bf16.msra.mxu1 %v777_v9 }
  0xbf   : > { %807 = vmatprep.subr.bf16.mxu1 %v780_v15 }
  0xc2   : > { %808 = vmatpush1.bf16.msra.mxu1 %v779_v16 }
  0xc5   : > { %824 = vmatmul.mubr.bf16.vlgmr.msra.gmra.mrb[0].mxu1 %v2048_v21 }
  0xff   : > { %v2639_v36 = vpop.f32.mrb[0].mxu0 }
 0x100   : > { %v2641_v37 = vpop.f32.mrb[1].mxu0  ;;  %v880_v49 = vrot.slane %v2639_v36, 4 }
 0x101   : > { %v498_v38 = vpop.f32.mrb[2].mxu0  ;;  %v886_v50 = vrot.slane %v2641_v37, 4 }
 0x102   : > { %v499_v39 = vpop.f32.mrb[3].mxu0  ;;  %v881_v51 = vadd.f32 %v880_v49, %v2639_v36  ;;  %v895_v59 = vmax.f32 %v2639_v36, %v880_v49 }
 0x103   : > { %v887_v52 = vadd.f32 %v886_v50, %v2641_v37  ;;  %v901_v61 = vmax.f32 %v2641_v37, %v886_v50 }
 0x104   : > { %v882_v58 = vrot.slane %v881_v51, 2  ;;  %v896_v5 = vrot.slane %v895_v59, 2 }
 0x105   : > { %v888_v60 = vrot.slane %v887_v52, 2  ;;  %v902_v7 = vrot.slane %v901_v61, 2 }
 0x106   : > { %v883_v2 = vadd.f32 %v882_v58, %v881_v51 }
 0x107   : > { %v889_v6 = vadd.f32 %v888_v60, %v887_v52 }
 0x198   : > { %v825_v22 = vpop.f32.mrb[0].mxu1 }
 0x199   : > { %v827_v23 = vpop.f32.mrb[1].mxu1  ;;  %v836_v24 = vmul.f32 %v825_v22, %v825_v22 }
 0x19a   : > { %v829_v30 = vpop.f32.mrb[2].mxu1  ;;  %v832_v31 = vadd.f32 %v827_v23, %v825_v22  ;;  %v837_v32 = vmul.f32 %v827_v23, %v827_v23 }
 0x19b   : > { %v830_v33 = vpop.f32.mrb[3].mxu1 }
 0x19c   : > { %833 = vadd.xlane.f32.xlu0 %v832_v31  ;;  %v838_v35 = vadd.f32 %v837_v32, %v836_v24  ;;  %v884_v31 = vrot.slane %v883_v2, 1  ;;  %v897_v32 = vmax.f32 %v895_v59, %v896_v5  ;;  %v890_v33 = vrot.slane %v889_v6, 1 }
 0x19e   : > { %839 = vadd.xlane.f32.xlu1 %v838_v35  ;;  %v903_v35 = vmax.f32 %v901_v61, %v902_v7  ;;  %v898_v50 = vrot.slane %v897_v32, 1 }
 0x1a0   : > { %v904_v52 = vrot.slane %v903_v35, 1  ;;  %v899_v59 = vmax.f32 %v897_v32, %v898_v50 }
 0x1a2   : > { %v905_v61 = vmax.f32 %v903_v35, %v904_v52 }
 0x229   : > { %v834_v40 = vpop.xlane.xlu0 %833 }
 0x22a   : > { %v835_v13 = vmul.f32 0.00390625, %v834_v40 }
 0x22b   : > { %v840_v43 = vpop.xlane.xlu1 %839 }
 0x22c   : > { %v841_v44 = vmul.f32 0.00390625, %v840_v43  ;;  %v842_v45 = vmul.f32 %v835_v13, %v835_v13  ;;  %v845_v53 = vsub.f32 %v825_v22, %v835_v13  ;;  %v846_v54 = vsub.f32 %v827_v23, %v835_v13 }
 0x22e   : > { %v843_v46 = vsub.f32 %v841_v44, %v842_v45 }
 0x230   : > { %v844_v47 = vmax.f32 %v843_v46, 0.0 }
 0x232   : > { %v847_v48 = vadd.f32 1e-05, %v844_v47  ;;  %v885_v47 = vadd.f32 %v884_v31, %v883_v2 }
 0x234   : > { %2360 = vrsqrt.f32 %v847_v48  ;;  %v891_v48 = vadd.f32 %v890_v33, %v889_v6 }
 0x236   : > { %v893_v58 = vmul.f32 0.125, %v891_v48 }
 0x23e   : > { %v2361_v55 = vpop.eup %2360 }
 0x23f   : > { %v849_v56 = vmul.f32 %v2361_v55, %v845_v53  ;;  %v850_v57 = vmul.f32 %v2361_v55, %v846_v54 }
 0x241   : > { %v2649_v62 = vmax.f32 %v849_v56, 0.0  ;;  %v2651_v63 = vmax.f32 %v850_v57, 0.0  ;;  %v892_v57 = vmul.f32 0.125, %v885_v47 }
 0x243   : > { %v853_v0 = vrot.slane %v2649_v62, 4  ;;  %v859_v1 = vrot.slane %v2651_v63, 4 }
 0x245   : > { %v854_v9 = vadd.f32 %v853_v0, %v2649_v62  ;;  %v860_v15 = vadd.f32 %v859_v1, %v2651_v63  ;;  %v869_v16 = vmax.f32 %v2649_v62, %v853_v0  ;;  %v875_v21 = vmax.f32 %v2651_v63, %v859_v1 }
 0x247   : > { %v855_v22 = vrot.slane %v854_v9, 2  ;;  %v861_v23 = vrot.slane %v860_v15, 2  ;;  %v870_v24 = vrot.slane %v869_v16, 2  ;;  %v876_v30 = vrot.slane %v875_v21, 2 }
 0x249   : > { %v856_v38 = vadd.f32 %v855_v22, %v854_v9  ;;  %v871_v39 = vmax.f32 %v869_v16, %v870_v24  ;;  %v862_v40 = vadd.f32 %v861_v23, %v860_v15  ;;  %v877_v13 = vmax.f32 %v875_v21, %v876_v30  ;;  %v2674_v23 = vld.sshfl [vmem:[%s3023_s5] sm:$0x11 pattern:$0x75316420] }
 0x24a   : > { %v2399_v16 = vmov 1966171168   ;;  %v1042_v24 = vcombine.high %v2674_v23, %v2674_v23 }
 0x24b   : > { %v857_v43 = vrot.slane %v856_v38, 1  ;;  %v872_v44 = vrot.slane %v871_v39, 1  ;;  %v863_v45 = vrot.slane %v862_v40, 1  ;;  %v878_v46 = vrot.slane %v877_v13, 1 }
 0x24c   : > { %v1044_v21 = vunpack.c.l.s4 %v2399_v16 }
 0x24d   : > { %v858_v49 = vadd.f32 %v857_v43, %v856_v38  ;;  %v864_v51 = vadd.f32 %v863_v45, %v862_v40  ;;  %v873_v54 = vmax.f32 %v871_v39, %v872_v44  ;;  %v879_v56 = vmax.f32 %v877_v13, %v878_v46 }
 0x24e   : > { %v1045_v22 = vunpack.c.0.s8 %v1044_v21 }
 0x24f   : > { %v866_v53 = vmul.f32 0.125, %v858_v49  ;;  %v867_v55 = vmul.f32 0.125, %v864_v51 }
 0x250   : > { %v2679_v30 = vsub.s32 %v1045_v22, %v2482_v8 }
 0x251   : > { %v907_v60 = vsel %vm906_vm10, %v866_v53, %v873_v54  ;;  %v908_v0 = vsel %vm906_vm10, %v867_v55, %v879_v56 }
 0x252   : > { %v910_v1 = vsel %vm909_vm11, %v907_v60, %v892_v57  ;;  %v911_v2 = vsel %vm909_vm11, %v908_v0, %v893_v58  ;;  %v1056_v31 = vrot.slane %v1042_v24, %v2679_v30 }
 0x253   : > { %v913_v5 = vsel %vm912_vm12, %v910_v1, %v899_v59  ;;  %v914_v6 = vsel %vm912_vm12, %v911_v2, %v905_v61 }
 0x254   : > { %v963_v7 = vpack.c.bf16 %v913_v5, %v913_v5  ;;  %v964_v9 = vpack.c.bf16 %v914_v6, %v914_v6  ;;  %v2135_v15 = vpack.i.bf16 %v914_v6, %v913_v5  ;;  %2052 = vmatprep.mubr.msk.bf16.mxu0 %vm787_vm0, %v1056_v31 }
 0x256   : > { %965 = vst [vmem:[#allocation2 + $0x40] sm:$0x3] %v963_v7  ;;  %966 = vst [vmem:[#allocation2 + $0x48] sm:$0x3] %v964_v9  ;;  %2136 = vrot.lane.b32.xlu1 %v2135_v15, %s2391_s29  ;;  %2131 = vrot.lane.b32.xlu0 %v2135_v15, %s2389_s27 }
 0x25a   : > { %2146 = vrot.lane.b32.xlu1 %v2135_v15, %s2392_s30  ;;  %2141 = vrot.lane.b32.xlu0 %v2135_v15, %s2390_s28 }
 0x25e   : > { %2156 = vrot.lane.b32.xlu1 %v2135_v15, %s2395_s12  ;;  %2151 = vrot.lane.b32.xlu0 %v2135_v15, %s2394_s11 }
 0x262   : > { %2166 = vrot.lane.b32.xlu1 %v2135_v15, %s2397_s15  ;;  %2161 = vrot.lane.b32.xlu0 %v2135_v15, %s2396_s14 }
 0x2c8   : > { %v2137_v32 = vpop.permute.xlu1 %2136  ;;  %v2132_v33 = vpop.permute.xlu0 %2131 }
 0x2c9   : > { %v2139_v35 = vunpack.i.h.bf16 %v2137_v32  ;;  %v2138_v38 = vunpack.i.l.bf16 %v2137_v32  ;;  %v2134_v39 = vunpack.i.h.bf16 %v2132_v33  ;;  %v2133_v40 = vunpack.i.l.bf16 %v2132_v33 }
 0x2cb   : > { %v931_v13 = vsel %vm542_vm3, %v2138_v38, %v2139_v35  ;;  %v932_v43 = vsel %vm542_vm3, %v2139_v35, %v2138_v38  ;;  %v919_v8 = vsel %vm510_vm2, %v2133_v40, %v2134_v39  ;;  %v920_v44 = vsel %vm510_vm2, %v2134_v39, %v2133_v40 }
 0x2cc   : > { %v933_v45 = vpack.c.bf16 %v932_v43, %v932_v43  ;;  %v934_v46 = vpack.c.bf16 %v931_v13, %v931_v13  ;;  %v921_v47 = vpack.c.bf16 %v920_v44, %v920_v44  ;;  %v922_v48 = vpack.c.bf16 %v919_v8, %v919_v8  ;;  %v2147_v49 = vpop.permute.xlu1 %2146  ;;  %v2142_v50 = vpop.permute.xlu0 %2141 }
 0x2cd   : > { %v2149_v51 = vunpack.i.h.bf16 %v2147_v49  ;;  %v2148_v52 = vunpack.i.l.bf16 %v2147_v49  ;;  %v2144_v53 = vunpack.i.h.bf16 %v2142_v50  ;;  %v2143_v54 = vunpack.i.l.bf16 %v2142_v50 }
 0x2ce   : > { %v935_v55 = vmul.bf16 %v933_v45, %v2552_v3  ;;  %v936_v56 = vmul.bf16 %v934_v46, %v2555_v4  ;;  %v923_v57 = vmul.bf16 %v921_v47, %v2538_v41  ;;  %v924_v58 = vmul.bf16 %v922_v48, %v2541_v42 }
 0x2cf   : > { %v955_v59 = vsel %vm601_vm5, %v2148_v52, %v2149_v51  ;;  %v956_v60 = vsel %vm601_vm5, %v2149_v51, %v2148_v52  ;;  %v943_v61 = vsel %vm569_vm4, %v2143_v54, %v2144_v53  ;;  %v944_v0 = vsel %vm569_vm4, %v2144_v53, %v2143_v54 }
 0x2d0   : > { %937 = vst [vmem:[#allocation2 + $0x10] sm:$0x3] %v935_v55  ;;  %938 = vst [vmem:[#allocation2 + $0x18] sm:$0x3] %v936_v56  ;;  %v957_v1 = vpack.c.bf16 %v956_v60, %v956_v60  ;;  %v958_v2 = vpack.c.bf16 %v955_v59, %v955_v59  ;;  %v945_v5 = vpack.c.bf16 %v944_v0, %v944_v0  ;;  %v2157_v7 = vpop.permute.xlu1 %2156  ;;  %v2152_v9 = vpop.permute.xlu0 %2151 }
 0x2d1   : > { %925 = vst [vmem:[#allocation2] sm:$0x3] %v923_v57  ;;  %926 = vst [vmem:[#allocation2 + $0x8] sm:$0x3] %v924_v58  ;;  %v946_v6 = vpack.c.bf16 %v943_v61, %v943_v61  ;;  %v2159_v15 = vunpack.i.h.bf16 %v2157_v7  ;;  %v2158_v16 = vunpack.i.l.bf16 %v2157_v7  ;;  %v2154_v21 = vunpack.i.h.bf16 %v2152_v9 }
 0x2d2   : > { %v2153_v22 = vunpack.i.l.bf16 %v2152_v9  ;;  %v959_v24 = vmul.bf16 %v957_v1, %v2563_v12  ;;  %v960_v31 = vmul.bf16 %v958_v2, %v2565_v14  ;;  %v947_v32 = vmul.bf16 %v945_v5, %v2559_v10 }
 0x2d3   : > { %v948_v33 = vmul.bf16 %v946_v6, %v2561_v11  ;;  %v983_v35 = vsel %vm675_vm7, %v2158_v16, %v2159_v15  ;;  %v984_v38 = vsel %vm675_vm7, %v2159_v15, %v2158_v16 }
 0x2d4   : > { %v971_v39 = vsel %vm641_vm6, %v2153_v22, %v2154_v21  ;;  %v972_v40 = vsel %vm641_vm6, %v2154_v21, %v2153_v22  ;;  %961 = vst [vmem:[#allocation2 + $0x30] sm:$0x3] %v959_v24  ;;  %962 = vst [vmem:[#allocation2 + $0x38] sm:$0x3] %v960_v31  ;;  %v985_v13 = vpack.c.bf16 %v983_v35, %v983_v35  ;;  %v2167_v45 = vpop.permute.xlu1 %2166  ;;  %v2162_v46 = vpop.permute.xlu0 %2161 }
 0x2d5   : > { %949 = vst [vmem:[#allocation2 + $0x20] sm:$0x3] %v947_v32  ;;  %950 = vst [vmem:[#allocation2 + $0x28] sm:$0x3] %v948_v33  ;;  %v986_v43 = vpack.c.bf16 %v984_v38, %v984_v38  ;;  %v973_v8 = vpack.c.bf16 %v971_v39, %v971_v39  ;;  %v974_v44 = vpack.c.bf16 %v972_v40, %v972_v40  ;;  %v2169_v47 = vunpack.i.h.bf16 %v2167_v45  ;;  %v1025_v32 = vld [vmem:[#allocation2 + $0x48] sm:$0xff]  ;;  %v1024_v33 = vld [vmem:[#allocation2 + $0x40] sm:$0xff] }
 0x2d6   : > { %v2168_v48 = vunpack.i.l.bf16 %v2167_v45  ;;  %v2164_v49 = vunpack.i.h.bf16 %v2162_v46  ;;  %v2163_v50 = vunpack.i.l.bf16 %v2162_v46  ;;  %v987_v51 = vmul.bf16 %v985_v13, %v2573_v19 }
 0x2d7   : > { %v988_v52 = vmul.bf16 %v986_v43, %v2575_v20  ;;  %v975_v53 = vmul.bf16 %v973_v8, %v2568_v17  ;;  %v976_v54 = vmul.bf16 %v974_v44, %v2570_v18  ;;  %v1019_v5 = vld [vmem:[#allocation2 + $0x18] sm:$0xff]  ;;  %v1018_v16 = vld [vmem:[#allocation2 + $0x10] sm:$0xff]  ;;  %v1049_v45 = vrot.slane %v2674_v23, %v2679_v30 }
 0x2d8   : > { %v1007_v55 = vsel %vm734_vm9, %v2168_v48, %v2169_v47  ;;  %v1008_v56 = vsel %vm734_vm9, %v2169_v47, %v2168_v48  ;;  %v995_v57 = vsel %vm707_vm8, %v2163_v50, %v2164_v49  ;;  %v996_v58 = vsel %vm707_vm8, %v2164_v49, %v2163_v50  ;;  %v1017_v59 = vld [vmem:[#allocation2 + $0x8] sm:$0xff]  ;;  %v1016_v60 = vld [vmem:[#allocation2] sm:$0xff]  ;;  %989 = vst [vmem:[#allocation2 + $0x60] sm:$0x3] %v987_v51 }
 0x2d9   : > { %990 = vst [vmem:[#allocation2 + $0x68] sm:$0x3] %v988_v52  ;;  %977 = vst [vmem:[#allocation2 + $0x50] sm:$0x3] %v975_v53  ;;  %v1009_v61 = vpack.c.bf16 %v1007_v55, %v1007_v55  ;;  %v1010_v0 = vpack.c.bf16 %v1008_v56, %v1008_v56  ;;  %v997_v1 = vpack.c.bf16 %v995_v57, %v995_v57  ;;  %1061 = vmatprep.subr.bf16.mxu0 %v1017_v59 }
 0x2da   : > { %978 = vst [vmem:[#allocation2 + $0x58] sm:$0x3] %v976_v54  ;;  %v998_v2 = vpack.c.bf16 %v996_v58, %v996_v58  ;;  %1062 = vmatpush1.bf16.msra.mxu0 %v1016_v60 }
 0x2db   : > { %v1011_v6 = vmul.bf16 %v1009_v61, %v2582_v27  ;;  %v1012_v7 = vmul.bf16 %v1010_v0, %v2585_v28  ;;  %v999_v9 = vmul.bf16 %v997_v1, %v2577_v25  ;;  %1063 = vmatprep.subr.bf16.mxu0 %v1019_v5  ;;  %v1023_v24 = vld [vmem:[#allocation2 + $0x38] sm:$0xff]  ;;  %v1022_v31 = vld [vmem:[#allocation2 + $0x30] sm:$0xff] }
 0x2dc   : > { %v1000_v15 = vmul.bf16 %v998_v2, %v2579_v26  ;;  %v1021_v21 = vld [vmem:[#allocation2 + $0x28] sm:$0xff]  ;;  %v1020_v22 = vld [vmem:[#allocation2 + $0x20] sm:$0xff] }
 0x2dd   : > { %1013 = vst [vmem:[#allocation2 + $0x80] sm:$0x3] %v1011_v6  ;;  %1014 = vst [vmem:[#allocation2 + $0x88] sm:$0x3] %v1012_v7 }
 0x2de   : > { %1001 = vst [vmem:[#allocation2 + $0x70] sm:$0x3] %v999_v9  ;;  %1002 = vst [vmem:[#allocation2 + $0x78] sm:$0x3] %v1000_v15  ;;  %1064 = vmatpush1.bf16.msra.mxu0 %v1018_v16 }
 0x2df   : > { %1065 = vmatprep.subr.bf16.mxu0 %v1021_v21  ;;  %v1028_v40 = vld [vmem:[#allocation2 + $0x60] sm:$0xff] }
 0x2e0   : > { %v1026_v38 = vld [vmem:[#allocation2 + $0x50] sm:$0xff]  ;;  %v1029_v39 = vld [vmem:[#allocation2 + $0x68] sm:$0xff] }
 0x2e1   : > { %v1027_v35 = vld [vmem:[#allocation2 + $0x58] sm:$0xff] }
 0x2e2   : > { %1066 = vmatpush1.bf16.msra.mxu0 %v1020_v22 }
 0x2e3   : > { %1067 = vmatprep.subr.bf16.mxu0 %v1023_v24 }
 0x2e4   : > { %v1033_v8 = vld [vmem:[#allocation2 + $0x88] sm:$0xff]  ;;  %v1032_v44 = vld [vmem:[#allocation2 + $0x80] sm:$0xff] }
 0x2e5   : > { %v1031_v13 = vld [vmem:[#allocation2 + $0x78] sm:$0xff]  ;;  %v1030_v43 = vld [vmem:[#allocation2 + $0x70] sm:$0xff] }
 0x2e6   : > { %1068 = vmatpush1.bf16.msra.mxu0 %v1022_v31 }
 0x2e7   : > { %1069 = vmatprep.subr.bf16.mxu0 %v1025_v32  ;;  %v2748_v32 = vld.sshfl [vmem:[%s3024_s6] sm:$0x11 pattern:$0x75316420] }
 0x2ea   : > { %1070 = vmatpush1.bf16.msra.mxu0 %v1024_v33  ;;  %v1254_v33 = vcombine.high %v2748_v32, %v2748_v32 }
 0x2eb   : > { %1071 = vmatprep.subr.bf16.mxu0 %v1027_v35 }
 0x2ec   : > { %v1268_v35 = vrot.slane %v1254_v33, %v2679_v30 }
 0x2ee   : > { %1072 = vmatpush1.bf16.msra.mxu0 %v1026_v38  ;;  %2054 = vmatprep.mubr.msk.bf16.mxu1 %vm787_vm0, %v1268_v35 }
 0x2ef   : > { %1073 = vmatprep.subr.bf16.mxu0 %v1029_v39 }
 0x2f2   : > { %1074 = vmatpush1.bf16.msra.mxu0 %v1028_v40 }
 0x2f3   : > { %1075 = vmatprep.subr.bf16.mxu0 %v1031_v13 }
 0x2f6   : > { %1076 = vmatpush1.bf16.msra.mxu0 %v1030_v43 }
 0x2f7   : > { %1077 = vmatprep.subr.bf16.mxu0 %v1033_v8 }
 0x2fa   : > { %1078 = vmatpush1.bf16.msra.mxu0 %v1032_v44 }
 0x2fd   : > { %1094 = vmatmul.mubr.bf16.vlgmr.msra.gmra.mrb[4].mxu0 %v1049_v45 }
 0x3d0   : > { %v1095_v46 = vpop.f32.mrb[4].mxu0 }
 0x3d1   : > { %v1108_v47 = vmul.f32 %v1095_v46, %v1095_v46  ;;  %v1097_v48 = vpop.f32.mrb[5].mxu0  ;;  %v1102_v49 = vsel %vm909_vm11, %v1095_v46, 0.0 }
 0x3d2   : > { %v1109_v50 = vmul.f32 %v1097_v48, %v1097_v48  ;;  %v1099_v51 = vpop.f32.mrb[6].mxu0  ;;  %v1103_v52 = vsel %vm909_vm11, %v1097_v48, 0.0 }
 0x3d3   : > { %v1100_v53 = vpop.f32.mrb[7].mxu0  ;;  %v1104_v54 = vadd.f32 %v1103_v52, %v1102_v49  ;;  %v1110_v55 = vsel %vm909_vm11, %v1108_v47, 0.0 }
 0x3d4   : > { %v1111_v56 = vsel %vm909_vm11, %v1109_v50, 0.0 }
 0x3d5   : > { %1105 = vadd.xlane.f32.xlu0 %v1104_v54  ;;  %v1112_v57 = vadd.f32 %v1111_v56, %v1110_v55 }
 0x3d7   : > { %1113 = vadd.xlane.f32.xlu1 %v1112_v57 }
 0x462   : > { %v1106_v23 = vpop.xlane.xlu0 %1105 }
 0x463   : > { %v1107_v58 = vmul.f32 0.00390625, %v1106_v23 }
 0x464   : > { %v1114_v59 = vpop.xlane.xlu1 %1113 }
 0x465   : > { %v1115_v60 = vmul.f32 0.00390625, %v1114_v59  ;;  %v1116_v61 = vmul.f32 %v1107_v58, %v1107_v58  ;;  %v1119_v5 = vsub.f32 %v1095_v46, %v1107_v58  ;;  %v1120_v6 = vsub.f32 %v1097_v48, %v1107_v58 }
 0x467   : > { %v1117_v0 = vsub.f32 %v1115_v60, %v1116_v61 }
 0x469   : > { %v1118_v1 = vmax.f32 %v1117_v0, 0.0 }
 0x46b   : > { %v1121_v2 = vadd.f32 1e-05, %v1118_v1 }
 0x46d   : > { %2362 = vrsqrt.f32 %v1121_v2 }
 0x477   : > { %v2363_v7 = vpop.eup %2362 }
 0x478   : > { %v1123_v9 = vmul.f32 %v2363_v7, %v1119_v5  ;;  %v1124_v15 = vmul.f32 %v2363_v7, %v1120_v6 }
 0x47a   : > { %v1125_v16 = vmax.f32 %v1123_v9, 0.0  ;;  %v1126_v21 = vmax.f32 %v1124_v15, 0.0 }
 0x47c   : > { %v2175_v22 = vpack.i.bf16 %v1126_v21, %v1125_v16  ;;  %v1176_v24 = vpack.c.bf16 %v1126_v21, %v1126_v21  ;;  %v1175_v31 = vpack.c.bf16 %v1125_v16, %v1125_v16 }
 0x47e   : > { %2176 = vrot.lane.b32.xlu1 %v2175_v22, %s2391_s29  ;;  %2171 = vrot.lane.b32.xlu0 %v2175_v22, %s2389_s27  ;;  %1178 = vst [vmem:[#allocation2 + $0x48] sm:$0x1] %v1176_v24  ;;  %1177 = vst [vmem:[#allocation2 + $0x40] sm:$0x1] %v1175_v31 }
 0x482   : > { %2186 = vrot.lane.b32.xlu1 %v2175_v22, %s2392_s30  ;;  %2181 = vrot.lane.b32.xlu0 %v2175_v22, %s2390_s28 }
 0x486   : > { %2196 = vrot.lane.b32.xlu1 %v2175_v22, %s2395_s12  ;;  %2191 = vrot.lane.b32.xlu0 %v2175_v22, %s2394_s11 }
 0x48a   : > { %2206 = vrot.lane.b32.xlu1 %v2175_v22, %s2397_s15  ;;  %2201 = vrot.lane.b32.xlu0 %v2175_v22, %s2396_s14 }
 0x4f0   : > { %v2177_v38 = vpop.permute.xlu1 %2176  ;;  %v2172_v39 = vpop.permute.xlu0 %2171 }
 0x4f1   : > { %v2179_v40 = vunpack.i.h.bf16 %v2177_v38  ;;  %v2178_v13 = vunpack.i.l.bf16 %v2177_v38  ;;  %v2174_v43 = vunpack.i.h.bf16 %v2172_v39  ;;  %v2173_v8 = vunpack.i.l.bf16 %v2172_v39 }
 0x4f3   : > { %v1143_v44 = vsel %vm542_vm3, %v2178_v13, %v2179_v40  ;;  %v1144_v45 = vsel %vm542_vm3, %v2179_v40, %v2178_v13  ;;  %v1131_v46 = vsel %vm510_vm2, %v2173_v8, %v2174_v43  ;;  %v1132_v47 = vsel %vm510_vm2, %v2174_v43, %v2173_v8 }
 0x4f4   : > { %v1145_v48 = vpack.c.bf16 %v1144_v45, %v1144_v45  ;;  %v1146_v49 = vpack.c.bf16 %v1143_v44, %v1143_v44  ;;  %v1133_v50 = vpack.c.bf16 %v1132_v47, %v1132_v47  ;;  %v1134_v51 = vpack.c.bf16 %v1131_v46, %v1131_v46  ;;  %v2187_v52 = vpop.permute.xlu1 %2186  ;;  %v2182_v53 = vpop.permute.xlu0 %2181 }
 0x4f5   : > { %v2189_v54 = vunpack.i.h.bf16 %v2187_v52  ;;  %v2188_v55 = vunpack.i.l.bf16 %v2187_v52  ;;  %v2184_v56 = vunpack.i.h.bf16 %v2182_v53  ;;  %v2183_v57 = vunpack.i.l.bf16 %v2182_v53 }
 0x4f6   : > { %v1147_v23 = vmul.bf16 %v1145_v48, %v2552_v3  ;;  %v1148_v58 = vmul.bf16 %v1146_v49, %v2555_v4  ;;  %v1135_v59 = vmul.bf16 %v1133_v50, %v2538_v41  ;;  %v1136_v60 = vmul.bf16 %v1134_v51, %v2541_v42 }
 0x4f7   : > { %v1167_v61 = vsel %vm601_vm5, %v2188_v55, %v2189_v54  ;;  %v1168_v0 = vsel %vm601_vm5, %v2189_v54, %v2188_v55  ;;  %v1155_v1 = vsel %vm569_vm4, %v2183_v57, %v2184_v56  ;;  %v1156_v2 = vsel %vm569_vm4, %v2184_v56, %v2183_v57 }
 0x4f8   : > { %1149 = vst [vmem:[#allocation2 + $0x10] sm:$0x1] %v1147_v23  ;;  %1150 = vst [vmem:[#allocation2 + $0x18] sm:$0x1] %v1148_v58  ;;  %v1169_v5 = vpack.c.bf16 %v1168_v0, %v1168_v0  ;;  %v1170_v6 = vpack.c.bf16 %v1167_v61, %v1167_v61  ;;  %v1157_v7 = vpack.c.bf16 %v1156_v2, %v1156_v2  ;;  %v2197_v15 = vpop.permute.xlu1 %2196  ;;  %v2192_v16 = vpop.permute.xlu0 %2191 }
 0x4f9   : > { %1137 = vst [vmem:[#allocation2] sm:$0x1] %v1135_v59  ;;  %1138 = vst [vmem:[#allocation2 + $0x8] sm:$0x1] %v1136_v60  ;;  %v1158_v9 = vpack.c.bf16 %v1155_v1, %v1155_v1  ;;  %v2199_v21 = vunpack.i.h.bf16 %v2197_v15  ;;  %v2198_v22 = vunpack.i.l.bf16 %v2197_v15  ;;  %v2194_v24 = vunpack.i.h.bf16 %v2192_v16 }
 0x4fa   : > { %v2193_v31 = vunpack.i.l.bf16 %v2192_v16  ;;  %v1171_v33 = vmul.bf16 %v1169_v5, %v2563_v12  ;;  %v1172_v35 = vmul.bf16 %v1170_v6, %v2565_v14  ;;  %v1159_v38 = vmul.bf16 %v1157_v7, %v2559_v10 }
 0x4fb   : > { %v1160_v39 = vmul.bf16 %v1158_v9, %v2561_v11  ;;  %v1195_v40 = vsel %vm675_vm7, %v2198_v22, %v2199_v21  ;;  %v1196_v13 = vsel %vm675_vm7, %v2199_v21, %v2198_v22 }
 0x4fc   : > { %v1183_v43 = vsel %vm641_vm6, %v2193_v31, %v2194_v24  ;;  %v1184_v8 = vsel %vm641_vm6, %v2194_v24, %v2193_v31  ;;  %1173 = vst [vmem:[#allocation2 + $0x30] sm:$0x1] %v1171_v33  ;;  %1174 = vst [vmem:[#allocation2 + $0x38] sm:$0x1] %v1172_v35  ;;  %v1197_v44 = vpack.c.bf16 %v1195_v40, %v1195_v40  ;;  %v2207_v48 = vpop.permute.xlu1 %2206  ;;  %v2202_v49 = vpop.permute.xlu0 %2201 }
 0x4fd   : > { %1161 = vst [vmem:[#allocation2 + $0x20] sm:$0x1] %v1159_v38  ;;  %1162 = vst [vmem:[#allocation2 + $0x28] sm:$0x1] %v1160_v39  ;;  %v1198_v45 = vpack.c.bf16 %v1196_v13, %v1196_v13  ;;  %v1185_v46 = vpack.c.bf16 %v1183_v43, %v1183_v43  ;;  %v1186_v47 = vpack.c.bf16 %v1184_v8, %v1184_v8  ;;  %v2209_v50 = vunpack.i.h.bf16 %v2207_v48  ;;  %v1237_v38 = vld [vmem:[#allocation2 + $0x48] sm:$0xff]  ;;  %v1236_v39 = vld [vmem:[#allocation2 + $0x40] sm:$0xff] }
 0x4fe   : > { %v2208_v51 = vunpack.i.l.bf16 %v2207_v48  ;;  %v2204_v52 = vunpack.i.h.bf16 %v2202_v49  ;;  %v2203_v53 = vunpack.i.l.bf16 %v2202_v49  ;;  %v1199_v54 = vmul.bf16 %v1197_v44, %v2573_v19 }
 0x4ff   : > { %v1200_v55 = vmul.bf16 %v1198_v45, %v2575_v20  ;;  %v1187_v56 = vmul.bf16 %v1185_v46, %v2568_v17  ;;  %v1188_v57 = vmul.bf16 %v1186_v47, %v2570_v18  ;;  %v1231_v7 = vld [vmem:[#allocation2 + $0x18] sm:$0xff]  ;;  %v1230_v22 = vld [vmem:[#allocation2 + $0x10] sm:$0xff]  ;;  %v1261_v48 = vrot.slane %v2748_v32, %v2679_v30 }
 0x500   : > { %v1219_v23 = vsel %vm734_vm9, %v2208_v51, %v2209_v50  ;;  %v1220_v58 = vsel %vm734_vm9, %v2209_v50, %v2208_v51  ;;  %v1207_v59 = vsel %vm707_vm8, %v2203_v53, %v2204_v52  ;;  %v1208_v60 = vsel %vm707_vm8, %v2204_v52, %v2203_v53  ;;  %v1229_v61 = vld [vmem:[#allocation2 + $0x8] sm:$0xff]  ;;  %v1228_v0 = vld [vmem:[#allocation2] sm:$0xff]  ;;  %1201 = vst [vmem:[#allocation2 + $0x60] sm:$0x1] %v1199_v54 }
 0x501   : > { %1202 = vst [vmem:[#allocation2 + $0x68] sm:$0x1] %v1200_v55  ;;  %1189 = vst [vmem:[#allocation2 + $0x50] sm:$0x1] %v1187_v56  ;;  %v1221_v1 = vpack.c.bf16 %v1219_v23, %v1219_v23  ;;  %v1222_v2 = vpack.c.bf16 %v1220_v58, %v1220_v58  ;;  %v1209_v5 = vpack.c.bf16 %v1207_v59, %v1207_v59  ;;  %1273 = vmatprep.subr.bf16.mxu1 %v1229_v61 }
 0x502   : > { %1190 = vst [vmem:[#allocation2 + $0x58] sm:$0x1] %v1188_v57  ;;  %v1210_v6 = vpack.c.bf16 %v1208_v60, %v1208_v60  ;;  %1274 = vmatpush1.bf16.msra.mxu1 %v1228_v0 }
 0x503   : > { %v1223_v9 = vmul.bf16 %v1221_v1, %v2582_v27  ;;  %v1224_v15 = vmul.bf16 %v1222_v2, %v2585_v28  ;;  %v1211_v16 = vmul.bf16 %v1209_v5, %v2577_v25  ;;  %1275 = vmatprep.subr.bf16.mxu1 %v1231_v7  ;;  %v1235_v33 = vld [vmem:[#allocation2 + $0x38] sm:$0xff]  ;;  %v1234_v35 = vld [vmem:[#allocation2 + $0x30] sm:$0xff] }
 0x504   : > { %v1212_v21 = vmul.bf16 %v1210_v6, %v2579_v26  ;;  %v1233_v24 = vld [vmem:[#allocation2 + $0x28] sm:$0xff]  ;;  %v1232_v31 = vld [vmem:[#allocation2 + $0x20] sm:$0xff] }
 0x505   : > { %1225 = vst [vmem:[#allocation2 + $0x80] sm:$0x1] %v1223_v9  ;;  %1226 = vst [vmem:[#allocation2 + $0x88] sm:$0x1] %v1224_v15 }
 0x506   : > { %1213 = vst [vmem:[#allocation2 + $0x70] sm:$0x1] %v1211_v16  ;;  %1214 = vst [vmem:[#allocation2 + $0x78] sm:$0x1] %v1212_v21  ;;  %1276 = vmatpush1.bf16.msra.mxu1 %v1230_v22 }
 0x507   : > { %1277 = vmatprep.subr.bf16.mxu1 %v1233_v24  ;;  %v1240_v8 = vld [vmem:[#allocation2 + $0x60] sm:$0xff] }
 0x508   : > { %v1238_v13 = vld [vmem:[#allocation2 + $0x50] sm:$0xff]  ;;  %v1241_v43 = vld [vmem:[#allocation2 + $0x68] sm:$0xff] }
 0x509   : > { %v1239_v40 = vld [vmem:[#allocation2 + $0x58] sm:$0xff] }
 0x50a   : > { %1278 = vmatpush1.bf16.msra.mxu1 %v1232_v31 }
 0x50b   : > { %1279 = vmatprep.subr.bf16.mxu1 %v1235_v33 }
 0x50c   : > { %v1245_v46 = vld [vmem:[#allocation2 + $0x88] sm:$0xff]  ;;  %v1244_v47 = vld [vmem:[#allocation2 + $0x80] sm:$0xff] }
 0x50d   : > { %v1243_v44 = vld [vmem:[#allocation2 + $0x78] sm:$0xff]  ;;  %v1242_v45 = vld [vmem:[#allocation2 + $0x70] sm:$0xff] }
 0x50e   : > { %1280 = vmatpush1.bf16.msra.mxu1 %v1234_v35 }
 0x50f   : > { %1281 = vmatprep.subr.bf16.mxu1 %v1237_v38 }
 0x512   : > { %1282 = vmatpush1.bf16.msra.mxu1 %v1236_v39 }
 0x513   : > { %1283 = vmatprep.subr.bf16.mxu1 %v1239_v40 }
 0x516   : > { %1284 = vmatpush1.bf16.msra.mxu1 %v1238_v13 }
 0x517   : > { %1285 = vmatprep.subr.bf16.mxu1 %v1241_v43 }
 0x51a   : > { %1286 = vmatpush1.bf16.msra.mxu1 %v1240_v8 }
 0x51b   : > { %1287 = vmatprep.subr.bf16.mxu1 %v1243_v44 }
 0x51e   : > { %1288 = vmatpush1.bf16.msra.mxu1 %v1242_v45 }
 0x51f   : > { %1289 = vmatprep.subr.bf16.mxu1 %v1245_v46 }
 0x522   : > { %1290 = vmatpush1.bf16.msra.mxu1 %v1244_v47 }
 0x525   : > { %1306 = vmatmul.mubr.bf16.vlgmr.msra.gmra.mrb[4].mxu1 %v1261_v48 }
 0x5f8   : > { %v1307_v49 = vpop.f32.mrb[4].mxu1 }
 0x5f9   : > { %v1320_v50 = vmul.f32 %v1307_v49, %v1307_v49  ;;  %v1309_v51 = vpop.f32.mrb[5].mxu1  ;;  %v1314_v52 = vsel %vm906_vm10, %v1307_v49, 0.0 }
 0x5fa   : > { %v1321_v53 = vmul.f32 %v1309_v51, %v1309_v51  ;;  %v1311_v54 = vpop.f32.mrb[6].mxu1  ;;  %v1315_v55 = vsel %vm906_vm10, %v1309_v51, 0.0 }
 0x5fb   : > { %v1312_v56 = vpop.f32.mrb[7].mxu1  ;;  %v1316_v57 = vadd.f32 %v1315_v55, %v1314_v52  ;;  %v1322_v23 = vsel %vm906_vm10, %v1320_v50, 0.0 }
 0x5fc   : > { %v1323_v58 = vsel %vm906_vm10, %v1321_v53, 0.0 }
 0x5fd   : > { %1317 = vadd.xlane.f32.xlu0 %v1316_v57  ;;  %v1324_v59 = vadd.f32 %v1323_v58, %v1322_v23 }
 0x5ff   : > { %1325 = vadd.xlane.f32.xlu1 %v1324_v59 }
 0x68a   : > { %v1318_v30 = vpop.xlane.xlu0 %1317 }
 0x68b   : > { %v1319_v32 = vmul.f32 0.00390625, %v1318_v30 }
 0x68c   : > { %v1326_v60 = vpop.xlane.xlu1 %1325 }
 0x68d   : > { %v1327_v61 = vmul.f32 0.00390625, %v1326_v60  ;;  %v1328_v0 = vmul.f32 %v1319_v32, %v1319_v32  ;;  %v1331_v6 = vsub.f32 %v1307_v49, %v1319_v32  ;;  %v1332_v7 = vsub.f32 %v1309_v51, %v1319_v32 }
 0x68f   : > { %v1329_v1 = vsub.f32 %v1327_v61, %v1328_v0 }
 0x691   : > { %v1330_v2 = vmax.f32 %v1329_v1, 0.0 }
 0x693   : > { %v1333_v5 = vadd.f32 1e-05, %v1330_v2 }
 0x695   : > { %2364 = vrsqrt.f32 %v1333_v5 }
 0x69f   : > { %v2365_v9 = vpop.eup %2364 }
 0x6a0   : > { %v1335_v15 = vmul.f32 %v2365_v9, %v1331_v6  ;;  %v1336_v16 = vmul.f32 %v2365_v9, %v1332_v7 }
 0x6a2   : > { %v1337_v21 = vsub.f32 0.0, %v1335_v15  ;;  %v1338_v22 = vsub.f32 0.0, %v1336_v16 }
 0x6a4   : > { %v1339_v24 = vmul.f32 1.442695, %v1337_v21  ;;  %v1341_v31 = vmul.f32 1.442695, %v1338_v22 }
 0x6a6   : > { %2366 = vpow2.f32 %v1339_v24 }
 0x6a7   : > { %2368 = vpow2.f32 %v1341_v31 }
 0x6b0   : > { %v2367_v33 = vpop.eup %2366 }
 0x6b1   : > { %v2369_v35 = vpop.eup %2368  ;;  %v1343_v38 = vadd.f32 1.0, %v2367_v33 }
 0x6b2   : > { %v1344_v39 = vadd.f32 1.0, %v2369_v35 }
 0x6b3   : > { %2370 = vrcp.f32 %v1343_v38 }
 0x6b4   : > { %2372 = vrcp.f32 %v1344_v39 }
 0x6bd   : > { %v2371_v40 = vpop.eup %2370 }
 0x6be   : > { %v2373_v13 = vpop.eup %2372  ;;  %v1350_v43 = vrot.slane %v2371_v40, %v2527_v29  ;;  %v1357_v8 = vsub.f32 1.0, %v2371_v40 }
 0x6bf   : > { %v1354_v44 = vrot.slane %v2373_v13, %v2527_v29  ;;  %v1358_v45 = vsub.f32 1.0, %v2373_v13 }
 0x6c0   : > { %v1362_v46 = vrot.slane %v1357_v8, %v2527_v29  ;;  %v1355_v48 = vmul.f32 %v1350_v43, %v2649_v62 }
 0x6c1   : > { %v1366_v47 = vrot.slane %v1358_v45, %v2527_v29  ;;  %v1356_v50 = vmul.f32 %v1354_v44, %v2651_v63  ;;  %v2827_v29 = vld [vmem:[%s3025_s7] sm:$0xff] }
 0x6c2   : > { %v1367_v49 = vmul.f32 %v1362_v46, %v2639_v36  ;;  %v2056_v36 = vcombine.high %v2827_v29, %v2827_v29 }
 0x6c3   : > { %v1368_v51 = vmul.f32 %v1366_v47, %v2641_v37 }
 0x6c4   : > { %v1369_v52 = vadd.f32 %v1367_v49, %v1355_v48  ;;  %2057 = vmatprep.mubr.msk.bf16.mxu0 %vm787_vm0, %v2056_v36 }
 0x6c5   : > { %v1370_v53 = vadd.f32 %v1368_v51, %v1356_v50 }
 0x6c6   : > { %v1419_v54 = vpack.c.bf16 %v1369_v52, %v1369_v52 }
 0x6c7   : > { %v2215_v55 = vpack.i.bf16 %v1370_v53, %v1369_v52  ;;  %v1420_v56 = vpack.c.bf16 %v1370_v53, %v1370_v53 }
 0x6c8   : > { %1421 = vst [vmem:[#allocation2 + $0x40] sm:$0xf] %v1419_v54 }
 0x6c9   : > { %2216 = vrot.lane.b32.xlu1 %v2215_v55, %s2391_s29  ;;  %2211 = vrot.lane.b32.xlu0 %v2215_v55, %s2389_s27  ;;  %1422 = vst [vmem:[#allocation2 + $0x48] sm:$0xf] %v1420_v56 }
 0x6cd   : > { %2226 = vrot.lane.b32.xlu1 %v2215_v55, %s2392_s30  ;;  %2221 = vrot.lane.b32.xlu0 %v2215_v55, %s2390_s28 }
 0x6d1   : > { %2236 = vrot.lane.b32.xlu1 %v2215_v55, %s2395_s12  ;;  %2231 = vrot.lane.b32.xlu0 %v2215_v55, %s2394_s11 }
 0x6d5   : > { %2246 = vrot.lane.b32.xlu1 %v2215_v55, %s2397_s15  ;;  %2241 = vrot.lane.b32.xlu0 %v2215_v55, %s2396_s14 }
 0x73b   : > { %v2217_v37 = vpop.permute.xlu1 %2216  ;;  %v2212_v62 = vpop.permute.xlu0 %2211 }
 0x73c   : > { %v2219_v63 = vunpack.i.h.bf16 %v2217_v37  ;;  %v2218_v57 = vunpack.i.l.bf16 %v2217_v37  ;;  %v2214_v23 = vunpack.i.h.bf16 %v2212_v62  ;;  %v2213_v58 = vunpack.i.l.bf16 %v2212_v62 }
 0x73e   : > { %v1387_v59 = vsel %vm542_vm3, %v2218_v57, %v2219_v63  ;;  %v1388_v30 = vsel %vm542_vm3, %v2219_v63, %v2218_v57  ;;  %v1375_v32 = vsel %vm510_vm2, %v2213_v58, %v2214_v23  ;;  %v1376_v60 = vsel %vm510_vm2, %v2214_v23, %v2213_v58 }
 0x73f   : > { %v1389_v61 = vpack.c.bf16 %v1388_v30, %v1388_v30  ;;  %v1390_v0 = vpack.c.bf16 %v1387_v59, %v1387_v59  ;;  %v1377_v1 = vpack.c.bf16 %v1376_v60, %v1376_v60  ;;  %v1378_v2 = vpack.c.bf16 %v1375_v32, %v1375_v32  ;;  %v2227_v5 = vpop.permute.xlu1 %2226  ;;  %v2222_v6 = vpop.permute.xlu0 %2221 }
 0x740   : > { %v2229_v7 = vunpack.i.h.bf16 %v2227_v5  ;;  %v2228_v9 = vunpack.i.l.bf16 %v2227_v5  ;;  %v2224_v15 = vunpack.i.h.bf16 %v2222_v6  ;;  %v2223_v16 = vunpack.i.l.bf16 %v2222_v6 }
 0x741   : > { %v1391_v21 = vmul.bf16 %v1389_v61, %v2552_v3  ;;  %v1392_v22 = vmul.bf16 %v1390_v0, %v2555_v4  ;;  %v1379_v24 = vmul.bf16 %v1377_v1, %v2538_v41  ;;  %v1380_v31 = vmul.bf16 %v1378_v2, %v2541_v42 }
 0x742   : > { %v1411_v33 = vsel %vm601_vm5, %v2228_v9, %v2229_v7  ;;  %v1412_v35 = vsel %vm601_vm5, %v2229_v7, %v2228_v9  ;;  %v1399_v38 = vsel %vm569_vm4, %v2223_v16, %v2224_v15  ;;  %v1400_v39 = vsel %vm569_vm4, %v2224_v15, %v2223_v16 }
 0x743   : > { %1393 = vst [vmem:[#allocation2 + $0x10] sm:$0xf] %v1391_v21  ;;  %1394 = vst [vmem:[#allocation2 + $0x18] sm:$0xf] %v1392_v22  ;;  %v1413_v40 = vpack.c.bf16 %v1412_v35, %v1412_v35  ;;  %v1414_v13 = vpack.c.bf16 %v1411_v33, %v1411_v33  ;;  %v1401_v43 = vpack.c.bf16 %v1400_v39, %v1400_v39  ;;  %v2237_v44 = vpop.permute.xlu1 %2236  ;;  %v2232_v45 = vpop.permute.xlu0 %2231 }
 0x744   : > { %1381 = vst [vmem:[#allocation2] sm:$0xf] %v1379_v24  ;;  %1382 = vst [vmem:[#allocation2 + $0x8] sm:$0xf] %v1380_v31  ;;  %v1402_v8 = vpack.c.bf16 %v1399_v38, %v1399_v38  ;;  %v2239_v46 = vunpack.i.h.bf16 %v2237_v44  ;;  %v2238_v47 = vunpack.i.l.bf16 %v2237_v44  ;;  %v2234_v48 = vunpack.i.h.bf16 %v2232_v45 }
 0x745   : > { %v2233_v49 = vunpack.i.l.bf16 %v2232_v45  ;;  %v1415_v50 = vmul.bf16 %v1413_v40, %v2563_v12  ;;  %v1416_v51 = vmul.bf16 %v1414_v13, %v2565_v14  ;;  %v1403_v52 = vmul.bf16 %v1401_v43, %v2559_v10 }
 0x746   : > { %v1404_v53 = vmul.bf16 %v1402_v8, %v2561_v11  ;;  %v1439_v54 = vsel %vm675_vm7, %v2238_v47, %v2239_v46  ;;  %v1440_v55 = vsel %vm675_vm7, %v2239_v46, %v2238_v47  ;;  %v1481_v46 = vld [vmem:[#allocation2 + $0x48] sm:$0xff]  ;;  %v1480_v47 = vld [vmem:[#allocation2 + $0x40] sm:$0xff] }
 0x747   : > { %v1427_v56 = vsel %vm641_vm6, %v2233_v49, %v2234_v48  ;;  %v1428_v36 = vsel %vm641_vm6, %v2234_v48, %v2233_v49  ;;  %1417 = vst [vmem:[#allocation2 + $0x30] sm:$0xf] %v1415_v50  ;;  %1418 = vst [vmem:[#allocation2 + $0x38] sm:$0xf] %v1416_v51  ;;  %v1441_v37 = vpack.c.bf16 %v1439_v54, %v1439_v54  ;;  %v2247_v23 = vpop.permute.xlu1 %2246  ;;  %v2242_v58 = vpop.permute.xlu0 %2241 }
 0x748   : > { %1405 = vst [vmem:[#allocation2 + $0x20] sm:$0xf] %v1403_v52  ;;  %1406 = vst [vmem:[#allocation2 + $0x28] sm:$0xf] %v1404_v53  ;;  %v1442_v62 = vpack.c.bf16 %v1440_v55, %v1440_v55  ;;  %v1429_v63 = vpack.c.bf16 %v1427_v56, %v1427_v56  ;;  %v1430_v57 = vpack.c.bf16 %v1428_v36, %v1428_v36  ;;  %v2249_v59 = vunpack.i.h.bf16 %v2247_v23 }
 0x749   : > { %v2248_v30 = vunpack.i.l.bf16 %v2247_v23  ;;  %v2244_v32 = vunpack.i.h.bf16 %v2242_v58  ;;  %v2243_v60 = vunpack.i.l.bf16 %v2242_v58  ;;  %v1443_v61 = vmul.bf16 %v1441_v37, %v2573_v19 }
 0x74a   : > { %v1444_v0 = vmul.bf16 %v1442_v62, %v2575_v20  ;;  %v1431_v1 = vmul.bf16 %v1429_v63, %v2568_v17  ;;  %v1432_v2 = vmul.bf16 %v1430_v57, %v2570_v18  ;;  %v1475_v33 = vld [vmem:[#allocation2 + $0x18] sm:$0xff]  ;;  %v1474_v13 = vld [vmem:[#allocation2 + $0x10] sm:$0xff]  ;;  %v2055_v56 = vcombine.low %v2827_v29, %v2827_v29 }
 0x74b   : > { %v1463_v5 = vsel %vm734_vm9, %v2248_v30, %v2249_v59  ;;  %v1464_v6 = vsel %vm734_vm9, %v2249_v59, %v2248_v30  ;;  %v1451_v7 = vsel %vm707_vm8, %v2243_v60, %v2244_v32  ;;  %v1452_v9 = vsel %vm707_vm8, %v2244_v32, %v2243_v60  ;;  %v1473_v15 = vld [vmem:[#allocation2 + $0x8] sm:$0xff]  ;;  %v1472_v16 = vld [vmem:[#allocation2] sm:$0xff]  ;;  %1445 = vst [vmem:[#allocation2 + $0x60] sm:$0xf] %v1443_v61 }
 0x74c   : > { %1446 = vst [vmem:[#allocation2 + $0x68] sm:$0xf] %v1444_v0  ;;  %1433 = vst [vmem:[#allocation2 + $0x50] sm:$0xf] %v1431_v1  ;;  %v1465_v21 = vpack.c.bf16 %v1463_v5, %v1463_v5  ;;  %v1466_v22 = vpack.c.bf16 %v1464_v6, %v1464_v6  ;;  %v1453_v24 = vpack.c.bf16 %v1451_v7, %v1451_v7  ;;  %1499 = vmatprep.subr.bf16.mxu0 %v1473_v15 }
 0x74d   : > { %1434 = vst [vmem:[#allocation2 + $0x58] sm:$0xf] %v1432_v2  ;;  %v1454_v31 = vpack.c.bf16 %v1452_v9, %v1452_v9  ;;  %1500 = vmatpush1.bf16.msra.mxu0 %v1472_v16 }
 0x74e   : > { %v1467_v35 = vmul.bf16 %v1465_v21, %v2582_v27  ;;  %v1468_v38 = vmul.bf16 %v1466_v22, %v2585_v28  ;;  %v1455_v39 = vmul.bf16 %v1453_v24, %v2577_v25  ;;  %1501 = vmatprep.subr.bf16.mxu0 %v1475_v33  ;;  %v1479_v44 = vld [vmem:[#allocation2 + $0x38] sm:$0xff]  ;;  %v1478_v45 = vld [vmem:[#allocation2 + $0x30] sm:$0xff]  ;;  %v2893_v33 = vld [vmem:[%s3026_s8] sm:$0xff] }
 0x74f   : > { %v1456_v40 = vmul.bf16 %v1454_v31, %v2579_v26  ;;  %v1477_v43 = vld [vmem:[#allocation2 + $0x28] sm:$0xff]  ;;  %v1476_v8 = vld [vmem:[#allocation2 + $0x20] sm:$0xff] }
 0x750   : > { %1469 = vst [vmem:[#allocation2 + $0x80] sm:$0xf] %v1467_v35  ;;  %1470 = vst [vmem:[#allocation2 + $0x88] sm:$0xf] %v1468_v38  ;;  %v2059_v35 = vcombine.high %v2893_v33, %v2893_v33 }
 0x751   : > { %1457 = vst [vmem:[#allocation2 + $0x70] sm:$0xf] %v1455_v39  ;;  %1458 = vst [vmem:[#allocation2 + $0x78] sm:$0xf] %v1456_v40  ;;  %1502 = vmatpush1.bf16.msra.mxu0 %v1474_v13 }
 0x752   : > { %1503 = vmatprep.subr.bf16.mxu0 %v1477_v43  ;;  %v1484_v51 = vld [vmem:[#allocation2 + $0x60] sm:$0xff]  ;;  %2060 = vmatprep.mubr.msk.bf16.mxu1 %vm787_vm0, %v2059_v35 }
 0x753   : > { %v1482_v49 = vld [vmem:[#allocation2 + $0x50] sm:$0xff]  ;;  %v1485_v50 = vld [vmem:[#allocation2 + $0x68] sm:$0xff] }
 0x754   : > { %v1483_v48 = vld [vmem:[#allocation2 + $0x58] sm:$0xff] }
 0x755   : > { %1504 = vmatpush1.bf16.msra.mxu0 %v1476_v8 }
 0x756   : > { %1505 = vmatprep.subr.bf16.mxu0 %v1479_v44 }
 0x757   : > { %v1489_v54 = vld [vmem:[#allocation2 + $0x88] sm:$0xff]  ;;  %v1488_v55 = vld [vmem:[#allocation2 + $0x80] sm:$0xff] }
 0x758   : > { %v1487_v52 = vld [vmem:[#allocation2 + $0x78] sm:$0xff]  ;;  %v1486_v53 = vld [vmem:[#allocation2 + $0x70] sm:$0xff] }
 0x759   : > { %1506 = vmatpush1.bf16.msra.mxu0 %v1478_v45 }
 0x75a   : > { %1507 = vmatprep.subr.bf16.mxu0 %v1481_v46 }
 0x75d   : > { %1508 = vmatpush1.bf16.msra.mxu0 %v1480_v47 }
 0x75e   : > { %1509 = vmatprep.subr.bf16.mxu0 %v1483_v48 }
 0x761   : > { %1510 = vmatpush1.bf16.msra.mxu0 %v1482_v49 }
 0x762   : > { %1511 = vmatprep.subr.bf16.mxu0 %v1485_v50 }
 0x765   : > { %1512 = vmatpush1.bf16.msra.mxu0 %v1484_v51 }
 0x766   : > { %1513 = vmatprep.subr.bf16.mxu0 %v1487_v52 }
 0x769   : > { %1514 = vmatpush1.bf16.msra.mxu0 %v1486_v53 }
 0x76a   : > { %1515 = vmatprep.subr.bf16.mxu0 %v1489_v54 }
 0x76d   : > { %1516 = vmatpush1.bf16.msra.mxu0 %v1488_v55 }
 0x770   : > { %1532 = vmatmul.mubr.bf16.vlgmr.msra.gmra.mrb[8].mxu0 %v2055_v56 }
 0x843   : > { %v1533_v36 = vpop.f32.mrb[8].mxu0 }
 0x844   : > { %v1535_v37 = vpop.f32.mrb[9].mxu0  ;;  %v1544_v62 = vmul.f32 %v1533_v36, %v1533_v36 }
 0x845   : > { %v1537_v63 = vpop.f32.mrb[10].mxu0  ;;  %v1540_v57 = vadd.f32 %v1535_v37, %v1533_v36  ;;  %v1545_v23 = vmul.f32 %v1535_v37, %v1535_v37 }
 0x846   : > { %v1538_v58 = vpop.f32.mrb[11].mxu0 }
 0x847   : > { %1541 = vadd.xlane.f32.xlu0 %v1540_v57  ;;  %v1546_v59 = vadd.f32 %v1545_v23, %v1544_v62 }
 0x849   : > { %1547 = vadd.xlane.f32.xlu1 %v1546_v59 }
 0x8d4   : > { %v1542_v30 = vpop.xlane.xlu0 %1541 }
 0x8d5   : > { %v1543_v32 = vmul.f32 0.00390625, %v1542_v30 }
 0x8d6   : > { %v1548_v60 = vpop.xlane.xlu1 %1547 }
 0x8d7   : > { %v1549_v61 = vmul.f32 0.00390625, %v1548_v60  ;;  %v1550_v0 = vmul.f32 %v1543_v32, %v1543_v32  ;;  %v1553_v5 = vsub.f32 %v1533_v36, %v1543_v32  ;;  %v1554_v6 = vsub.f32 %v1535_v37, %v1543_v32 }
 0x8d9   : > { %v1551_v1 = vsub.f32 %v1549_v61, %v1550_v0 }
 0x8db   : > { %v1552_v2 = vmax.f32 %v1551_v1, 0.0 }
 0x8dd   : > { %v1555_v29 = vadd.f32 1e-05, %v1552_v2 }
 0x8df   : > { %2374 = vrsqrt.f32 %v1555_v29 }
 0x8e9   : > { %v2375_v7 = vpop.eup %2374 }
 0x8ea   : > { %v1557_v9 = vmul.f32 %v2375_v7, %v1553_v5  ;;  %v1558_v15 = vmul.f32 %v2375_v7, %v1554_v6 }
 0x8ec   : > { %v1559_v16 = vmax.f32 %v1557_v9, 0.0  ;;  %v1560_v21 = vmax.f32 %v1558_v15, 0.0 }
 0x8ee   : > { %v2255_v22 = vpack.i.bf16 %v1560_v21, %v1559_v16  ;;  %v1610_v24 = vpack.c.bf16 %v1560_v21, %v1560_v21  ;;  %v1609_v31 = vpack.c.bf16 %v1559_v16, %v1559_v16 }
 0x8f0   : > { %2256 = vrot.lane.b32.xlu1 %v2255_v22, %s2391_s29  ;;  %2251 = vrot.lane.b32.xlu0 %v2255_v22, %s2389_s27  ;;  %1612 = vst [vmem:[#allocation2 + $0x48] sm:$0xf] %v1610_v24  ;;  %1611 = vst [vmem:[#allocation2 + $0x40] sm:$0xf] %v1609_v31 }
 0x8f4   : > { %2266 = vrot.lane.b32.xlu1 %v2255_v22, %s2392_s30  ;;  %2261 = vrot.lane.b32.xlu0 %v2255_v22, %s2390_s28 }
 0x8f8   : > { %2276 = vrot.lane.b32.xlu1 %v2255_v22, %s2395_s12  ;;  %2271 = vrot.lane.b32.xlu0 %v2255_v22, %s2394_s11 }
 0x8fc   : > { %2286 = vrot.lane.b32.xlu1 %v2255_v22, %s2397_s15  ;;  %2281 = vrot.lane.b32.xlu0 %v2255_v22, %s2396_s14 }
 0x962   : > { %v2257_v38 = vpop.permute.xlu1 %2256  ;;  %v2252_v39 = vpop.permute.xlu0 %2251 }
 0x963   : > { %v2259_v40 = vunpack.i.h.bf16 %v2257_v38  ;;  %v2258_v13 = vunpack.i.l.bf16 %v2257_v38  ;;  %v2254_v43 = vunpack.i.h.bf16 %v2252_v39  ;;  %v2253_v8 = vunpack.i.l.bf16 %v2252_v39 }
 0x965   : > { %v1577_v44 = vsel %vm542_vm3, %v2258_v13, %v2259_v40  ;;  %v1578_v45 = vsel %vm542_vm3, %v2259_v40, %v2258_v13  ;;  %v1565_v46 = vsel %vm510_vm2, %v2253_v8, %v2254_v43  ;;  %v1566_v47 = vsel %vm510_vm2, %v2254_v43, %v2253_v8 }
 0x966   : > { %v1579_v48 = vpack.c.bf16 %v1578_v45, %v1578_v45  ;;  %v1580_v49 = vpack.c.bf16 %v1577_v44, %v1577_v44  ;;  %v1567_v50 = vpack.c.bf16 %v1566_v47, %v1566_v47  ;;  %v1568_v51 = vpack.c.bf16 %v1565_v46, %v1565_v46  ;;  %v2267_v52 = vpop.permute.xlu1 %2266  ;;  %v2262_v53 = vpop.permute.xlu0 %2261 }
 0x967   : > { %v2269_v54 = vunpack.i.h.bf16 %v2267_v52  ;;  %v2268_v55 = vunpack.i.l.bf16 %v2267_v52  ;;  %v2264_v56 = vunpack.i.h.bf16 %v2262_v53  ;;  %v2263_v36 = vunpack.i.l.bf16 %v2262_v53 }
 0x968   : > { %v1581_v37 = vmul.bf16 %v1579_v48, %v2552_v3  ;;  %v1582_v62 = vmul.bf16 %v1580_v49, %v2555_v4  ;;  %v1569_v63 = vmul.bf16 %v1567_v50, %v2538_v41  ;;  %v1570_v57 = vmul.bf16 %v1568_v51, %v2541_v42 }
 0x969   : > { %v1601_v23 = vsel %vm601_vm5, %v2268_v55, %v2269_v54  ;;  %v1602_v58 = vsel %vm601_vm5, %v2269_v54, %v2268_v55  ;;  %v1589_v59 = vsel %vm569_vm4, %v2263_v36, %v2264_v56  ;;  %v1590_v30 = vsel %vm569_vm4, %v2264_v56, %v2263_v36 }
 0x96a   : > { %1583 = vst [vmem:[#allocation2 + $0x10] sm:$0xf] %v1581_v37  ;;  %1584 = vst [vmem:[#allocation2 + $0x18] sm:$0xf] %v1582_v62  ;;  %v1603_v32 = vpack.c.bf16 %v1602_v58, %v1602_v58  ;;  %v1604_v60 = vpack.c.bf16 %v1601_v23, %v1601_v23  ;;  %v1591_v61 = vpack.c.bf16 %v1590_v30, %v1590_v30  ;;  %v2277_v1 = vpop.permute.xlu1 %2276  ;;  %v2272_v2 = vpop.permute.xlu0 %2271 }
 0x96b   : > { %1571 = vst [vmem:[#allocation2] sm:$0xf] %v1569_v63  ;;  %1572 = vst [vmem:[#allocation2 + $0x8] sm:$0xf] %v1570_v57  ;;  %v1592_v0 = vpack.c.bf16 %v1589_v59, %v1589_v59  ;;  %v2279_v29 = vunpack.i.h.bf16 %v2277_v1  ;;  %v2278_v5 = vunpack.i.l.bf16 %v2277_v1  ;;  %v2274_v6 = vunpack.i.h.bf16 %v2272_v2 }
 0x96c   : > { %v2273_v7 = vunpack.i.l.bf16 %v2272_v2  ;;  %v1605_v9 = vmul.bf16 %v1603_v32, %v2563_v12  ;;  %v1606_v15 = vmul.bf16 %v1604_v60, %v2565_v14  ;;  %v1593_v16 = vmul.bf16 %v1591_v61, %v2559_v10 }
 0x96d   : > { %v1594_v21 = vmul.bf16 %v1592_v0, %v2561_v11  ;;  %v1629_v22 = vsel %vm675_vm7, %v2278_v5, %v2279_v29  ;;  %v1630_v24 = vsel %vm675_vm7, %v2279_v29, %v2278_v5  ;;  %v1671_v29 = vld [vmem:[#allocation2 + $0x48] sm:$0xff]  ;;  %v1670_v5 = vld [vmem:[#allocation2 + $0x40] sm:$0xff] }
 0x96e   : > { %v1617_v31 = vsel %vm641_vm6, %v2273_v7, %v2274_v6  ;;  %v1618_v35 = vsel %vm641_vm6, %v2274_v6, %v2273_v7  ;;  %1607 = vst [vmem:[#allocation2 + $0x30] sm:$0xf] %v1605_v9  ;;  %1608 = vst [vmem:[#allocation2 + $0x38] sm:$0xf] %v1606_v15  ;;  %v1631_v38 = vpack.c.bf16 %v1629_v22, %v1629_v22  ;;  %v2287_v43 = vpop.permute.xlu1 %2286  ;;  %v2282_v8 = vpop.permute.xlu0 %2281 }
 0x96f   : > { %1595 = vst [vmem:[#allocation2 + $0x20] sm:$0xf] %v1593_v16  ;;  %1596 = vst [vmem:[#allocation2 + $0x28] sm:$0xf] %v1594_v21  ;;  %v1632_v39 = vpack.c.bf16 %v1630_v24, %v1630_v24  ;;  %v1619_v40 = vpack.c.bf16 %v1617_v31, %v1617_v31  ;;  %v1620_v13 = vpack.c.bf16 %v1618_v35, %v1618_v35  ;;  %v2289_v44 = vunpack.i.h.bf16 %v2287_v43 }
 0x970   : > { %v2288_v45 = vunpack.i.l.bf16 %v2287_v43  ;;  %v2284_v46 = vunpack.i.h.bf16 %v2282_v8  ;;  %v2283_v47 = vunpack.i.l.bf16 %v2282_v8  ;;  %v1633_v48 = vmul.bf16 %v1631_v38, %v2573_v19 }
 0x971   : > { %v1634_v49 = vmul.bf16 %v1632_v39, %v2575_v20  ;;  %v1621_v50 = vmul.bf16 %v1619_v40, %v2568_v17  ;;  %v1622_v51 = vmul.bf16 %v1620_v13, %v2570_v18  ;;  %v1665_v23 = vld [vmem:[#allocation2 + $0x18] sm:$0xff]  ;;  %v1664_v60 = vld [vmem:[#allocation2 + $0x10] sm:$0xff]  ;;  %v2058_v31 = vcombine.low %v2893_v33, %v2893_v33 }
 0x972   : > { %v1653_v52 = vsel %vm734_vm9, %v2288_v45, %v2289_v44  ;;  %v1654_v53 = vsel %vm734_vm9, %v2289_v44, %v2288_v45  ;;  %v1641_v54 = vsel %vm707_vm8, %v2283_v47, %v2284_v46  ;;  %v1642_v55 = vsel %vm707_vm8, %v2284_v46, %v2283_v47  ;;  %v1663_v56 = vld [vmem:[#allocation2 + $0x8] sm:$0xff]  ;;  %v1662_v36 = vld [vmem:[#allocation2] sm:$0xff]  ;;  %1635 = vst [vmem:[#allocation2 + $0x60] sm:$0xf] %v1633_v48 }
 0x973   : > { %1636 = vst [vmem:[#allocation2 + $0x68] sm:$0xf] %v1634_v49  ;;  %1623 = vst [vmem:[#allocation2 + $0x50] sm:$0xf] %v1621_v50  ;;  %v1655_v37 = vpack.c.bf16 %v1653_v52, %v1653_v52  ;;  %v1656_v62 = vpack.c.bf16 %v1654_v53, %v1654_v53  ;;  %v1643_v63 = vpack.c.bf16 %v1641_v54, %v1641_v54  ;;  %1689 = vmatprep.subr.bf16.mxu1 %v1663_v56 }
 0x974   : > { %1624 = vst [vmem:[#allocation2 + $0x58] sm:$0xf] %v1622_v51  ;;  %v1644_v57 = vpack.c.bf16 %v1642_v55, %v1642_v55  ;;  %1690 = vmatpush1.bf16.msra.mxu1 %v1662_v36 }
 0x975   : > { %v1657_v58 = vmul.bf16 %v1655_v37, %v2582_v27  ;;  %v1658_v59 = vmul.bf16 %v1656_v62, %v2585_v28  ;;  %v1645_v30 = vmul.bf16 %v1643_v63, %v2577_v25  ;;  %1691 = vmatprep.subr.bf16.mxu1 %v1665_v23  ;;  %v1669_v1 = vld [vmem:[#allocation2 + $0x38] sm:$0xff]  ;;  %v1668_v2 = vld [vmem:[#allocation2 + $0x30] sm:$0xff]  ;;  %v2959_v23 = vld [vmem:[%s3027_s9] sm:$0xff] }
 0x976   : > { %v1646_v32 = vmul.bf16 %v1644_v57, %v2579_v26  ;;  %v1667_v61 = vld [vmem:[#allocation2 + $0x28] sm:$0xff]  ;;  %v1666_v0 = vld [vmem:[#allocation2 + $0x20] sm:$0xff] }
 0x977   : > { %1659 = vst [vmem:[#allocation2 + $0x80] sm:$0xf] %v1657_v58  ;;  %1660 = vst [vmem:[#allocation2 + $0x88] sm:$0xf] %v1658_v59  ;;  %v2062_v58 = vcombine.high %v2959_v23, %v2959_v23 }
 0x978   : > { %1647 = vst [vmem:[#allocation2 + $0x70] sm:$0xf] %v1645_v30  ;;  %1648 = vst [vmem:[#allocation2 + $0x78] sm:$0xf] %v1646_v32  ;;  %1692 = vmatpush1.bf16.msra.mxu1 %v1664_v60 }
 0x979   : > { %1693 = vmatprep.subr.bf16.mxu1 %v1667_v61  ;;  %v1674_v15 = vld [vmem:[#allocation2 + $0x60] sm:$0xff]  ;;  %2063 = vmatprep.mubr.msk.bf16.mxu0 %vm787_vm0, %v2062_v58 }
 0x97a   : > { %v1672_v7 = vld [vmem:[#allocation2 + $0x50] sm:$0xff]  ;;  %v1675_v9 = vld [vmem:[#allocation2 + $0x68] sm:$0xff] }
 0x97b   : > { %v1673_v6 = vld [vmem:[#allocation2 + $0x58] sm:$0xff] }
 0x97c   : > { %1694 = vmatpush1.bf16.msra.mxu1 %v1666_v0 }
 0x97d   : > { %1695 = vmatprep.subr.bf16.mxu1 %v1669_v1 }
 0x97e   : > { %v1679_v22 = vld [vmem:[#allocation2 + $0x88] sm:$0xff]  ;;  %v1678_v24 = vld [vmem:[#allocation2 + $0x80] sm:$0xff] }
 0x97f   : > { %v1677_v16 = vld [vmem:[#allocation2 + $0x78] sm:$0xff]  ;;  %v1676_v21 = vld [vmem:[#allocation2 + $0x70] sm:$0xff] }
 0x980   : > { %1696 = vmatpush1.bf16.msra.mxu1 %v1668_v2 }
 0x981   : > { %1697 = vmatprep.subr.bf16.mxu1 %v1671_v29 }
 0x984   : > { %1698 = vmatpush1.bf16.msra.mxu1 %v1670_v5 }
 0x985   : > { %1699 = vmatprep.subr.bf16.mxu1 %v1673_v6 }
 0x988   : > { %1700 = vmatpush1.bf16.msra.mxu1 %v1672_v7 }
 0x989   : > { %1701 = vmatprep.subr.bf16.mxu1 %v1675_v9 }
 0x98c   : > { %1702 = vmatpush1.bf16.msra.mxu1 %v1674_v15 }
 0x98d   : > { %1703 = vmatprep.subr.bf16.mxu1 %v1677_v16 }
 0x990   : > { %1704 = vmatpush1.bf16.msra.mxu1 %v1676_v21 }
 0x991   : > { %1705 = vmatprep.subr.bf16.mxu1 %v1679_v22 }
 0x994   : > { %1706 = vmatpush1.bf16.msra.mxu1 %v1678_v24 }
 0x997   : > { %1722 = vmatmul.mubr.bf16.vlgmr.msra.gmra.mrb[8].mxu1 %v2058_v31 }
 0xa6a   : > { %v1723_v35 = vpop.f32.mrb[8].mxu1 }
 0xa6b   : > { %v1725_v38 = vpop.f32.mrb[9].mxu1  ;;  %v1734_v39 = vmul.f32 %v1723_v35, %v1723_v35 }
 0xa6c   : > { %v1727_v40 = vpop.f32.mrb[10].mxu1  ;;  %v1730_v13 = vadd.f32 %v1725_v38, %v1723_v35  ;;  %v1735_v43 = vmul.f32 %v1725_v38, %v1725_v38 }
 0xa6d   : > { %v1728_v8 = vpop.f32.mrb[11].mxu1 }
 0xa6e   : > { %1731 = vadd.xlane.f32.xlu0 %v1730_v13  ;;  %v1736_v44 = vadd.f32 %v1735_v43, %v1734_v39 }
 0xa70   : > { %1737 = vadd.xlane.f32.xlu1 %v1736_v44 }
 0xafb   : > { %v1732_v45 = vpop.xlane.xlu0 %1731 }
 0xafc   : > { %v1733_v46 = vmul.f32 0.00390625, %v1732_v45 }
 0xafd   : > { %v1738_v47 = vpop.xlane.xlu1 %1737 }
 0xafe   : > { %v1739_v48 = vmul.f32 0.00390625, %v1738_v47  ;;  %v1740_v49 = vmul.f32 %v1733_v46, %v1733_v46  ;;  %v1743_v52 = vsub.f32 %v1723_v35, %v1733_v46  ;;  %v1744_v53 = vsub.f32 %v1725_v38, %v1733_v46 }
 0xb00   : > { %v1741_v50 = vsub.f32 %v1739_v48, %v1740_v49 }
 0xb02   : > { %v1742_v51 = vmax.f32 %v1741_v50, 0.0 }
 0xb04   : > { %v1745_v33 = vadd.f32 1e-05, %v1742_v51 }
 0xb06   : > { %2376 = vrsqrt.f32 %v1745_v33 }
 0xb10   : > { %v2377_v54 = vpop.eup %2376 }
 0xb11   : > { %v1747_v55 = vmul.f32 %v2377_v54, %v1743_v52  ;;  %v1748_v56 = vmul.f32 %v2377_v54, %v1744_v53 }
 0xb13   : > { %v1749_v36 = vmax.f32 %v1747_v55, 0.0  ;;  %v1750_v37 = vmax.f32 %v1748_v56, 0.0 }
 0xb15   : > { %v1799_v62 = vpack.c.bf16 %v1749_v36, %v1749_v36  ;;  %v1800_v63 = vpack.c.bf16 %v1750_v37, %v1750_v37  ;;  %v2295_v57 = vpack.i.bf16 %v1750_v37, %v1749_v36 }
 0xb17   : > { %1801 = vst [vmem:[#allocation2 + $0x40] sm:$0xf] %v1799_v62  ;;  %1802 = vst [vmem:[#allocation2 + $0x48] sm:$0xf] %v1800_v63  ;;  %2296 = vrot.lane.b32.xlu1 %v2295_v57, %s2391_s29  ;;  %2291 = vrot.lane.b32.xlu0 %v2295_v57, %s2389_s27 }
 0xb1b   : > { %2306 = vrot.lane.b32.xlu1 %v2295_v57, %s2392_s30  ;;  %2301 = vrot.lane.b32.xlu0 %v2295_v57, %s2390_s28 }
 0xb1f   : > { %2316 = vrot.lane.b32.xlu1 %v2295_v57, %s2395_s12  ;;  %2311 = vrot.lane.b32.xlu0 %v2295_v57, %s2394_s11 }
 0xb23   : > { %2326 = vrot.lane.b32.xlu1 %v2295_v57, %s2397_s15  ;;  %2321 = vrot.lane.b32.xlu0 %v2295_v57, %s2396_s14 }
 0xb89   : > { %v2297_v59 = vpop.permute.xlu1 %2296  ;;  %v2292_v30 = vpop.permute.xlu0 %2291 }
 0xb8a   : > { %v2299_v32 = vunpack.i.h.bf16 %v2297_v59  ;;  %v2298_v60 = vunpack.i.l.bf16 %v2297_v59  ;;  %v2294_v61 = vunpack.i.h.bf16 %v2292_v30  ;;  %v2293_v0 = vunpack.i.l.bf16 %v2292_v30 }
 0xb8c   : > { %v1767_v1 = vsel %vm542_vm3, %v2298_v60, %v2299_v32  ;;  %v1768_v2 = vsel %vm542_vm3, %v2299_v32, %v2298_v60  ;;  %v1755_v29 = vsel %vm510_vm2, %v2293_v0, %v2294_v61  ;;  %v1756_v5 = vsel %vm510_vm2, %v2294_v61, %v2293_v0 }
 0xb8d   : > { %v1769_v6 = vpack.c.bf16 %v1768_v2, %v1768_v2  ;;  %v1770_v7 = vpack.c.bf16 %v1767_v1, %v1767_v1  ;;  %v1757_v9 = vpack.c.bf16 %v1756_v5, %v1756_v5  ;;  %v1758_v15 = vpack.c.bf16 %v1755_v29, %v1755_v29  ;;  %v2307_v16 = vpop.permute.xlu1 %2306  ;;  %v2302_v21 = vpop.permute.xlu0 %2301 }
 0xb8e   : > { %v2309_v22 = vunpack.i.h.bf16 %v2307_v16  ;;  %v2308_v24 = vunpack.i.l.bf16 %v2307_v16  ;;  %v2304_v31 = vunpack.i.h.bf16 %v2302_v21  ;;  %v2303_v35 = vunpack.i.l.bf16 %v2302_v21 }
 0xb8f   : > { %v1771_v38 = vmul.bf16 %v1769_v6, %v2552_v3  ;;  %v1772_v39 = vmul.bf16 %v1770_v7, %v2555_v4  ;;  %v1759_v40 = vmul.bf16 %v1757_v9, %v2538_v41  ;;  %v1760_v13 = vmul.bf16 %v1758_v15, %v2541_v42 }
 0xb90   : > { %v1791_v43 = vsel %vm601_vm5, %v2308_v24, %v2309_v22  ;;  %v1792_v8 = vsel %vm601_vm5, %v2309_v22, %v2308_v24  ;;  %v1779_v44 = vsel %vm569_vm4, %v2303_v35, %v2304_v31  ;;  %v1780_v45 = vsel %vm569_vm4, %v2304_v31, %v2303_v35 }
 0xb91   : > { %1773 = vst [vmem:[#allocation2 + $0x10] sm:$0xf] %v1771_v38  ;;  %1774 = vst [vmem:[#allocation2 + $0x18] sm:$0xf] %v1772_v39  ;;  %v1793_v3 = vpack.c.bf16 %v1792_v8, %v1792_v8  ;;  %v1794_v41 = vpack.c.bf16 %v1791_v43, %v1791_v43  ;;  %v1781_v4 = vpack.c.bf16 %v1780_v45, %v1780_v45  ;;  %v2317_v46 = vpop.permute.xlu1 %2316  ;;  %v2312_v47 = vpop.permute.xlu0 %2311 }
 0xb92   : > { %1761 = vst [vmem:[#allocation2] sm:$0xf] %v1759_v40  ;;  %1762 = vst [vmem:[#allocation2 + $0x8] sm:$0xf] %v1760_v13  ;;  %v1782_v42 = vpack.c.bf16 %v1779_v44, %v1779_v44  ;;  %v2319_v48 = vunpack.i.h.bf16 %v2317_v46  ;;  %v2318_v49 = vunpack.i.l.bf16 %v2317_v46  ;;  %v2314_v50 = vunpack.i.h.bf16 %v2312_v47 }
 0xb93   : > { %v2313_v51 = vunpack.i.l.bf16 %v2312_v47  ;;  %v1795_v33 = vmul.bf16 %v1793_v3, %v2563_v12  ;;  %v1796_v52 = vmul.bf16 %v1794_v41, %v2565_v14  ;;  %v1783_v53 = vmul.bf16 %v1781_v4, %v2559_v10 }
 0xb94   : > { %v1784_v54 = vmul.bf16 %v1782_v42, %v2561_v11  ;;  %v1819_v55 = vsel %vm675_vm7, %v2318_v49, %v2319_v48  ;;  %v1820_v56 = vsel %vm675_vm7, %v2319_v48, %v2318_v49  ;;  %v2061_v45 = vcombine.low %v2959_v23, %v2959_v23 }
 0xb95   : > { %v1807_v36 = vsel %vm641_vm6, %v2313_v51, %v2314_v50  ;;  %v1808_v37 = vsel %vm641_vm6, %v2314_v50, %v2313_v51  ;;  %1797 = vst [vmem:[#allocation2 + $0x30] sm:$0xf] %v1795_v33  ;;  %1798 = vst [vmem:[#allocation2 + $0x38] sm:$0xf] %v1796_v52  ;;  %v1821_v12 = vpack.c.bf16 %v1819_v55, %v1819_v55  ;;  %v2327_v62 = vpop.permute.xlu1 %2326  ;;  %v2322_v63 = vpop.permute.xlu0 %2321 }
 0xb96   : > { %1785 = vst [vmem:[#allocation2 + $0x20] sm:$0xf] %v1783_v53  ;;  %1786 = vst [vmem:[#allocation2 + $0x28] sm:$0xf] %v1784_v54  ;;  %v1822_v10 = vpack.c.bf16 %v1820_v56, %v1820_v56  ;;  %v1809_v14 = vpack.c.bf16 %v1807_v36, %v1807_v36  ;;  %v1810_v11 = vpack.c.bf16 %v1808_v37, %v1808_v37  ;;  %v2329_v57 = vunpack.i.h.bf16 %v2327_v62 }
 0xb97   : > { %v2328_v58 = vunpack.i.l.bf16 %v2327_v62  ;;  %v2324_v59 = vunpack.i.h.bf16 %v2322_v63  ;;  %v2323_v30 = vunpack.i.l.bf16 %v2322_v63  ;;  %v1823_v32 = vmul.bf16 %v1821_v12, %v2573_v19 }
 0xb98   : > { %v1824_v60 = vmul.bf16 %v1822_v10, %v2575_v20  ;;  %v1811_v61 = vmul.bf16 %v1809_v14, %v2568_v17  ;;  %v1812_v0 = vmul.bf16 %v1810_v11, %v2570_v18  ;;  %v1855_v9 = vld [vmem:[#allocation2 + $0x18] sm:$0xff]  ;;  %v1854_v22 = vld [vmem:[#allocation2 + $0x10] sm:$0xff] }
 0xb99   : > { %v1843_v1 = vsel %vm734_vm9, %v2328_v58, %v2329_v57  ;;  %v1844_v2 = vsel %vm734_vm9, %v2329_v57, %v2328_v58  ;;  %v1831_v29 = vsel %vm707_vm8, %v2323_v30, %v2324_v59  ;;  %v1832_v5 = vsel %vm707_vm8, %v2324_v59, %v2323_v30  ;;  %v1853_v6 = vld [vmem:[#allocation2 + $0x8] sm:$0xff]  ;;  %v1852_v19 = vld [vmem:[#allocation2] sm:$0xff]  ;;  %1825 = vst [vmem:[#allocation2 + $0x60] sm:$0xf] %v1823_v32 }
 0xb9a   : > { %1826 = vst [vmem:[#allocation2 + $0x68] sm:$0xf] %v1824_v60  ;;  %1813 = vst [vmem:[#allocation2 + $0x50] sm:$0xf] %v1811_v61  ;;  %v1845_v17 = vpack.c.bf16 %v1843_v1, %v1843_v1  ;;  %v1846_v18 = vpack.c.bf16 %v1844_v2, %v1844_v2  ;;  %v1833_v20 = vpack.c.bf16 %v1831_v29, %v1831_v29  ;;  %1879 = vmatprep.subr.bf16.mxu0 %v1853_v6 }
 0xb9b   : > { %1814 = vst [vmem:[#allocation2 + $0x58] sm:$0xf] %v1812_v0  ;;  %v1834_v7 = vpack.c.bf16 %v1832_v5, %v1832_v5  ;;  %1880 = vmatpush1.bf16.msra.mxu0 %v1852_v19 }
 0xb9c   : > { %v1847_v15 = vmul.bf16 %v1845_v17, %v2582_v27  ;;  %v1848_v16 = vmul.bf16 %v1846_v18, %v2585_v28  ;;  %v1835_v34 = vmul.bf16 %v1833_v20, %v2577_v25  ;;  %1881 = vmatprep.subr.bf16.mxu0 %v1855_v9  ;;  %v1859_v35 = vld [vmem:[#allocation2 + $0x38] sm:$0xff]  ;;  %v1858_v27 = vld [vmem:[#allocation2 + $0x30] sm:$0xff]  ;;  %v1861_v28 = vld [vmem:[#allocation2 + $0x48] sm:$0xff] }
 0xb9d   : > { %v1836_v21 = vmul.bf16 %v1834_v7, %v2579_v26  ;;  %v1857_v24 = vld [vmem:[#allocation2 + $0x28] sm:$0xff]  ;;  %v1856_v31 = vld [vmem:[#allocation2 + $0x20] sm:$0xff] }
 0xb9e   : > { %1849 = vst [vmem:[#allocation2 + $0x80] sm:$0xf] %v1847_v15  ;;  %1850 = vst [vmem:[#allocation2 + $0x88] sm:$0xf] %v1848_v16  ;;  %v1860_v25 = vld [vmem:[#allocation2 + $0x40] sm:$0xff] }
 0xb9f   : > { %1837 = vst [vmem:[#allocation2 + $0x70] sm:$0xf] %v1835_v34  ;;  %1838 = vst [vmem:[#allocation2 + $0x78] sm:$0xf] %v1836_v21  ;;  %1882 = vmatpush1.bf16.msra.mxu0 %v1854_v22 }
 0xba0   : > { %1883 = vmatprep.subr.bf16.mxu0 %v1857_v24  ;;  %v1864_v40 = vld [vmem:[#allocation2 + $0x60] sm:$0xff] }
 0xba1   : > { %v1862_v38 = vld [vmem:[#allocation2 + $0x50] sm:$0xff]  ;;  %v1865_v39 = vld [vmem:[#allocation2 + $0x68] sm:$0xff] }
 0xba2   : > { %v1863_v26 = vld [vmem:[#allocation2 + $0x58] sm:$0xff] }
 0xba3   : > { %1884 = vmatpush1.bf16.msra.mxu0 %v1856_v31 }
 0xba4   : > { %1885 = vmatprep.subr.bf16.mxu0 %v1859_v35 }
 0xba5   : > { %v1869_v8 = vld [vmem:[#allocation2 + $0x88] sm:$0xff]  ;;  %v1868_v44 = vld [vmem:[#allocation2 + $0x80] sm:$0xff] }
 0xba6   : > { %v1867_v13 = vld [vmem:[#allocation2 + $0x78] sm:$0xff]  ;;  %v1866_v43 = vld [vmem:[#allocation2 + $0x70] sm:$0xff] }
 0xba7   : > { %1886 = vmatpush1.bf16.msra.mxu0 %v1858_v27 }
 0xba8   : > { %1887 = vmatprep.subr.bf16.mxu0 %v1861_v28 }
 0xbab   : > { %1888 = vmatpush1.bf16.msra.mxu0 %v1860_v25 }
 0xbac   : > { %1889 = vmatprep.subr.bf16.mxu0 %v1863_v26 }
 0xbaf   : > { %1890 = vmatpush1.bf16.msra.mxu0 %v1862_v38 }
 0xbb0   : > { %1891 = vmatprep.subr.bf16.mxu0 %v1865_v39 }
 0xbb3   : > { %1892 = vmatpush1.bf16.msra.mxu0 %v1864_v40 }
 0xbb4   : > { %1893 = vmatprep.subr.bf16.mxu0 %v1867_v13 }
 0xbb7   : > { %1894 = vmatpush1.bf16.msra.mxu0 %v1866_v43 }
 0xbb8   : > { %1895 = vmatprep.subr.bf16.mxu0 %v1869_v8 }
 0xbbb   : > { %1896 = vmatpush1.bf16.msra.mxu0 %v1868_v44 }
 0xbbe   : > { %1912 = vmatmul.mubr.bf16.vlgmr.msra.gmra.mrb[12].mxu0 %v2061_v45 }
 0xc91   : > { %v1913_v3 = vpop.f32.mrb[12].mxu0 }
 0xc92   : > { %v1915_v41 = vpop.f32.mrb[13].mxu0  ;;  %v1924_v4 = vmul.f32 %v1913_v3, %v1913_v3 }
 0xc93   : > { %v1917_v42 = vpop.f32.mrb[14].mxu0  ;;  %v1920_v46 = vadd.f32 %v1915_v41, %v1913_v3  ;;  %v1925_v47 = vmul.f32 %v1915_v41, %v1915_v41 }
 0xc94   : > { %v1918_v48 = vpop.f32.mrb[15].mxu0 }
 0xc95   : > { %1921 = vadd.xlane.f32.xlu0 %v1920_v46  ;;  %v1926_v49 = vadd.f32 %v1925_v47, %v1924_v4 }
 0xc97   : > { %1927 = vadd.xlane.f32.xlu1 %v1926_v49 }
 0xd22   : > { %v1922_v50 = vpop.xlane.xlu0 %1921 }
 0xd23   : > { %v1923_v51 = vmul.f32 0.00390625, %v1922_v50 }
 0xd24   : > { %v1928_v33 = vpop.xlane.xlu1 %1927 }
 0xd25   : > { %v1929_v52 = vmul.f32 0.00390625, %v1928_v33  ;;  %v1930_v53 = vmul.f32 %v1923_v51, %v1923_v51  ;;  %v1933_v56 = vsub.f32 %v1913_v3, %v1923_v51  ;;  %v1934_v36 = vsub.f32 %v1915_v41, %v1923_v51 }
 0xd27   : > { %v1931_v54 = vsub.f32 %v1929_v52, %v1930_v53 }
 0xd29   : > { %v1932_v23 = vmax.f32 %v1931_v54, 0.0 }
 0xd2b   : > { %v1935_v55 = vadd.f32 1e-05, %v1932_v23 }
 0xd2d   : > { %2378 = vrsqrt.f32 %v1935_v55 }
 0xd37   : > { %v2379_v37 = vpop.eup %2378 }
 0xd38   : > { %v1937_v12 = vmul.f32 %v2379_v37, %v1933_v56  ;;  %v1938_v10 = vmul.f32 %v2379_v37, %v1934_v36 }
 0xd3a   : > { %v1939_v14 = vmax.f32 %v1937_v12, 0.0  ;;  %v1940_v11 = vmax.f32 %v1938_v10, 0.0 }
 0xd3c   : > { %v2069_v62 = vpack.c.bf16 %v1940_v11, %v1939_v14 }
 0xd3e   : > { %1949 = vst [vmem:[%s2474_s26] sm:$0xff] %v2069_v62 }
 0xd3f PF: > { %s20_s13 = sadd.s32 1, %s2386_s13  }
 0xd40   : > { %p17_p5 = scmp.ge.s32.totalorder %s20_s13, 4  }
 0xd42   :  { %19 = sbr.rel (!%p17_p5) target bundleno = 1 (0x1), region = 97 }

</bundles_post_ra>
